<compile_context>
chip_gen: v7x
topology: tpu7x:2x2x1
jax: 0.10.0
libtpu: 0.0.40
codegen_flags: <defaults>
</compile_context>

<pallas_src>
import functools

import jax
import jax.numpy as jnp
from jax import lax
from jax.experimental import pallas as pl
from jax.experimental.pallas import tpu as pltpu

HIDDEN = 128
IN_FEAT = 162
IN_PAD = 256            # 162 -> 256: full bf16 K tiles for z @ W_ih
X_FEAT = 484
X_PAD = 512             # 484 -> 512: full bf16 K tiles for x @ W1x
DENSE = 512
OUT_PAD = 128           # final layer padded 1 -> 128 output lanes
GATES = 4 * HIDDEN


# ---------------------------------------------------------------------------
# Fused kernel: LSTM recurrence + 6-layer dense head.
# Gate order matches PyTorch: (i, f, g, o).
# ---------------------------------------------------------------------------
def fused_kernel(z_ref, x_ref,
                 wih_ref, whh_ref, blstm_ref,
                 w1h_ref, b1_ref, b2_ref, b3_ref, b4_ref, b5_ref, b6_ref,
                 w1x_hbm, w2_hbm, w3_hbm, w4_hbm, w5_hbm, w6_hbm,
                 out_ref,
                 w1x_v, w2_v, w3_v, w4_v, w5_v, w6_v,
                 proj_ref, dma_sems,
                 *, T, B):
    # ---- Start dense-head weight DMAs; they complete under the recurrence --
    copies = [
        pltpu.make_async_copy(w1x_hbm, w1x_v, dma_sems.at[0]),
        pltpu.make_async_copy(w2_hbm, w2_v, dma_sems.at[1]),
        pltpu.make_async_copy(w3_hbm, w3_v, dma_sems.at[2]),
        pltpu.make_async_copy(w4_hbm, w4_v, dma_sems.at[3]),
        pltpu.make_async_copy(w5_hbm, w5_v, dma_sems.at[4]),
        pltpu.make_async_copy(w6_hbm, w6_v, dma_sems.at[5]),
    ]
    for cp in copies:
        cp.start()

    def bdot(a, w_ref):
        # bf16 MXU operands, f32 accumulation.
        return jnp.dot(a.astype(jnp.bfloat16), w_ref[...],
                       preferred_element_type=jnp.float32)

    # ---- Hoisted input projection for all timesteps, kept in VMEM scratch --
    # z_ref is already bf16 (cast in wrapper): (T*B, 256) @ (256, 512).
    proj_ref[...] = (jnp.dot(z_ref[...], wih_ref[...],
                             preferred_element_type=jnp.float32)
                     + blstm_ref[...])

    # ---- LSTM recurrence: only h @ W_hh is on the serial chain ----
    def step(t, carry):
        h, c = carry
        row = pl.multiple_of(t * B, 8)
        gates = proj_ref[pl.ds(row, B), :] + bdot(h, whh_ref)   # (B, 4H) f32
        i_g = jax.nn.sigmoid(gates[:, 0 * HIDDEN:1 * HIDDEN])
        f_g = jax.nn.sigmoid(gates[:, 1 * HIDDEN:2 * HIDDEN])
        g_g = jnp.tanh(gates[:, 2 * HIDDEN:3 * HIDDEN])
        o_g = jax.nn.sigmoid(gates[:, 3 * HIDDEN:4 * HIDDEN])
        c = f_g * c + i_g * g_g
        h = o_g * jnp.tanh(c)
        return h, c

    h0 = jnp.zeros((B, HIDDEN), jnp.float32)
    c0 = jnp.zeros((B, HIDDEN), jnp.float32)
    h, _ = lax.fori_loop(0, T, step, (h0, c0), unroll=True)

    # ---- Dense head: concat([h, x]) @ W1 expressed as a split matmul ----
    copies[0].wait()
    a = jnp.maximum(
        bdot(h, w1h_ref)
        + jnp.dot(x_ref[...], w1x_v[...], preferred_element_type=jnp.float32)
        + b1_ref[...], 0.0)
    copies[1].wait()
    a = jnp.maximum(bdot(a, w2_v) + b2_ref[...], 0.0)
    copies[2].wait()
    a = jnp.maximum(bdot(a, w3_v) + b3_ref[...], 0.0)
    copies[3].wait()
    a = jnp.maximum(bdot(a, w4_v) + b4_ref[...], 0.0)
    copies[4].wait()
    a = jnp.maximum(bdot(a, w5_v) + b5_ref[...], 0.0)
    copies[5].wait()
    # Lane-dense final layer (output columns padded 1 -> 128; col 0 is real).
    out_ref[...] = bdot(a, w6_v) + b6_ref[...]


def _fused_forward(z_tm2d, x_pad, params, *, T, B_pad):
    vmem_inputs = (
        z_tm2d, x_pad,
        params["lstm_w_ih_t"], params["lstm_w_hh_t"], params["lstm_bias"],
        params["w1h"], params["b1"],
        params["b2"], params["b3"], params["b4"], params["b5"], params["b6"],
    )
    hbm_inputs = (
        params["w1x"], params["w2"], params["w3"], params["w4"],
        params["w5"], params["w6"],
    )

    def vmem_spec(a):
        nd = a.ndim
        return pl.BlockSpec(a.shape, lambda i, _nd=nd: (0,) * _nd)

    in_specs = ([vmem_spec(a) for a in vmem_inputs]
                + [pl.BlockSpec(memory_space=pl.ANY) for _ in hbm_inputs])

    grid_spec = pltpu.PrefetchScalarGridSpec(
        num_scalar_prefetch=0,
        grid=(1,),
        in_specs=in_specs,
        out_specs=pl.BlockSpec((B_pad, OUT_PAD), lambda i: (0, 0)),
        scratch_shapes=[
            pltpu.VMEM((X_PAD, DENSE), jnp.bfloat16),      # w1x
            pltpu.VMEM((DENSE, DENSE), jnp.bfloat16),      # w2
            pltpu.VMEM((DENSE, DENSE), jnp.bfloat16),      # w3
            pltpu.VMEM((DENSE, DENSE), jnp.bfloat16),      # w4
            pltpu.VMEM((DENSE, DENSE), jnp.bfloat16),      # w5
            pltpu.VMEM((DENSE, OUT_PAD), jnp.bfloat16),    # w6
            pltpu.VMEM((T * B_pad, GATES), jnp.float32),   # proj scratch
            pltpu.SemaphoreType.DMA((6,)),
        ],
    )

    return pl.pallas_call(
        functools.partial(fused_kernel, T=T, B=B_pad),
        out_shape=jax.ShapeDtypeStruct((B_pad, OUT_PAD), jnp.float32),
        grid_spec=grid_spec,
        compiler_params=pltpu.CompilerParams(
            dimension_semantics=("arbitrary",)),
    )(*vmem_inputs, *hbm_inputs)


# ---------------------------------------------------------------------------
# Parameter construction (deterministic, PyTorch-style uniform init).
# Weights stored pre-transposed as (in, out), ragged dims zero-padded, bf16.
# ---------------------------------------------------------------------------
def init_params(key):
    def uniform(key, shape, bound):
        return jax.random.uniform(key, shape, jnp.float32, -bound, bound)

    keys = jax.random.split(key, 20)
    k = iter(keys)

    lstm_bound = 1.0 / jnp.sqrt(float(HIDDEN))
    w_ih = uniform(next(k), (GATES, IN_FEAT), lstm_bound)
    w_hh = uniform(next(k), (GATES, HIDDEN), lstm_bound)
    b_ih = uniform(next(k), (GATES,), lstm_bound)
    b_hh = uniform(next(k), (GATES,), lstm_bound)

    def linear(key_w, key_b, fan_in, fan_out):
        bound = 1.0 / jnp.sqrt(float(fan_in))
        w = uniform(key_w, (fan_in, fan_out), bound)   # stored as (in, out)
        b = uniform(key_b, (1, fan_out), bound)
        return w, b

    w1, b1 = linear(next(k), next(k), HIDDEN + X_FEAT, DENSE)
    w2, b2 = linear(next(k), next(k), DENSE, DENSE)
    w3, b3 = linear(next(k), next(k), DENSE, DENSE)
    w4, b4 = linear(next(k), next(k), DENSE, DENSE)
    w5, b5 = linear(next(k), next(k), DENSE, DENSE)
    w6, b6 = linear(next(k), next(k), DENSE, 1)

    wih_t_pad = jnp.pad(w_ih.T, ((0, IN_PAD - IN_FEAT), (0, 0)))   # (256, 512)
    w1x_pad = jnp.pad(w1[HIDDEN:], ((0, X_PAD - X_FEAT), (0, 0)))  # (512, 512)
    w6_pad = jnp.pad(w6, ((0, 0), (0, OUT_PAD - 1)))               # (512, 128)
    b6_pad = jnp.pad(b6, ((0, 0), (0, OUT_PAD - 1)))               # (1, 128)

    bf = lambda a: a.astype(jnp.bfloat16)
    return dict(
        lstm_w_ih_t=bf(wih_t_pad),                        # (256, 512) bf16
        lstm_w_hh_t=bf(w_hh.T),                           # (128, 512) bf16
        lstm_bias=(b_ih + b_hh).reshape(1, GATES),        # (1, 512)  f32
        w1h=bf(w1[:HIDDEN]),                              # (128, 512) bf16
        w1x=bf(w1x_pad),                                  # (512, 512) bf16
        b1=b1,
        w2=bf(w2), b2=b2,
        w3=bf(w3), b3=b3,
        w4=bf(w4), b4=b4,
        w5=bf(w5), b5=b5,
        w6=bf(w6_pad),                                    # (512, 128) bf16
        b6=b6_pad,                                        # (1, 128)  f32
    )


@functools.partial(jax.jit, static_argnames=("return_value",))
def farmer_lstm_forward(params, z, x, return_value=False):
    # z: (B, T, 162) batch-first (PyTorch convention); x: (B, 484).
    B, T, _ = z.shape
    B_pad = ((B + 7) // 8) * 8   # full sublane tiles
    z = z.astype(jnp.float32)
    x = x.astype(jnp.float32)
    # Pad batch to a multiple of 8 and the ragged feature dims to full bf16
    # K tiles (162->256, 484->512); cast MXU operands to bf16 here so the
    # kernel's input DMA is half-width.  Time-major flatten so the hoisted
    # projection yields contiguous, sublane-aligned per-step blocks.
    z_p = jnp.pad(z, ((0, B_pad - B), (0, 0), (0, IN_PAD - IN_FEAT)))
    x_p = jnp.pad(x, ((0, B_pad - B), (0, X_PAD - X_FEAT)))
    z_tm2d = jnp.transpose(z_p, (1, 0, 2)).reshape(T * B_pad, IN_PAD)

    out_pad = _fused_forward(z_tm2d.astype(jnp.bfloat16),
                             x_p.astype(jnp.bfloat16),
                             params, T=T, B_pad=B_pad)
    values = out_pad[:B, :1]

    if return_value:
        return dict(values=values)
    # Deterministic (flags is None / epsilon == 0) branch: argmax over batch.
    # TODO(synk): epsilon-greedy random-action branch uses host-side RNG and is
    # intentionally not kernelized.
    action = jnp.argmax(values, axis=0)[0]
    return dict(action=action, values=values)


# ---------------------------------------------------------------------------
# Pure-JAX reference (same bf16 matmul operands / f32 accumulation).
# ---------------------------------------------------------------------------
def reference_forward(params, z, x):
    B, T, _ = z.shape

    def bdot(a, w):
        return jnp.dot(a.astype(jnp.bfloat16), w,
                       preferred_element_type=jnp.float32)

    wih = params["lstm_w_ih_t"][:IN_FEAT]
    w1x = params["w1x"][:X_FEAT]

    h = jnp.zeros((B, HIDDEN), jnp.float32)
    c = jnp.zeros((B, HIDDEN), jnp.float32)
    for t in range(T):
        gates = (bdot(z[:, t, :], wih)
                 + bdot(h, params["lstm_w_hh_t"])
                 + params["lstm_bias"])
        i_g = jax.nn.sigmoid(gates[:, 0 * HIDDEN:1 * HIDDEN])
        f_g = jax.nn.sigmoid(gates[:, 1 * HIDDEN:2 * HIDDEN])
        g_g = jnp.tanh(gates[:, 2 * HIDDEN:3 * HIDDEN])
        o_g = jax.nn.sigmoid(gates[:, 3 * HIDDEN:4 * HIDDEN])
        c = f_g * c + i_g * g_g
        h = o_g * jnp.tanh(c)

    a = jnp.maximum(bdot(h, params["w1h"]) + bdot(x, w1x)
                    + params["b1"], 0.0)
    a = jnp.maximum(bdot(a, params["w2"]) + params["b2"], 0.0)
    a = jnp.maximum(bdot(a, params["w3"]) + params["b3"], 0.0)
    a = jnp.maximum(bdot(a, params["w4"]) + params["b4"], 0.0)
    a = jnp.maximum(bdot(a, params["w5"]) + params["b5"], 0.0)
    out = bdot(a, params["w6"]) + params["b6"]
    return out[:, :1]


if __name__ == "__main__":
    key = jax.random.PRNGKey(0)
    k_param, k_z, k_x = jax.random.split(key, 3)

    B, T = 4, 8
    params = init_params(k_param)
    z = jax.random.normal(k_z, (B, T, IN_FEAT), jnp.float32)
    x = jax.random.normal(k_x, (B, X_FEAT), jnp.float32)

    out = farmer_lstm_forward(params, z, x, return_value=True)
    values = jax.block_until_ready(out["values"])

    ref = reference_forward(params, z, x)
    assert values.shape == (B, 1)
    assert jnp.allclose(values, ref, atol=1e-2, rtol=1e-2), (values, ref)

    act_out = farmer_lstm_forward(params, z, x, return_value=False)
    jax.block_until_ready(act_out["action"])

    print("KERNEL_OK")
</pallas_src>

<mosaic_0001>
module attributes {stable_mosaic.version = 11 : i64} {
  func.func @fused_kernel(%arg0: i32, %arg1: memref<64x256xbf16, #tpu.memory_space<vmem>>, %arg2: memref<8x512xbf16, #tpu.memory_space<vmem>>, %arg3: memref<256x512xbf16, #tpu.memory_space<vmem>>, %arg4: memref<128x512xbf16, #tpu.memory_space<vmem>>, %arg5: memref<1x512xf32, #tpu.memory_space<vmem>>, %arg6: memref<128x512xbf16, #tpu.memory_space<vmem>>, %arg7: memref<1x512xf32, #tpu.memory_space<vmem>>, %arg8: memref<1x512xf32, #tpu.memory_space<vmem>>, %arg9: memref<1x512xf32, #tpu.memory_space<vmem>>, %arg10: memref<1x512xf32, #tpu.memory_space<vmem>>, %arg11: memref<1x512xf32, #tpu.memory_space<vmem>>, %arg12: memref<1x128xf32, #tpu.memory_space<vmem>>, %arg13: memref<512x512xbf16, #tpu.memory_space<any>>, %arg14: memref<512x512xbf16, #tpu.memory_space<any>>, %arg15: memref<512x512xbf16, #tpu.memory_space<any>>, %arg16: memref<512x512xbf16, #tpu.memory_space<any>>, %arg17: memref<512x512xbf16, #tpu.memory_space<any>>, %arg18: memref<512x128xbf16, #tpu.memory_space<any>>, %arg19: memref<8x128xf32, #tpu.memory_space<vmem>>, %arg20: memref<512x512xbf16, #tpu.memory_space<vmem>>, %arg21: memref<512x512xbf16, #tpu.memory_space<vmem>>, %arg22: memref<512x512xbf16, #tpu.memory_space<vmem>>, %arg23: memref<512x512xbf16, #tpu.memory_space<vmem>>, %arg24: memref<512x512xbf16, #tpu.memory_space<vmem>>, %arg25: memref<512x128xbf16, #tpu.memory_space<vmem>>, %arg26: memref<64x512xf32, #tpu.memory_space<vmem>>, %arg27: memref<6x!tpu.dma_semaphore, #tpu.memory_space<semaphore_mem>>) attributes {dimension_semantics = [#tpu.dimension_semantics<arbitrary>], iteration_bounds = array<i64: 1>, scalar_prefetch = 0 : i64, scratch_operands = 8 : i64, tpu.core_type = #tpu.core_type<tc>, window_params = [{pipeline_mode = #tpu.pipeline_mode<synchronous>, transform_indices = @transform_0, window_bounds = array<i64: 64, 256>}, {pipeline_mode = #tpu.pipeline_mode<synchronous>, transform_indices = @transform_1, window_bounds = array<i64: 8, 512>}, {pipeline_mode = #tpu.pipeline_mode<synchronous>, transform_indices = @transform_2, window_bounds = array<i64: 256, 512>}, {pipeline_mode = #tpu.pipeline_mode<synchronous>, transform_indices = @transform_3, window_bounds = array<i64: 128, 512>}, {pipeline_mode = #tpu.pipeline_mode<synchronous>, transform_indices = @transform_4, window_bounds = array<i64: 1, 512>}, {pipeline_mode = #tpu.pipeline_mode<synchronous>, transform_indices = @transform_5, window_bounds = array<i64: 128, 512>}, {pipeline_mode = #tpu.pipeline_mode<synchronous>, transform_indices = @transform_6, window_bounds = array<i64: 1, 512>}, {pipeline_mode = #tpu.pipeline_mode<synchronous>, transform_indices = @transform_7, window_bounds = array<i64: 1, 512>}, {pipeline_mode = #tpu.pipeline_mode<synchronous>, transform_indices = @transform_8, window_bounds = array<i64: 1, 512>}, {pipeline_mode = #tpu.pipeline_mode<synchronous>, transform_indices = @transform_9, window_bounds = array<i64: 1, 512>}, {pipeline_mode = #tpu.pipeline_mode<synchronous>, transform_indices = @transform_10, window_bounds = array<i64: 1, 512>}, {pipeline_mode = #tpu.pipeline_mode<synchronous>, transform_indices = @transform_11, window_bounds = array<i64: 1, 128>}, {}, {}, {}, {}, {}, {}, {pipeline_mode = #tpu.pipeline_mode<synchronous>, transform_indices = @transform_18, window_bounds = array<i64: 8, 128>}]} {
    %c0_i32 = arith.constant 0 : i32
    %0 = tpu.memref_slice %arg27[%c0_i32] : memref<6x!tpu.dma_semaphore, #tpu.memory_space<semaphore_mem>> -> memref<1x!tpu.dma_semaphore, #tpu.memory_space<semaphore_mem>>
    %1 = tpu.memref_squeeze %0 : memref<1x!tpu.dma_semaphore, #tpu.memory_space<semaphore_mem>> -> memref<!tpu.dma_semaphore, #tpu.memory_space<semaphore_mem>>
    tpu.enqueue_dma source(%arg13 : memref<512x512xbf16, #tpu.memory_space<any>>) target(%arg20 : memref<512x512xbf16, #tpu.memory_space<vmem>>) target_semaphore(%1 : memref<!tpu.dma_semaphore, #tpu.memory_space<semaphore_mem>>)
    %c1_i32 = arith.constant 1 : i32
    %2 = tpu.memref_slice %arg27[%c1_i32] : memref<6x!tpu.dma_semaphore, #tpu.memory_space<semaphore_mem>> -> memref<1x!tpu.dma_semaphore, #tpu.memory_space<semaphore_mem>>
    %3 = tpu.memref_squeeze %2 : memref<1x!tpu.dma_semaphore, #tpu.memory_space<semaphore_mem>> -> memref<!tpu.dma_semaphore, #tpu.memory_space<semaphore_mem>>
    tpu.enqueue_dma source(%arg14 : memref<512x512xbf16, #tpu.memory_space<any>>) target(%arg21 : memref<512x512xbf16, #tpu.memory_space<vmem>>) target_semaphore(%3 : memref<!tpu.dma_semaphore, #tpu.memory_space<semaphore_mem>>)
    %c2_i32 = arith.constant 2 : i32
    %4 = tpu.memref_slice %arg27[%c2_i32] : memref<6x!tpu.dma_semaphore, #tpu.memory_space<semaphore_mem>> -> memref<1x!tpu.dma_semaphore, #tpu.memory_space<semaphore_mem>>
    %5 = tpu.memref_squeeze %4 : memref<1x!tpu.dma_semaphore, #tpu.memory_space<semaphore_mem>> -> memref<!tpu.dma_semaphore, #tpu.memory_space<semaphore_mem>>
    tpu.enqueue_dma source(%arg15 : memref<512x512xbf16, #tpu.memory_space<any>>) target(%arg22 : memref<512x512xbf16, #tpu.memory_space<vmem>>) target_semaphore(%5 : memref<!tpu.dma_semaphore, #tpu.memory_space<semaphore_mem>>)
    %c3_i32 = arith.constant 3 : i32
    %6 = tpu.memref_slice %arg27[%c3_i32] : memref<6x!tpu.dma_semaphore, #tpu.memory_space<semaphore_mem>> -> memref<1x!tpu.dma_semaphore, #tpu.memory_space<semaphore_mem>>
    %7 = tpu.memref_squeeze %6 : memref<1x!tpu.dma_semaphore, #tpu.memory_space<semaphore_mem>> -> memref<!tpu.dma_semaphore, #tpu.memory_space<semaphore_mem>>
    tpu.enqueue_dma source(%arg16 : memref<512x512xbf16, #tpu.memory_space<any>>) target(%arg23 : memref<512x512xbf16, #tpu.memory_space<vmem>>) target_semaphore(%7 : memref<!tpu.dma_semaphore, #tpu.memory_space<semaphore_mem>>)
    %c4_i32 = arith.constant 4 : i32
    %8 = tpu.memref_slice %arg27[%c4_i32] : memref<6x!tpu.dma_semaphore, #tpu.memory_space<semaphore_mem>> -> memref<1x!tpu.dma_semaphore, #tpu.memory_space<semaphore_mem>>
    %9 = tpu.memref_squeeze %8 : memref<1x!tpu.dma_semaphore, #tpu.memory_space<semaphore_mem>> -> memref<!tpu.dma_semaphore, #tpu.memory_space<semaphore_mem>>
    tpu.enqueue_dma source(%arg17 : memref<512x512xbf16, #tpu.memory_space<any>>) target(%arg24 : memref<512x512xbf16, #tpu.memory_space<vmem>>) target_semaphore(%9 : memref<!tpu.dma_semaphore, #tpu.memory_space<semaphore_mem>>)
    %c5_i32 = arith.constant 5 : i32
    %10 = tpu.memref_slice %arg27[%c5_i32] : memref<6x!tpu.dma_semaphore, #tpu.memory_space<semaphore_mem>> -> memref<1x!tpu.dma_semaphore, #tpu.memory_space<semaphore_mem>>
    %11 = tpu.memref_squeeze %10 : memref<1x!tpu.dma_semaphore, #tpu.memory_space<semaphore_mem>> -> memref<!tpu.dma_semaphore, #tpu.memory_space<semaphore_mem>>
    tpu.enqueue_dma source(%arg18 : memref<512x128xbf16, #tpu.memory_space<any>>) target(%arg25 : memref<512x128xbf16, #tpu.memory_space<vmem>>) target_semaphore(%11 : memref<!tpu.dma_semaphore, #tpu.memory_space<semaphore_mem>>)
    %c0 = arith.constant 0 : index
    %c0_0 = arith.constant 0 : index
    %12 = vector.load %arg1[%c0, %c0_0] : memref<64x256xbf16, #tpu.memory_space<vmem>>, vector<64x256xbf16>
    %c0_1 = arith.constant 0 : index
    %c0_2 = arith.constant 0 : index
    %13 = vector.load %arg3[%c0_1, %c0_2] : memref<256x512xbf16, #tpu.memory_space<vmem>>, vector<256x512xbf16>
    %cst = arith.constant dense<0.000000e+00> : vector<64x512xf32>
    %14 = tpu.matmul %12, %13, %cst {dimension_numbers = #tpu.dot_dimension_numbers<[1], [0], [0], [1], [0, 0, 1, 1], [], []>} : vector<64x256xbf16>, vector<256x512xbf16>, vector<64x512xf32> -> vector<64x512xf32>
    %c0_3 = arith.constant 0 : index
    %c0_4 = arith.constant 0 : index
    %15 = vector.load %arg5[%c0_3, %c0_4] : memref<1x512xf32, #tpu.memory_space<vmem>>, vector<1x512xf32>
    %16 = vector.broadcast %15 : vector<1x512xf32> to vector<64x512xf32>
    %17 = arith.addf %14, %16 : vector<64x512xf32>
    %c0_5 = arith.constant 0 : index
    %c0_6 = arith.constant 0 : index
    %18 = vector.load %arg26[%c0_5, %c0_6] : memref<64x512xf32, #tpu.memory_space<vmem>>, vector<64x512xf32>
    tpu.vector_store %arg26[%c0_5, %c0_6], %17 {strides = array<i32>} : memref<64x512xf32, #tpu.memory_space<vmem>>, vector<64x512xf32>,
    %cst_7 = arith.constant 0.000000e+00 : f32
    %19 = vector.broadcast %cst_7 : f32 to vector<8x128xf32>
    %cst_8 = arith.constant 0.000000e+00 : f32
    %20 = vector.broadcast %cst_8 : f32 to vector<8x128xf32>
    %c0_i32_9 = arith.constant 0 : i32
    %c8_i32 = arith.constant 8 : i32
    %21 = arith.muli %c0_i32_9, %c8_i32 : i32
    %22 = tpu.assume_multiple %21, 8 : i32
    %23 = arith.index_cast %22 : i32 to index
    %c0_10 = arith.constant 0 : index
    %24 = vector.load %arg26[%23, %c0_10] : memref<64x512xf32, #tpu.memory_space<vmem>>, vector<8x512xf32>
    %25 = arith.truncf %19 : vector<8x128xf32> to vector<8x128xbf16>
    %c0_11 = arith.constant 0 : index
    %c0_12 = arith.constant 0 : index
    %26 = vector.load %arg4[%c0_11, %c0_12] : memref<128x512xbf16, #tpu.memory_space<vmem>>, vector<128x512xbf16>
    %cst_13 = arith.constant dense<0.000000e+00> : vector<8x512xf32>
    %27 = tpu.matmul %25, %26, %cst_13 {dimension_numbers = #tpu.dot_dimension_numbers<[1], [0], [0], [1], [0, 0, 1, 1], [], []>} : vector<8x128xbf16>, vector<128x512xbf16>, vector<8x512xf32> -> vector<8x512xf32>
    %28 = arith.addf %24, %27 : vector<8x512xf32>
    %29 = vector.extract_strided_slice %28 {offsets = [0, 0], sizes = [8, 128], strides = [1, 1]} : vector<8x512xf32> to vector<8x128xf32>
    %30 = arith.negf %29 : vector<8x128xf32>
    %31 = math.exp %30 : vector<8x128xf32>
    %cst_14 = arith.constant 1.000000e+00 : f32
    %32 = vector.broadcast %cst_14 : f32 to vector<8x128xf32>
    %33 = arith.addf %32, %31 : vector<8x128xf32>
    %34 = arith.divf %32, %33 : vector<8x128xf32>
    %35 = vector.extract_strided_slice %28 {offsets = [0, 128], sizes = [8, 128], strides = [1, 1]} : vector<8x512xf32> to vector<8x128xf32>
    %36 = arith.negf %35 : vector<8x128xf32>
    %37 = math.exp %36 : vector<8x128xf32>
    %cst_15 = arith.constant 1.000000e+00 : f32
    %38 = vector.broadcast %cst_15 : f32 to vector<8x128xf32>
    %39 = arith.addf %38, %37 : vector<8x128xf32>
    %40 = arith.divf %38, %39 : vector<8x128xf32>
    %41 = vector.extract_strided_slice %28 {offsets = [0, 256], sizes = [8, 128], strides = [1, 1]} : vector<8x512xf32> to vector<8x128xf32>
    %42 = math.tanh %41 : vector<8x128xf32>
    %43 = vector.extract_strided_slice %28 {offsets = [0, 384], sizes = [8, 128], strides = [1, 1]} : vector<8x512xf32> to vector<8x128xf32>
    %44 = arith.negf %43 : vector<8x128xf32>
    %45 = math.exp %44 : vector<8x128xf32>
    %cst_16 = arith.constant 1.000000e+00 : f32
    %46 = vector.broadcast %cst_16 : f32 to vector<8x128xf32>
    %47 = arith.addf %46, %45 : vector<8x128xf32>
    %48 = arith.divf %46, %47 : vector<8x128xf32>
    %49 = arith.mulf %40, %20 : vector<8x128xf32>
    %50 = arith.mulf %34, %42 : vector<8x128xf32>
    %51 = arith.addf %49, %50 : vector<8x128xf32>
    %52 = math.tanh %51 : vector<8x128xf32>
    %53 = arith.mulf %48, %52 : vector<8x128xf32>
    %c1_i32_17 = arith.constant 1 : i32
    %c8_i32_18 = arith.constant 8 : i32
    %54 = arith.muli %c1_i32_17, %c8_i32_18 : i32
    %55 = tpu.assume_multiple %54, 8 : i32
    %56 = arith.index_cast %55 : i32 to index
    %c0_19 = arith.constant 0 : index
    %57 = vector.load %arg26[%56, %c0_19] : memref<64x512xf32, #tpu.memory_space<vmem>>, vector<8x512xf32>
    %58 = arith.truncf %53 : vector<8x128xf32> to vector<8x128xbf16>
    %c0_20 = arith.constant 0 : index
    %c0_21 = arith.constant 0 : index
    %59 = vector.load %arg4[%c0_20, %c0_21] : memref<128x512xbf16, #tpu.memory_space<vmem>>, vector<128x512xbf16>
    %cst_22 = arith.constant dense<0.000000e+00> : vector<8x512xf32>
    %60 = tpu.matmul %58, %59, %cst_22 {dimension_numbers = #tpu.dot_dimension_numbers<[1], [0], [0], [1], [0, 0, 1, 1], [], []>} : vector<8x128xbf16>, vector<128x512xbf16>, vector<8x512xf32> -> vector<8x512xf32>
    %61 = arith.addf %57, %60 : vector<8x512xf32>
    %62 = vector.extract_strided_slice %61 {offsets = [0, 0], sizes = [8, 128], strides = [1, 1]} : vector<8x512xf32> to vector<8x128xf32>
    %63 = arith.negf %62 : vector<8x128xf32>
    %64 = math.exp %63 : vector<8x128xf32>
    %cst_23 = arith.constant 1.000000e+00 : f32
    %65 = vector.broadcast %cst_23 : f32 to vector<8x128xf32>
    %66 = arith.addf %65, %64 : vector<8x128xf32>
    %67 = arith.divf %65, %66 : vector<8x128xf32>
    %68 = vector.extract_strided_slice %61 {offsets = [0, 128], sizes = [8, 128], strides = [1, 1]} : vector<8x512xf32> to vector<8x128xf32>
    %69 = arith.negf %68 : vector<8x128xf32>
    %70 = math.exp %69 : vector<8x128xf32>
    %cst_24 = arith.constant 1.000000e+00 : f32
    %71 = vector.broadcast %cst_24 : f32 to vector<8x128xf32>
    %72 = arith.addf %71, %70 : vector<8x128xf32>
    %73 = arith.divf %71, %72 : vector<8x128xf32>
    %74 = vector.extract_strided_slice %61 {offsets = [0, 256], sizes = [8, 128], strides = [1, 1]} : vector<8x512xf32> to vector<8x128xf32>
    %75 = math.tanh %74 : vector<8x128xf32>
    %76 = vector.extract_strided_slice %61 {offsets = [0, 384], sizes = [8, 128], strides = [1, 1]} : vector<8x512xf32> to vector<8x128xf32>
    %77 = arith.negf %76 : vector<8x128xf32>
    %78 = math.exp %77 : vector<8x128xf32>
    %cst_25 = arith.constant 1.000000e+00 : f32
    %79 = vector.broadcast %cst_25 : f32 to vector<8x128xf32>
    %80 = arith.addf %79, %78 : vector<8x128xf32>
    %81 = arith.divf %79, %80 : vector<8x128xf32>
    %82 = arith.mulf %73, %51 : vector<8x128xf32>
    %83 = arith.mulf %67, %75 : vector<8x128xf32>
    %84 = arith.addf %82, %83 : vector<8x128xf32>
    %85 = math.tanh %84 : vector<8x128xf32>
    %86 = arith.mulf %81, %85 : vector<8x128xf32>
    %c2_i32_26 = arith.constant 2 : i32
    %c8_i32_27 = arith.constant 8 : i32
    %87 = arith.muli %c2_i32_26, %c8_i32_27 : i32
    %88 = tpu.assume_multiple %87, 8 : i32
    %89 = arith.index_cast %88 : i32 to index
    %c0_28 = arith.constant 0 : index
    %90 = vector.load %arg26[%89, %c0_28] : memref<64x512xf32, #tpu.memory_space<vmem>>, vector<8x512xf32>
    %91 = arith.truncf %86 : vector<8x128xf32> to vector<8x128xbf16>
    %c0_29 = arith.constant 0 : index
    %c0_30 = arith.constant 0 : index
    %92 = vector.load %arg4[%c0_29, %c0_30] : memref<128x512xbf16, #tpu.memory_space<vmem>>, vector<128x512xbf16>
    %cst_31 = arith.constant dense<0.000000e+00> : vector<8x512xf32>
    %93 = tpu.matmul %91, %92, %cst_31 {dimension_numbers = #tpu.dot_dimension_numbers<[1], [0], [0], [1], [0, 0, 1, 1], [], []>} : vector<8x128xbf16>, vector<128x512xbf16>, vector<8x512xf32> -> vector<8x512xf32>
    %94 = arith.addf %90, %93 : vector<8x512xf32>
    %95 = vector.extract_strided_slice %94 {offsets = [0, 0], sizes = [8, 128], strides = [1, 1]} : vector<8x512xf32> to vector<8x128xf32>
    %96 = arith.negf %95 : vector<8x128xf32>
    %97 = math.exp %96 : vector<8x128xf32>
    %cst_32 = arith.constant 1.000000e+00 : f32
    %98 = vector.broadcast %cst_32 : f32 to vector<8x128xf32>
    %99 = arith.addf %98, %97 : vector<8x128xf32>
    %100 = arith.divf %98, %99 : vector<8x128xf32>
    %101 = vector.extract_strided_slice %94 {offsets = [0, 128], sizes = [8, 128], strides = [1, 1]} : vector<8x512xf32> to vector<8x128xf32>
    %102 = arith.negf %101 : vector<8x128xf32>
    %103 = math.exp %102 : vector<8x128xf32>
    %cst_33 = arith.constant 1.000000e+00 : f32
    %104 = vector.broadcast %cst_33 : f32 to vector<8x128xf32>
    %105 = arith.addf %104, %103 : vector<8x128xf32>
    %106 = arith.divf %104, %105 : vector<8x128xf32>
    %107 = vector.extract_strided_slice %94 {offsets = [0, 256], sizes = [8, 128], strides = [1, 1]} : vector<8x512xf32> to vector<8x128xf32>
    %108 = math.tanh %107 : vector<8x128xf32>
    %109 = vector.extract_strided_slice %94 {offsets = [0, 384], sizes = [8, 128], strides = [1, 1]} : vector<8x512xf32> to vector<8x128xf32>
    %110 = arith.negf %109 : vector<8x128xf32>
    %111 = math.exp %110 : vector<8x128xf32>
    %cst_34 = arith.constant 1.000000e+00 : f32
    %112 = vector.broadcast %cst_34 : f32 to vector<8x128xf32>
    %113 = arith.addf %112, %111 : vector<8x128xf32>
    %114 = arith.divf %112, %113 : vector<8x128xf32>
    %115 = arith.mulf %106, %84 : vector<8x128xf32>
    %116 = arith.mulf %100, %108 : vector<8x128xf32>
    %117 = arith.addf %115, %116 : vector<8x128xf32>
    %118 = math.tanh %117 : vector<8x128xf32>
    %119 = arith.mulf %114, %118 : vector<8x128xf32>
    %c3_i32_35 = arith.constant 3 : i32
    %c8_i32_36 = arith.constant 8 : i32
    %120 = arith.muli %c3_i32_35, %c8_i32_36 : i32
    %121 = tpu.assume_multiple %120, 8 : i32
    %122 = arith.index_cast %121 : i32 to index
    %c0_37 = arith.constant 0 : index
    %123 = vector.load %arg26[%122, %c0_37] : memref<64x512xf32, #tpu.memory_space<vmem>>, vector<8x512xf32>
    %124 = arith.truncf %119 : vector<8x128xf32> to vector<8x128xbf16>
    %c0_38 = arith.constant 0 : index
    %c0_39 = arith.constant 0 : index
    %125 = vector.load %arg4[%c0_38, %c0_39] : memref<128x512xbf16, #tpu.memory_space<vmem>>, vector<128x512xbf16>
    %cst_40 = arith.constant dense<0.000000e+00> : vector<8x512xf32>
    %126 = tpu.matmul %124, %125, %cst_40 {dimension_numbers = #tpu.dot_dimension_numbers<[1], [0], [0], [1], [0, 0, 1, 1], [], []>} : vector<8x128xbf16>, vector<128x512xbf16>, vector<8x512xf32> -> vector<8x512xf32>
    %127 = arith.addf %123, %126 : vector<8x512xf32>
    %128 = vector.extract_strided_slice %127 {offsets = [0, 0], sizes = [8, 128], strides = [1, 1]} : vector<8x512xf32> to vector<8x128xf32>
    %129 = arith.negf %128 : vector<8x128xf32>
    %130 = math.exp %129 : vector<8x128xf32>
    %cst_41 = arith.constant 1.000000e+00 : f32
    %131 = vector.broadcast %cst_41 : f32 to vector<8x128xf32>
    %132 = arith.addf %131, %130 : vector<8x128xf32>
    %133 = arith.divf %131, %132 : vector<8x128xf32>
    %134 = vector.extract_strided_slice %127 {offsets = [0, 128], sizes = [8, 128], strides = [1, 1]} : vector<8x512xf32> to vector<8x128xf32>
    %135 = arith.negf %134 : vector<8x128xf32>
    %136 = math.exp %135 : vector<8x128xf32>
    %cst_42 = arith.constant 1.000000e+00 : f32
    %137 = vector.broadcast %cst_42 : f32 to vector<8x128xf32>
    %138 = arith.addf %137, %136 : vector<8x128xf32>
    %139 = arith.divf %137, %138 : vector<8x128xf32>
    %140 = vector.extract_strided_slice %127 {offsets = [0, 256], sizes = [8, 128], strides = [1, 1]} : vector<8x512xf32> to vector<8x128xf32>
    %141 = math.tanh %140 : vector<8x128xf32>
    %142 = vector.extract_strided_slice %127 {offsets = [0, 384], sizes = [8, 128], strides = [1, 1]} : vector<8x512xf32> to vector<8x128xf32>
    %143 = arith.negf %142 : vector<8x128xf32>
    %144 = math.exp %143 : vector<8x128xf32>
    %cst_43 = arith.constant 1.000000e+00 : f32
    %145 = vector.broadcast %cst_43 : f32 to vector<8x128xf32>
    %146 = arith.addf %145, %144 : vector<8x128xf32>
    %147 = arith.divf %145, %146 : vector<8x128xf32>
    %148 = arith.mulf %139, %117 : vector<8x128xf32>
    %149 = arith.mulf %133, %141 : vector<8x128xf32>
    %150 = arith.addf %148, %149 : vector<8x128xf32>
    %151 = math.tanh %150 : vector<8x128xf32>
    %152 = arith.mulf %147, %151 : vector<8x128xf32>
    %c4_i32_44 = arith.constant 4 : i32
    %c8_i32_45 = arith.constant 8 : i32
    %153 = arith.muli %c4_i32_44, %c8_i32_45 : i32
    %154 = tpu.assume_multiple %153, 8 : i32
    %155 = arith.index_cast %154 : i32 to index
    %c0_46 = arith.constant 0 : index
    %156 = vector.load %arg26[%155, %c0_46] : memref<64x512xf32, #tpu.memory_space<vmem>>, vector<8x512xf32>
    %157 = arith.truncf %152 : vector<8x128xf32> to vector<8x128xbf16>
    %c0_47 = arith.constant 0 : index
    %c0_48 = arith.constant 0 : index
    %158 = vector.load %arg4[%c0_47, %c0_48] : memref<128x512xbf16, #tpu.memory_space<vmem>>, vector<128x512xbf16>
    %cst_49 = arith.constant dense<0.000000e+00> : vector<8x512xf32>
    %159 = tpu.matmul %157, %158, %cst_49 {dimension_numbers = #tpu.dot_dimension_numbers<[1], [0], [0], [1], [0, 0, 1, 1], [], []>} : vector<8x128xbf16>, vector<128x512xbf16>, vector<8x512xf32> -> vector<8x512xf32>
    %160 = arith.addf %156, %159 : vector<8x512xf32>
    %161 = vector.extract_strided_slice %160 {offsets = [0, 0], sizes = [8, 128], strides = [1, 1]} : vector<8x512xf32> to vector<8x128xf32>
    %162 = arith.negf %161 : vector<8x128xf32>
    %163 = math.exp %162 : vector<8x128xf32>
    %cst_50 = arith.constant 1.000000e+00 : f32
    %164 = vector.broadcast %cst_50 : f32 to vector<8x128xf32>
    %165 = arith.addf %164, %163 : vector<8x128xf32>
    %166 = arith.divf %164, %165 : vector<8x128xf32>
    %167 = vector.extract_strided_slice %160 {offsets = [0, 128], sizes = [8, 128], strides = [1, 1]} : vector<8x512xf32> to vector<8x128xf32>
    %168 = arith.negf %167 : vector<8x128xf32>
    %169 = math.exp %168 : vector<8x128xf32>
    %cst_51 = arith.constant 1.000000e+00 : f32
    %170 = vector.broadcast %cst_51 : f32 to vector<8x128xf32>
    %171 = arith.addf %170, %169 : vector<8x128xf32>
    %172 = arith.divf %170, %171 : vector<8x128xf32>
    %173 = vector.extract_strided_slice %160 {offsets = [0, 256], sizes = [8, 128], strides = [1, 1]} : vector<8x512xf32> to vector<8x128xf32>
    %174 = math.tanh %173 : vector<8x128xf32>
    %175 = vector.extract_strided_slice %160 {offsets = [0, 384], sizes = [8, 128], strides = [1, 1]} : vector<8x512xf32> to vector<8x128xf32>
    %176 = arith.negf %175 : vector<8x128xf32>
    %177 = math.exp %176 : vector<8x128xf32>
    %cst_52 = arith.constant 1.000000e+00 : f32
    %178 = vector.broadcast %cst_52 : f32 to vector<8x128xf32>
    %179 = arith.addf %178, %177 : vector<8x128xf32>
    %180 = arith.divf %178, %179 : vector<8x128xf32>
    %181 = arith.mulf %172, %150 : vector<8x128xf32>
    %182 = arith.mulf %166, %174 : vector<8x128xf32>
    %183 = arith.addf %181, %182 : vector<8x128xf32>
    %184 = math.tanh %183 : vector<8x128xf32>
    %185 = arith.mulf %180, %184 : vector<8x128xf32>
    %c5_i32_53 = arith.constant 5 : i32
    %c8_i32_54 = arith.constant 8 : i32
    %186 = arith.muli %c5_i32_53, %c8_i32_54 : i32
    %187 = tpu.assume_multiple %186, 8 : i32
    %188 = arith.index_cast %187 : i32 to index
    %c0_55 = arith.constant 0 : index
    %189 = vector.load %arg26[%188, %c0_55] : memref<64x512xf32, #tpu.memory_space<vmem>>, vector<8x512xf32>
    %190 = arith.truncf %185 : vector<8x128xf32> to vector<8x128xbf16>
    %c0_56 = arith.constant 0 : index
    %c0_57 = arith.constant 0 : index
    %191 = vector.load %arg4[%c0_56, %c0_57] : memref<128x512xbf16, #tpu.memory_space<vmem>>, vector<128x512xbf16>
    %cst_58 = arith.constant dense<0.000000e+00> : vector<8x512xf32>
    %192 = tpu.matmul %190, %191, %cst_58 {dimension_numbers = #tpu.dot_dimension_numbers<[1], [0], [0], [1], [0, 0, 1, 1], [], []>} : vector<8x128xbf16>, vector<128x512xbf16>, vector<8x512xf32> -> vector<8x512xf32>
    %193 = arith.addf %189, %192 : vector<8x512xf32>
    %194 = vector.extract_strided_slice %193 {offsets = [0, 0], sizes = [8, 128], strides = [1, 1]} : vector<8x512xf32> to vector<8x128xf32>
    %195 = arith.negf %194 : vector<8x128xf32>
    %196 = math.exp %195 : vector<8x128xf32>
    %cst_59 = arith.constant 1.000000e+00 : f32
    %197 = vector.broadcast %cst_59 : f32 to vector<8x128xf32>
    %198 = arith.addf %197, %196 : vector<8x128xf32>
    %199 = arith.divf %197, %198 : vector<8x128xf32>
    %200 = vector.extract_strided_slice %193 {offsets = [0, 128], sizes = [8, 128], strides = [1, 1]} : vector<8x512xf32> to vector<8x128xf32>
    %201 = arith.negf %200 : vector<8x128xf32>
    %202 = math.exp %201 : vector<8x128xf32>
    %cst_60 = arith.constant 1.000000e+00 : f32
    %203 = vector.broadcast %cst_60 : f32 to vector<8x128xf32>
    %204 = arith.addf %203, %202 : vector<8x128xf32>
    %205 = arith.divf %203, %204 : vector<8x128xf32>
    %206 = vector.extract_strided_slice %193 {offsets = [0, 256], sizes = [8, 128], strides = [1, 1]} : vector<8x512xf32> to vector<8x128xf32>
    %207 = math.tanh %206 : vector<8x128xf32>
    %208 = vector.extract_strided_slice %193 {offsets = [0, 384], sizes = [8, 128], strides = [1, 1]} : vector<8x512xf32> to vector<8x128xf32>
    %209 = arith.negf %208 : vector<8x128xf32>
    %210 = math.exp %209 : vector<8x128xf32>
    %cst_61 = arith.constant 1.000000e+00 : f32
    %211 = vector.broadcast %cst_61 : f32 to vector<8x128xf32>
    %212 = arith.addf %211, %210 : vector<8x128xf32>
    %213 = arith.divf %211, %212 : vector<8x128xf32>
    %214 = arith.mulf %205, %183 : vector<8x128xf32>
    %215 = arith.mulf %199, %207 : vector<8x128xf32>
    %216 = arith.addf %214, %215 : vector<8x128xf32>
    %217 = math.tanh %216 : vector<8x128xf32>
    %218 = arith.mulf %213, %217 : vector<8x128xf32>
    %c6_i32 = arith.constant 6 : i32
    %c8_i32_62 = arith.constant 8 : i32
    %219 = arith.muli %c6_i32, %c8_i32_62 : i32
    %220 = tpu.assume_multiple %219, 8 : i32
    %221 = arith.index_cast %220 : i32 to index
    %c0_63 = arith.constant 0 : index
    %222 = vector.load %arg26[%221, %c0_63] : memref<64x512xf32, #tpu.memory_space<vmem>>, vector<8x512xf32>
    %223 = arith.truncf %218 : vector<8x128xf32> to vector<8x128xbf16>
    %c0_64 = arith.constant 0 : index
    %c0_65 = arith.constant 0 : index
    %224 = vector.load %arg4[%c0_64, %c0_65] : memref<128x512xbf16, #tpu.memory_space<vmem>>, vector<128x512xbf16>
    %cst_66 = arith.constant dense<0.000000e+00> : vector<8x512xf32>
    %225 = tpu.matmul %223, %224, %cst_66 {dimension_numbers = #tpu.dot_dimension_numbers<[1], [0], [0], [1], [0, 0, 1, 1], [], []>} : vector<8x128xbf16>, vector<128x512xbf16>, vector<8x512xf32> -> vector<8x512xf32>
    %226 = arith.addf %222, %225 : vector<8x512xf32>
    %227 = vector.extract_strided_slice %226 {offsets = [0, 0], sizes = [8, 128], strides = [1, 1]} : vector<8x512xf32> to vector<8x128xf32>
    %228 = arith.negf %227 : vector<8x128xf32>
    %229 = math.exp %228 : vector<8x128xf32>
    %cst_67 = arith.constant 1.000000e+00 : f32
    %230 = vector.broadcast %cst_67 : f32 to vector<8x128xf32>
    %231 = arith.addf %230, %229 : vector<8x128xf32>
    %232 = arith.divf %230, %231 : vector<8x128xf32>
    %233 = vector.extract_strided_slice %226 {offsets = [0, 128], sizes = [8, 128], strides = [1, 1]} : vector<8x512xf32> to vector<8x128xf32>
    %234 = arith.negf %233 : vector<8x128xf32>
    %235 = math.exp %234 : vector<8x128xf32>
    %cst_68 = arith.constant 1.000000e+00 : f32
    %236 = vector.broadcast %cst_68 : f32 to vector<8x128xf32>
    %237 = arith.addf %236, %235 : vector<8x128xf32>
    %238 = arith.divf %236, %237 : vector<8x128xf32>
    %239 = vector.extract_strided_slice %226 {offsets = [0, 256], sizes = [8, 128], strides = [1, 1]} : vector<8x512xf32> to vector<8x128xf32>
    %240 = math.tanh %239 : vector<8x128xf32>
    %241 = vector.extract_strided_slice %226 {offsets = [0, 384], sizes = [8, 128], strides = [1, 1]} : vector<8x512xf32> to vector<8x128xf32>
    %242 = arith.negf %241 : vector<8x128xf32>
    %243 = math.exp %242 : vector<8x128xf32>
    %cst_69 = arith.constant 1.000000e+00 : f32
    %244 = vector.broadcast %cst_69 : f32 to vector<8x128xf32>
    %245 = arith.addf %244, %243 : vector<8x128xf32>
    %246 = arith.divf %244, %245 : vector<8x128xf32>
    %247 = arith.mulf %238, %216 : vector<8x128xf32>
    %248 = arith.mulf %232, %240 : vector<8x128xf32>
    %249 = arith.addf %247, %248 : vector<8x128xf32>
    %250 = math.tanh %249 : vector<8x128xf32>
    %251 = arith.mulf %246, %250 : vector<8x128xf32>
    %c7_i32 = arith.constant 7 : i32
    %c8_i32_70 = arith.constant 8 : i32
    %252 = arith.muli %c7_i32, %c8_i32_70 : i32
    %253 = tpu.assume_multiple %252, 8 : i32
    %254 = arith.index_cast %253 : i32 to index
    %c0_71 = arith.constant 0 : index
    %255 = vector.load %arg26[%254, %c0_71] : memref<64x512xf32, #tpu.memory_space<vmem>>, vector<8x512xf32>
    %256 = arith.truncf %251 : vector<8x128xf32> to vector<8x128xbf16>
    %c0_72 = arith.constant 0 : index
    %c0_73 = arith.constant 0 : index
    %257 = vector.load %arg4[%c0_72, %c0_73] : memref<128x512xbf16, #tpu.memory_space<vmem>>, vector<128x512xbf16>
    %cst_74 = arith.constant dense<0.000000e+00> : vector<8x512xf32>
    %258 = tpu.matmul %256, %257, %cst_74 {dimension_numbers = #tpu.dot_dimension_numbers<[1], [0], [0], [1], [0, 0, 1, 1], [], []>} : vector<8x128xbf16>, vector<128x512xbf16>, vector<8x512xf32> -> vector<8x512xf32>
    %259 = arith.addf %255, %258 : vector<8x512xf32>
    %260 = vector.extract_strided_slice %259 {offsets = [0, 0], sizes = [8, 128], strides = [1, 1]} : vector<8x512xf32> to vector<8x128xf32>
    %261 = arith.negf %260 : vector<8x128xf32>
    %262 = math.exp %261 : vector<8x128xf32>
    %cst_75 = arith.constant 1.000000e+00 : f32
    %263 = vector.broadcast %cst_75 : f32 to vector<8x128xf32>
    %264 = arith.addf %263, %262 : vector<8x128xf32>
    %265 = arith.divf %263, %264 : vector<8x128xf32>
    %266 = vector.extract_strided_slice %259 {offsets = [0, 128], sizes = [8, 128], strides = [1, 1]} : vector<8x512xf32> to vector<8x128xf32>
    %267 = arith.negf %266 : vector<8x128xf32>
    %268 = math.exp %267 : vector<8x128xf32>
    %cst_76 = arith.constant 1.000000e+00 : f32
    %269 = vector.broadcast %cst_76 : f32 to vector<8x128xf32>
    %270 = arith.addf %269, %268 : vector<8x128xf32>
    %271 = arith.divf %269, %270 : vector<8x128xf32>
    %272 = vector.extract_strided_slice %259 {offsets = [0, 256], sizes = [8, 128], strides = [1, 1]} : vector<8x512xf32> to vector<8x128xf32>
    %273 = math.tanh %272 : vector<8x128xf32>
    %274 = vector.extract_strided_slice %259 {offsets = [0, 384], sizes = [8, 128], strides = [1, 1]} : vector<8x512xf32> to vector<8x128xf32>
    %275 = arith.negf %274 : vector<8x128xf32>
    %276 = math.exp %275 : vector<8x128xf32>
    %cst_77 = arith.constant 1.000000e+00 : f32
    %277 = vector.broadcast %cst_77 : f32 to vector<8x128xf32>
    %278 = arith.addf %277, %276 : vector<8x128xf32>
    %279 = arith.divf %277, %278 : vector<8x128xf32>
    %280 = arith.mulf %271, %249 : vector<8x128xf32>
    %281 = arith.mulf %265, %273 : vector<8x128xf32>
    %282 = arith.addf %280, %281 : vector<8x128xf32>
    %283 = math.tanh %282 : vector<8x128xf32>
    %284 = arith.mulf %279, %283 : vector<8x128xf32>
    %c8_i32_78 = arith.constant 8 : i32
    %c0_i32_79 = arith.constant 0 : i32
    %285 = tpu.memref_slice %arg27[%c0_i32_79] : memref<6x!tpu.dma_semaphore, #tpu.memory_space<semaphore_mem>> -> memref<1x!tpu.dma_semaphore, #tpu.memory_space<semaphore_mem>>
    %286 = tpu.memref_squeeze %285 : memref<1x!tpu.dma_semaphore, #tpu.memory_space<semaphore_mem>> -> memref<!tpu.dma_semaphore, #tpu.memory_space<semaphore_mem>>
    tpu.wait_dma2 semaphore(%286 : memref<!tpu.dma_semaphore, #tpu.memory_space<semaphore_mem>>) src(%arg13 : memref<512x512xbf16, #tpu.memory_space<any>>) dst(%arg20 : memref<512x512xbf16, #tpu.memory_space<vmem>>)
    %287 = arith.truncf %284 : vector<8x128xf32> to vector<8x128xbf16>
    %c0_80 = arith.constant 0 : index
    %c0_81 = arith.constant 0 : index
    %288 = vector.load %arg6[%c0_80, %c0_81] : memref<128x512xbf16, #tpu.memory_space<vmem>>, vector<128x512xbf16>
    %cst_82 = arith.constant dense<0.000000e+00> : vector<8x512xf32>
    %289 = tpu.matmul %287, %288, %cst_82 {dimension_numbers = #tpu.dot_dimension_numbers<[1], [0], [0], [1], [0, 0, 1, 1], [], []>} : vector<8x128xbf16>, vector<128x512xbf16>, vector<8x512xf32> -> vector<8x512xf32>
    %c0_83 = arith.constant 0 : index
    %c0_84 = arith.constant 0 : index
    %290 = vector.load %arg2[%c0_83, %c0_84] : memref<8x512xbf16, #tpu.memory_space<vmem>>, vector<8x512xbf16>
    %c0_85 = arith.constant 0 : index
    %c0_86 = arith.constant 0 : index
    %291 = vector.load %arg20[%c0_85, %c0_86] : memref<512x512xbf16, #tpu.memory_space<vmem>>, vector<512x512xbf16>
    %cst_87 = arith.constant dense<0.000000e+00> : vector<8x512xf32>
    %292 = tpu.matmul %290, %291, %cst_87 {dimension_numbers = #tpu.dot_dimension_numbers<[1], [0], [0], [1], [0, 0, 1, 1], [], []>} : vector<8x512xbf16>, vector<512x512xbf16>, vector<8x512xf32> -> vector<8x512xf32>
    %293 = arith.addf %289, %292 : vector<8x512xf32>
    %c0_88 = arith.constant 0 : index
    %c0_89 = arith.constant 0 : index
    %294 = vector.load %arg7[%c0_88, %c0_89] : memref<1x512xf32, #tpu.memory_space<vmem>>, vector<1x512xf32>
    %295 = vector.broadcast %294 : vector<1x512xf32> to vector<8x512xf32>
    %296 = arith.addf %293, %295 : vector<8x512xf32>
    %cst_90 = arith.constant 0.000000e+00 : f32
    %297 = vector.broadcast %cst_90 : f32 to vector<8x512xf32>
    %298 = arith.maximumf %296, %297 : vector<8x512xf32>
    %c1_i32_91 = arith.constant 1 : i32
    %299 = tpu.memref_slice %arg27[%c1_i32_91] : memref<6x!tpu.dma_semaphore, #tpu.memory_space<semaphore_mem>> -> memref<1x!tpu.dma_semaphore, #tpu.memory_space<semaphore_mem>>
    %300 = tpu.memref_squeeze %299 : memref<1x!tpu.dma_semaphore, #tpu.memory_space<semaphore_mem>> -> memref<!tpu.dma_semaphore, #tpu.memory_space<semaphore_mem>>
    tpu.wait_dma2 semaphore(%300 : memref<!tpu.dma_semaphore, #tpu.memory_space<semaphore_mem>>) src(%arg14 : memref<512x512xbf16, #tpu.memory_space<any>>) dst(%arg21 : memref<512x512xbf16, #tpu.memory_space<vmem>>)
    %301 = arith.truncf %298 : vector<8x512xf32> to vector<8x512xbf16>
    %c0_92 = arith.constant 0 : index
    %c0_93 = arith.constant 0 : index
    %302 = vector.load %arg21[%c0_92, %c0_93] : memref<512x512xbf16, #tpu.memory_space<vmem>>, vector<512x512xbf16>
    %cst_94 = arith.constant dense<0.000000e+00> : vector<8x512xf32>
    %303 = tpu.matmul %301, %302, %cst_94 {dimension_numbers = #tpu.dot_dimension_numbers<[1], [0], [0], [1], [0, 0, 1, 1], [], []>} : vector<8x512xbf16>, vector<512x512xbf16>, vector<8x512xf32> -> vector<8x512xf32>
    %c0_95 = arith.constant 0 : index
    %c0_96 = arith.constant 0 : index
    %304 = vector.load %arg8[%c0_95, %c0_96] : memref<1x512xf32, #tpu.memory_space<vmem>>, vector<1x512xf32>
    %305 = vector.broadcast %304 : vector<1x512xf32> to vector<8x512xf32>
    %306 = arith.addf %303, %305 : vector<8x512xf32>
    %cst_97 = arith.constant 0.000000e+00 : f32
    %307 = vector.broadcast %cst_97 : f32 to vector<8x512xf32>
    %308 = arith.maximumf %306, %307 : vector<8x512xf32>
    %c2_i32_98 = arith.constant 2 : i32
    %309 = tpu.memref_slice %arg27[%c2_i32_98] : memref<6x!tpu.dma_semaphore, #tpu.memory_space<semaphore_mem>> -> memref<1x!tpu.dma_semaphore, #tpu.memory_space<semaphore_mem>>
    %310 = tpu.memref_squeeze %309 : memref<1x!tpu.dma_semaphore, #tpu.memory_space<semaphore_mem>> -> memref<!tpu.dma_semaphore, #tpu.memory_space<semaphore_mem>>
    tpu.wait_dma2 semaphore(%310 : memref<!tpu.dma_semaphore, #tpu.memory_space<semaphore_mem>>) src(%arg15 : memref<512x512xbf16, #tpu.memory_space<any>>) dst(%arg22 : memref<512x512xbf16, #tpu.memory_space<vmem>>)
    %311 = arith.truncf %308 : vector<8x512xf32> to vector<8x512xbf16>
    %c0_99 = arith.constant 0 : index
    %c0_100 = arith.constant 0 : index
    %312 = vector.load %arg22[%c0_99, %c0_100] : memref<512x512xbf16, #tpu.memory_space<vmem>>, vector<512x512xbf16>
    %cst_101 = arith.constant dense<0.000000e+00> : vector<8x512xf32>
    %313 = tpu.matmul %311, %312, %cst_101 {dimension_numbers = #tpu.dot_dimension_numbers<[1], [0], [0], [1], [0, 0, 1, 1], [], []>} : vector<8x512xbf16>, vector<512x512xbf16>, vector<8x512xf32> -> vector<8x512xf32>
    %c0_102 = arith.constant 0 : index
    %c0_103 = arith.constant 0 : index
    %314 = vector.load %arg9[%c0_102, %c0_103] : memref<1x512xf32, #tpu.memory_space<vmem>>, vector<1x512xf32>
    %315 = vector.broadcast %314 : vector<1x512xf32> to vector<8x512xf32>
    %316 = arith.addf %313, %315 : vector<8x512xf32>
    %cst_104 = arith.constant 0.000000e+00 : f32
    %317 = vector.broadcast %cst_104 : f32 to vector<8x512xf32>
    %318 = arith.maximumf %316, %317 : vector<8x512xf32>
    %c3_i32_105 = arith.constant 3 : i32
    %319 = tpu.memref_slice %arg27[%c3_i32_105] : memref<6x!tpu.dma_semaphore, #tpu.memory_space<semaphore_mem>> -> memref<1x!tpu.dma_semaphore, #tpu.memory_space<semaphore_mem>>
    %320 = tpu.memref_squeeze %319 : memref<1x!tpu.dma_semaphore, #tpu.memory_space<semaphore_mem>> -> memref<!tpu.dma_semaphore, #tpu.memory_space<semaphore_mem>>
    tpu.wait_dma2 semaphore(%320 : memref<!tpu.dma_semaphore, #tpu.memory_space<semaphore_mem>>) src(%arg16 : memref<512x512xbf16, #tpu.memory_space<any>>) dst(%arg23 : memref<512x512xbf16, #tpu.memory_space<vmem>>)
    %321 = arith.truncf %318 : vector<8x512xf32> to vector<8x512xbf16>
    %c0_106 = arith.constant 0 : index
    %c0_107 = arith.constant 0 : index
    %322 = vector.load %arg23[%c0_106, %c0_107] : memref<512x512xbf16, #tpu.memory_space<vmem>>, vector<512x512xbf16>
    %cst_108 = arith.constant dense<0.000000e+00> : vector<8x512xf32>
    %323 = tpu.matmul %321, %322, %cst_108 {dimension_numbers = #tpu.dot_dimension_numbers<[1], [0], [0], [1], [0, 0, 1, 1], [], []>} : vector<8x512xbf16>, vector<512x512xbf16>, vector<8x512xf32> -> vector<8x512xf32>
    %c0_109 = arith.constant 0 : index
    %c0_110 = arith.constant 0 : index
    %324 = vector.load %arg10[%c0_109, %c0_110] : memref<1x512xf32, #tpu.memory_space<vmem>>, vector<1x512xf32>
    %325 = vector.broadcast %324 : vector<1x512xf32> to vector<8x512xf32>
    %326 = arith.addf %323, %325 : vector<8x512xf32>
    %cst_111 = arith.constant 0.000000e+00 : f32
    %327 = vector.broadcast %cst_111 : f32 to vector<8x512xf32>
    %328 = arith.maximumf %326, %327 : vector<8x512xf32>
    %c4_i32_112 = arith.constant 4 : i32
    %329 = tpu.memref_slice %arg27[%c4_i32_112] : memref<6x!tpu.dma_semaphore, #tpu.memory_space<semaphore_mem>> -> memref<1x!tpu.dma_semaphore, #tpu.memory_space<semaphore_mem>>
    %330 = tpu.memref_squeeze %329 : memref<1x!tpu.dma_semaphore, #tpu.memory_space<semaphore_mem>> -> memref<!tpu.dma_semaphore, #tpu.memory_space<semaphore_mem>>
    tpu.wait_dma2 semaphore(%330 : memref<!tpu.dma_semaphore, #tpu.memory_space<semaphore_mem>>) src(%arg17 : memref<512x512xbf16, #tpu.memory_space<any>>) dst(%arg24 : memref<512x512xbf16, #tpu.memory_space<vmem>>)
    %331 = arith.truncf %328 : vector<8x512xf32> to vector<8x512xbf16>
    %c0_113 = arith.constant 0 : index
    %c0_114 = arith.constant 0 : index
    %332 = vector.load %arg24[%c0_113, %c0_114] : memref<512x512xbf16, #tpu.memory_space<vmem>>, vector<512x512xbf16>
    %cst_115 = arith.constant dense<0.000000e+00> : vector<8x512xf32>
    %333 = tpu.matmul %331, %332, %cst_115 {dimension_numbers = #tpu.dot_dimension_numbers<[1], [0], [0], [1], [0, 0, 1, 1], [], []>} : vector<8x512xbf16>, vector<512x512xbf16>, vector<8x512xf32> -> vector<8x512xf32>
    %c0_116 = arith.constant 0 : index
    %c0_117 = arith.constant 0 : index
    %334 = vector.load %arg11[%c0_116, %c0_117] : memref<1x512xf32, #tpu.memory_space<vmem>>, vector<1x512xf32>
    %335 = vector.broadcast %334 : vector<1x512xf32> to vector<8x512xf32>
    %336 = arith.addf %333, %335 : vector<8x512xf32>
    %cst_118 = arith.constant 0.000000e+00 : f32
    %337 = vector.broadcast %cst_118 : f32 to vector<8x512xf32>
    %338 = arith.maximumf %336, %337 : vector<8x512xf32>
    %c5_i32_119 = arith.constant 5 : i32
    %339 = tpu.memref_slice %arg27[%c5_i32_119] : memref<6x!tpu.dma_semaphore, #tpu.memory_space<semaphore_mem>> -> memref<1x!tpu.dma_semaphore, #tpu.memory_space<semaphore_mem>>
    %340 = tpu.memref_squeeze %339 : memref<1x!tpu.dma_semaphore, #tpu.memory_space<semaphore_mem>> -> memref<!tpu.dma_semaphore, #tpu.memory_space<semaphore_mem>>
    tpu.wait_dma2 semaphore(%340 : memref<!tpu.dma_semaphore, #tpu.memory_space<semaphore_mem>>) src(%arg18 : memref<512x128xbf16, #tpu.memory_space<any>>) dst(%arg25 : memref<512x128xbf16, #tpu.memory_space<vmem>>)
    %341 = arith.truncf %338 : vector<8x512xf32> to vector<8x512xbf16>
    %c0_120 = arith.constant 0 : index
    %c0_121 = arith.constant 0 : index
    %342 = vector.load %arg25[%c0_120, %c0_121] : memref<512x128xbf16, #tpu.memory_space<vmem>>, vector<512x128xbf16>
    %cst_122 = arith.constant dense<0.000000e+00> : vector<8x128xf32>
    %343 = tpu.matmul %341, %342, %cst_122 {dimension_numbers = #tpu.dot_dimension_numbers<[1], [0], [0], [1], [0, 0, 1, 1], [], []>} : vector<8x512xbf16>, vector<512x128xbf16>, vector<8x128xf32> -> vector<8x128xf32>
    %c0_123 = arith.constant 0 : index
    %c0_124 = arith.constant 0 : index
    %344 = vector.load %arg12[%c0_123, %c0_124] : memref<1x128xf32, #tpu.memory_space<vmem>>, vector<1x128xf32>
    %345 = vector.broadcast %344 : vector<1x128xf32> to vector<8x128xf32>
    %346 = arith.addf %343, %345 : vector<8x128xf32>
    %c0_125 = arith.constant 0 : index
    %c0_126 = arith.constant 0 : index
    %347 = vector.load %arg19[%c0_125, %c0_126] : memref<8x128xf32, #tpu.memory_space<vmem>>, vector<8x128xf32>
    tpu.vector_store %arg19[%c0_125, %c0_126], %346 {strides = array<i32>} : memref<8x128xf32, #tpu.memory_space<vmem>>, vector<8x128xf32>,
    return
  }
  func.func @transform_0(%arg0: i32) -> (i32, i32) {
    %c0_i32 = arith.constant 0 : i32
    %c0_i32_0 = arith.constant 0 : i32
    %c0_i32_1 = arith.constant 0 : i32
    return %c0_i32, %c0_i32_0 : i32, i32
  }
  func.func @transform_1(%arg0: i32) -> (i32, i32) {
    %c0_i32 = arith.constant 0 : i32
    %c0_i32_0 = arith.constant 0 : i32
    %c0_i32_1 = arith.constant 0 : i32
    return %c0_i32, %c0_i32_0 : i32, i32
  }
  func.func @transform_2(%arg0: i32) -> (i32, i32) {
    %c0_i32 = arith.constant 0 : i32
    %c0_i32_0 = arith.constant 0 : i32
    %c0_i32_1 = arith.constant 0 : i32
    return %c0_i32, %c0_i32_0 : i32, i32
  }
  func.func @transform_3(%arg0: i32) -> (i32, i32) {
    %c0_i32 = arith.constant 0 : i32
    %c0_i32_0 = arith.constant 0 : i32
    %c0_i32_1 = arith.constant 0 : i32
    return %c0_i32, %c0_i32_0 : i32, i32
  }
  func.func @transform_4(%arg0: i32) -> (i32, i32) {
    %c0_i32 = arith.constant 0 : i32
    %c0_i32_0 = arith.constant 0 : i32
    %c0_i32_1 = arith.constant 0 : i32
    return %c0_i32, %c0_i32_0 : i32, i32
  }
  func.func @transform_5(%arg0: i32) -> (i32, i32) {
    %c0_i32 = arith.constant 0 : i32
    %c0_i32_0 = arith.constant 0 : i32
    %c0_i32_1 = arith.constant 0 : i32
    return %c0_i32, %c0_i32_0 : i32, i32
  }
  func.func @transform_6(%arg0: i32) -> (i32, i32) {
    %c0_i32 = arith.constant 0 : i32
    %c0_i32_0 = arith.constant 0 : i32
    %c0_i32_1 = arith.constant 0 : i32
    return %c0_i32, %c0_i32_0 : i32, i32
  }
  func.func @transform_7(%arg0: i32) -> (i32, i32) {
    %c0_i32 = arith.constant 0 : i32
    %c0_i32_0 = arith.constant 0 : i32
    %c0_i32_1 = arith.constant 0 : i32
    return %c0_i32, %c0_i32_0 : i32, i32
  }
  func.func @transform_8(%arg0: i32) -> (i32, i32) {
    %c0_i32 = arith.constant 0 : i32
    %c0_i32_0 = arith.constant 0 : i32
    %c0_i32_1 = arith.constant 0 : i32
    return %c0_i32, %c0_i32_0 : i32, i32
  }
  func.func @transform_9(%arg0: i32) -> (i32, i32) {
    %c0_i32 = arith.constant 0 : i32
    %c0_i32_0 = arith.constant 0 : i32
    %c0_i32_1 = arith.constant 0 : i32
    return %c0_i32, %c0_i32_0 : i32, i32
  }
  func.func @transform_10(%arg0: i32) -> (i32, i32) {
    %c0_i32 = arith.constant 0 : i32
    %c0_i32_0 = arith.constant 0 : i32
    %c0_i32_1 = arith.constant 0 : i32
    return %c0_i32, %c0_i32_0 : i32, i32
  }
  func.func @transform_11(%arg0: i32) -> (i32, i32) {
    %c0_i32 = arith.constant 0 : i32
    %c0_i32_0 = arith.constant 0 : i32
    %c0_i32_1 = arith.constant 0 : i32
    return %c0_i32, %c0_i32_0 : i32, i32
  }
  func.func @transform_18(%arg0: i32) -> (i32, i32) {
    %c0_i32 = arith.constant 0 : i32
    %c0_i32_0 = arith.constant 0 : i32
    %c0_i32_1 = arith.constant 0 : i32
    return %c0_i32, %c0_i32_0 : i32, i32
  }
}

</mosaic_0001>

<bundles_post_ra>
// kernel: farmer_lstm_forward.1
= control target key start
LH: loop header
LB: loop body
LE: loop exit
PB: predicated region body
PF: predicated region fallthrough
CT: control target
= control target key end

     0   :  { %s5997_s0 = inlined_call_operand.vmem [shape: bf16[64,256], index: 0, kind: input, shape index: {}]   ;;  %s5998_s1 = inlined_call_operand.vmem [shape: bf16[8,512], index: 1, kind: input, shape index: {}]   ;;  %s5999_s2 = inlined_call_operand.hbm [shape: bf16[256,512], index: 2, kind: input, shape index: {}]   ;;  %s6000_s3 = inlined_call_operand.vmem [shape: bf16[128,512], index: 3, kind: input, shape index: {}]   ;;  %s6001_s4 = inlined_call_operand.vmem [shape: f32[1,512], index: 4, kind: input, shape index: {}]   ;;  %s6002_s5 = inlined_call_operand.hbm [shape: bf16[128,512], index: 5, kind: input, shape index: {}]   ;;  %s6003_s6 = inlined_call_operand.vmem [shape: f32[1,512], index: 6, kind: input, shape index: {}]   ;;  %s6004_s7 = inlined_call_operand.vmem [shape: f32[1,512], index: 7, kind: input, shape index: {}]   ;;  %s6005_s8 = inlined_call_operand.vmem [shape: f32[1,512], index: 8, kind: input, shape index: {}]   ;;  %s6006_s9 = inlined_call_operand.vmem [shape: f32[1,512], index: 9, kind: input, shape index: {}]   ;;  %s6007_s10 = inlined_call_operand.vmem [shape: f32[1,512], index: 10, kind: input, shape index: {}]   ;;  %s6008_s11 = inlined_call_operand.vmem [shape: f32[1,128], index: 11, kind: input, shape index: {}]   ;;  %s6009_s12 = inlined_call_operand.hbm [shape: bf16[512,512], index: 12, kind: input, shape index: {}]   ;;  %s6010_s13 = inlined_call_operand.hbm [shape: bf16[512,512], index: 13, kind: input, shape index: {}]   ;;  %s6011_s14 = inlined_call_operand.hbm [shape: bf16[512,512], index: 14, kind: input, shape index: {}]   ;;  %s6012_s15 = inlined_call_operand.hbm [shape: bf16[512,512], index: 15, kind: input, shape index: {}]   ;;  %s6013_s16 = inlined_call_operand.hbm [shape: bf16[512,512], index: 16, kind: input, shape index: {}]   ;;  %s6014_s17 = inlined_call_operand.hbm [shape: bf16[512,128], index: 17, kind: input, shape index: {}]   ;;  %s6015_s18 = inlined_call_operand.vmem [shape: f32[8,128], index: 18, kind: output, shape index: {}]  }
   0x1   :  { %6029 = sst [smem:[#allocation61_spill]] %s5997_s0 }
   0x2   :  { %6030 = sst [smem:[#allocation62_spill]] %s5998_s1 }
   0x3   :  { %6031 = sst [smem:[#allocation63_spill]] %s5999_s2 }
   0x4   :  { %6032 = sst [smem:[#allocation64_spill]] %s6015_s18 }
   0x5   :  { %23 = vsyncpa [#allocation11], 0 }
   0x6   :  { %24 = vsyncpa [#allocation13], 0  ;;  %s4873_s27 = smov [#allocation10]   ;;  %s6033_s0 = sld [smem:[#allocation63_spill]] }
   0x7   :  { %s34_s28 = sshll.u32 %s4873_s27, 4  ;;  %s35_s28 = int_to_ptr.vmem [resolvable:$true] %s34_s28 }
   0xc   :  { %s4791_s19 = scalar_lea.hbm %s6033_s0, 8192 }
   0xd   :  { %p4792_p0 = scmp.ne.s32.totalorder %s6033_s0, %s4791_s19  ;;  %p4795_p1 = scmp.lt.u32.totalorder %s4791_s19, %s6033_s0 }
   0xf   :  { %p4797_p2 = pnand %p4795_p1, %p4792_p0 }
  0x11   :  { %4800 = shalt.err (!%p4797_p2)
}
  0x12   :  { %s4801_s2 = scalar_lea.vmem %s35_s28, 8192  ;;  %p4806_p4 = scmp.lt.s32.totalorder %s35_s28, %s35_s28 }
  0x13   :  { %p4802_p3 = scmp.ne.s32.totalorder %s35_s28, %s4801_s2  ;;  %p4807_p5 = scmp.lt.s32.totalorder %s4801_s2, %s4801_s2 }
  0x15   :  { %p4808_p6 = por %p4807_p5, %p4806_p4 }
  0x17   :  { %p4809_p7 = pnand %p4808_p6, %p4802_p3 }
  0x19   :  { %4812 = shalt.err (!%p4809_p7)
}
  0x1a   :  { %s4874_s23 = smov 256   ;;  %s4875_s24 = smov 16  }
  0x1b   :  { %40 = dma.hbm_to_vmem [thread:$0]  %s6033_s0, 8192, %s35_s28, [#allocation11], %s4874_s23, %s4874_s23, %s4875_s24  }
  0x1c   :  { %s4876_s27 = smov [#allocation12]   ;;  %s4813_s1 = scalar_lea.hbm %s6002_s5, 4096 }
  0x1d   :  { %s50_s29 = sshll.u32 %s4876_s27, 4  ;;  %p4814_p8 = scmp.ne.s32.totalorder %s6002_s5, %s4813_s1  ;;  %s51_s29 = int_to_ptr.vmem [resolvable:$true] %s50_s29 }
  0x1e   :  { %p4817_p9 = scmp.lt.u32.totalorder %s4813_s1, %s6002_s5 }
  0x20   :  { %p4819_p10 = pnand %p4817_p9, %p4814_p8 }
  0x22   :  { %4822 = shalt.err (!%p4819_p10)
}
  0x23   :  { %s4823_s18 = scalar_lea.vmem %s51_s29, 4096  ;;  %p4828_p12 = scmp.lt.s32.totalorder %s51_s29, %s51_s29 }
  0x24   :  { %p4824_p11 = scmp.ne.s32.totalorder %s51_s29, %s4823_s18  ;;  %p4829_p13 = scmp.lt.s32.totalorder %s4823_s18, %s4823_s18 }
  0x26   :  { %p4830_p0 = por %p4829_p13, %p4828_p12 }
  0x28   :  { %p4831_p1 = pnand %p4830_p0, %p4824_p11 }
  0x2a   :  { %4834 = shalt.err (!%p4831_p1)
}
  0x2b   :  { %56 = dma.hbm_to_vmem [thread:$0]  %s6002_s5, 4096, %s51_s29, [#allocation13], %s4874_s23, %s4874_s23, %s4875_s24  }
  0x2c   :  { %4857 = dma.done.wait [#allocation11], 8192  }
  0x2d   :  { %4858 = vsyncadd [#allocation11], 4294959104 }
  0x2e   :  { %4859 = dma.done.wait [#allocation13], 4096  }
  0x2f   :  { %4860 = vsyncadd [#allocation13], 4294963200  ;;  %s80_s25 = sld [smem:[#allocation0]]   ;;  %s4877_s26 = smov 512  }
  0x30   :  { %92 = sst [smem:[#allocation15]] %s4877_s26  ;;  %s4878_s18 = smov 4  }
  0x31   :  { %94 = sst [smem:[#allocation15 + $0x1]] %s4877_s26  ;;  %s4879_s27 = smov 64  }
  0x32   :  { %96 = sst [smem:[#allocation15 + $0x2]] %s4878_s18  ;;  %s4880_s30 = smov 128  }
  0x33   :  { %98 = sst [smem:[#allocation15 + $0x3]] %s4879_s27  ;;  %s4881_s5 = smov 2  }
  0x34   :  { %100 = sst [smem:[#allocation15 + $0x4]] %s4880_s30  ;;  %s4882_s24 = smov [#allocation2]  }
  0x35   :  { %102 = sst [smem:[#allocation15 + $0x5]] %s4881_s5  ;;  %s88_s29 = sshll.u32 %s4882_s24, 4  ;;  %s89_s29 = int_to_ptr.vmem [resolvable:$true] %s88_s29 }
  0x36   :  { %s4124_s19 = sshll.u32 %s80_s25, 26  ;;  %104 = sst [smem:[#allocation15 + $0x6]] %s4874_s23 }
  0x37   :  { %s5029_s1 = sadd.s32 134217728, %s4124_s19  ;;  %106 = sst [smem:[#allocation15 + $0x7]] %s4879_s27 }
  0x38   :  { %108 = sst [smem:[#allocation15 + $0x8]] %s4878_s18  ;;  %s4883_s20 = smov [#allocation9]  }
  0x39   :  { %s4884_s21 = smov [#allocation14]   ;;  %s4885_s28 = smov [#allocation3]  }
  0x3a   :  { %110 = dma.general %s6009_s12, 16384, %s89_s29, %s4883_s20, %s4884_s21, [#allocation15], %s5029_s1, 0  }
  0x3b   :  { %127 = sst [smem:[#allocation17]] %s4877_s26  ;;  %s123_s0 = sshll.u32 %s4885_s28, 4  ;;  %s124_s0 = int_to_ptr.vmem [resolvable:$true] %s123_s0 }
  0x3c   :  { %129 = sst [smem:[#allocation17 + $0x1]] %s4877_s26  ;;  %s4886_s12 = smov [#allocation9 + $0x1]  }
  0x3d   :  { %131 = sst [smem:[#allocation17 + $0x2]] %s4878_s18  ;;  %s4887_s25 = smov [#allocation16]  }
  0x3e   :  { %133 = sst [smem:[#allocation17 + $0x3]] %s4879_s27  ;;  %s4888_s19 = smov [#allocation4]  }
  0x3f   :  { %135 = sst [smem:[#allocation17 + $0x4]] %s4880_s30  ;;  %s158_s20 = sshll.u32 %s4888_s19, 4  ;;  %s159_s20 = int_to_ptr.vmem [resolvable:$true] %s158_s20 }
  0x40   :  { %137 = sst [smem:[#allocation17 + $0x5]] %s4881_s5  ;;  %s4890_s21 = smov [#allocation18]  }
  0x41   :  { %139 = sst [smem:[#allocation17 + $0x6]] %s4874_s23  ;;  %s4891_s28 = smov [#allocation5]  }
  0x42   :  { %141 = sst [smem:[#allocation17 + $0x7]] %s4879_s27  ;;  %s4894_s29 = smov [#allocation6]  }
  0x43   :  { %143 = sst [smem:[#allocation17 + $0x8]] %s4878_s18  ;;  %s228_s19 = sshll.u32 %s4894_s29, 4  ;;  %s229_s19 = int_to_ptr.vmem [resolvable:$true] %s228_s19 }
  0x44   :  { %145 = dma.general %s6010_s13, 16384, %s124_s0, %s4886_s12, %s4887_s25, [#allocation17], %s5029_s1, 0  }
  0x45   :  { %162 = sst [smem:[#allocation19]] %s4877_s26  ;;  %s4889_s13 = smov [#allocation9 + $0x2]  }
  0x46   :  { %164 = sst [smem:[#allocation19 + $0x1]] %s4877_s26  ;;  %s193_s0 = sshll.u32 %s4891_s28, 4  ;;  %s194_s0 = int_to_ptr.vmem [resolvable:$true] %s193_s0 }
  0x47   :  { %166 = sst [smem:[#allocation19 + $0x2]] %s4878_s18  ;;  %s4893_s12 = smov [#allocation20]  }
  0x48   :  { %168 = sst [smem:[#allocation19 + $0x3]] %s4879_s27 }
  0x49   :  { %170 = sst [smem:[#allocation19 + $0x4]] %s4880_s30 }
  0x4a   :  { %172 = sst [smem:[#allocation19 + $0x5]] %s4881_s5 }
  0x4b   :  { %174 = sst [smem:[#allocation19 + $0x6]] %s4874_s23 }
  0x4c   :  { %176 = sst [smem:[#allocation19 + $0x7]] %s4879_s27 }
  0x4d   :  { %178 = sst [smem:[#allocation19 + $0x8]] %s4878_s18 }
  0x4e   :  { %180 = dma.general %s6011_s14, 16384, %s159_s20, %s4889_s13, %s4890_s21, [#allocation19], %s5029_s1, 0  }
  0x4f   :  { %197 = sst [smem:[#allocation21]] %s4877_s26  ;;  %s4892_s14 = smov [#allocation9 + $0x3]  }
  0x50   :  { %199 = sst [smem:[#allocation21 + $0x1]] %s4877_s26  ;;  %s4896_s20 = smov [#allocation22]  }
  0x51   :  { %201 = sst [smem:[#allocation21 + $0x2]] %s4878_s18 }
  0x52   :  { %203 = sst [smem:[#allocation21 + $0x3]] %s4879_s27 }
  0x53   :  { %205 = sst [smem:[#allocation21 + $0x4]] %s4880_s30 }
  0x54   :  { %207 = sst [smem:[#allocation21 + $0x5]] %s4881_s5 }
  0x55   :  { %209 = sst [smem:[#allocation21 + $0x6]] %s4874_s23 }
  0x56   :  { %211 = sst [smem:[#allocation21 + $0x7]] %s4879_s27 }
  0x57   :  { %213 = sst [smem:[#allocation21 + $0x8]] %s4878_s18 }
  0x58   :  { %215 = dma.general %s6012_s15, 16384, %s194_s0, %s4892_s14, %s4893_s12, [#allocation21], %s5029_s1, 0  }
  0x59   :  { %232 = sst [smem:[#allocation23]] %s4877_s26  ;;  %s4895_s15 = smov [#allocation9 + $0x4]  }
  0x5a   :  { %234 = sst [smem:[#allocation23 + $0x1]] %s4877_s26 }
  0x5b   :  { %236 = sst [smem:[#allocation23 + $0x2]] %s4878_s18 }
  0x5c   :  { %238 = sst [smem:[#allocation23 + $0x3]] %s4879_s27 }
  0x5d   :  { %240 = sst [smem:[#allocation23 + $0x4]] %s4880_s30 }
  0x5e   :  { %242 = sst [smem:[#allocation23 + $0x5]] %s4881_s5 }
  0x5f   :  { %244 = sst [smem:[#allocation23 + $0x6]] %s4874_s23 }
  0x60   :  { %246 = sst [smem:[#allocation23 + $0x7]] %s4879_s27 }
  0x61   :  { %248 = sst [smem:[#allocation23 + $0x8]] %s4878_s18 }
  0x62   :  { %250 = dma.general %s6013_s16, 16384, %s229_s19, %s4895_s15, %s4896_s20, [#allocation23], %s5029_s1, 0  }
  0x63   :  { %v4423_v0 = vld [vmem:[#allocation10 + $0x4] ss:$16 sps:$4 sm:$0xff]   ;;  %v4425_v1 = vld [vmem:[#allocation10 + $0xc] ss:$16 sps:$4 sm:$0xff]   ;;  %v4427_v2 = vld [vmem:[#allocation10] ss:$16 sps:$4 sm:$0xff]  }
  0x64   :  { %717 = vmatprep.subr.bf16.mxu0 %v4423_v0  ;;  %v4428_v3 = vld [vmem:[#allocation10 + $0x8] ss:$16 sps:$4 sm:$0xff]   ;;  %790 = vmatprep.subr.bf16.mxu1 %v4425_v1  ;;  %v4429_v4 = vld [vmem:[#allocation10 + $0x24] ss:$16 sps:$4 sm:$0xff]   ;;  %v4431_v5 = vld [vmem:[#allocation10 + $0x2c] ss:$16 sps:$4 sm:$0xff]  }
  0x65   :  { %718 = vmatpush1.bf16.msra.mxu0 %v4427_v2  ;;  %791 = vmatpush1.bf16.msra.mxu1 %v4428_v3  ;;  %v4433_v6 = vld [vmem:[#allocation10 + $0x20] ss:$16 sps:$4 sm:$0xff]   ;;  %v4434_v7 = vld [vmem:[#allocation10 + $0x28] ss:$16 sps:$4 sm:$0xff]   ;;  %v4435_v8 = vld [vmem:[#allocation10 + $0x44] ss:$16 sps:$4 sm:$0xff]  }
  0x66   :  { %719 = vmatprep.subr.bf16.mxu0 %v4429_v4  ;;  %792 = vmatprep.subr.bf16.mxu1 %v4431_v5  ;;  %v4437_v9 = vld [vmem:[#allocation10 + $0x4c] ss:$16 sps:$4 sm:$0xff]   ;;  %v4439_v10 = vld [vmem:[#allocation10 + $0x40] ss:$16 sps:$4 sm:$0xff]   ;;  %v4440_v11 = vld [vmem:[#allocation10 + $0x48] ss:$16 sps:$4 sm:$0xff]  }
  0x67   :  { %v4441_v12 = vld [vmem:[#allocation10 + $0x64] ss:$16 sps:$4 sm:$0xff]   ;;  %v4443_v13 = vld [vmem:[#allocation10 + $0x6c] ss:$16 sps:$4 sm:$0xff]   ;;  %v4445_v14 = vld [vmem:[#allocation10 + $0x60] ss:$16 sps:$4 sm:$0xff]  }
  0x68   :  { %v4446_v15 = vld [vmem:[#allocation10 + $0x68] ss:$16 sps:$4 sm:$0xff]   ;;  %v4447_v16 = vld [vmem:[#allocation10 + $0x84] ss:$16 sps:$4 sm:$0xff]   ;;  %v4449_v17 = vld [vmem:[#allocation10 + $0x8c] ss:$16 sps:$4 sm:$0xff]  }
  0x69   :  { %720 = vmatpush1.bf16.msra.mxu0 %v4433_v6  ;;  %793 = vmatpush1.bf16.msra.mxu1 %v4434_v7  ;;  %v4451_v18 = vld [vmem:[#allocation10 + $0x80] ss:$16 sps:$4 sm:$0xff]   ;;  %v4452_v19 = vld [vmem:[#allocation10 + $0x88] ss:$16 sps:$4 sm:$0xff]   ;;  %v4453_v20 = vld [vmem:[#allocation10 + $0xa4] ss:$16 sps:$4 sm:$0xff]  }
  0x6a   :  { %721 = vmatprep.subr.bf16.mxu0 %v4435_v8  ;;  %794 = vmatprep.subr.bf16.mxu1 %v4437_v9  ;;  %v4455_v21 = vld [vmem:[#allocation10 + $0xac] ss:$16 sps:$4 sm:$0xff]   ;;  %v4457_v22 = vld [vmem:[#allocation10 + $0xa0] ss:$16 sps:$4 sm:$0xff]   ;;  %v4458_v23 = vld [vmem:[#allocation10 + $0xa8] ss:$16 sps:$4 sm:$0xff]  }
  0x6b   :  { %v4459_v24 = vld [vmem:[#allocation10 + $0xc4] ss:$16 sps:$4 sm:$0xff]   ;;  %v4461_v25 = vld [vmem:[#allocation10 + $0xcc] ss:$16 sps:$4 sm:$0xff]   ;;  %v4463_v26 = vld [vmem:[#allocation10 + $0xc0] ss:$16 sps:$4 sm:$0xff]  }
  0x6c   :  { %v4464_v27 = vld [vmem:[#allocation10 + $0xc8] ss:$16 sps:$4 sm:$0xff]   ;;  %v4465_v28 = vld [vmem:[#allocation10 + $0xe4] ss:$16 sps:$4 sm:$0xff]   ;;  %v4467_v29 = vld [vmem:[#allocation10 + $0xec] ss:$16 sps:$4 sm:$0xff]  }
  0x6d   :  { %722 = vmatpush1.bf16.msra.mxu0 %v4439_v10  ;;  %795 = vmatpush1.bf16.msra.mxu1 %v4440_v11  ;;  %v4469_v30 = vld [vmem:[#allocation10 + $0xe0] ss:$16 sps:$4 sm:$0xff]   ;;  %v4470_v31 = vld [vmem:[#allocation10 + $0xe8] ss:$16 sps:$4 sm:$0xff]   ;;  %v4471_v32 = vld [vmem:[#allocation10 + $0x104] ss:$16 sps:$4 sm:$0xff]  }
  0x6e   :  { %723 = vmatprep.subr.bf16.mxu0 %v4441_v12  ;;  %796 = vmatprep.subr.bf16.mxu1 %v4443_v13  ;;  %v4473_v33 = vld [vmem:[#allocation10 + $0x10c] ss:$16 sps:$4 sm:$0xff]   ;;  %v4475_v34 = vld [vmem:[#allocation10 + $0x100] ss:$16 sps:$4 sm:$0xff]   ;;  %v4476_v35 = vld [vmem:[#allocation10 + $0x108] ss:$16 sps:$4 sm:$0xff]  }
  0x6f   :  { %v4477_v36 = vld [vmem:[#allocation10 + $0x124] ss:$16 sps:$4 sm:$0xff]   ;;  %v4479_v37 = vld [vmem:[#allocation10 + $0x12c] ss:$16 sps:$4 sm:$0xff]   ;;  %v4481_v38 = vld [vmem:[#allocation10 + $0x120] ss:$16 sps:$4 sm:$0xff]  }
  0x70   :  { %v4482_v39 = vld [vmem:[#allocation10 + $0x128] ss:$16 sps:$4 sm:$0xff]   ;;  %v4483_v40 = vld [vmem:[#allocation10 + $0x144] ss:$16 sps:$4 sm:$0xff]   ;;  %v4485_v41 = vld [vmem:[#allocation10 + $0x14c] ss:$16 sps:$4 sm:$0xff]  }
  0x71   :  { %724 = vmatpush1.bf16.msra.mxu0 %v4445_v14  ;;  %797 = vmatpush1.bf16.msra.mxu1 %v4446_v15  ;;  %v4487_v42 = vld [vmem:[#allocation10 + $0x140] ss:$16 sps:$4 sm:$0xff]   ;;  %v4488_v43 = vld [vmem:[#allocation10 + $0x148] ss:$16 sps:$4 sm:$0xff]   ;;  %v4489_v44 = vld [vmem:[#allocation10 + $0x164] ss:$16 sps:$4 sm:$0xff]  }
  0x72   :  { %725 = vmatprep.subr.bf16.mxu0 %v4447_v16  ;;  %798 = vmatprep.subr.bf16.mxu1 %v4449_v17  ;;  %v4491_v45 = vld [vmem:[#allocation10 + $0x16c] ss:$16 sps:$4 sm:$0xff]   ;;  %v4493_v46 = vld [vmem:[#allocation10 + $0x160] ss:$16 sps:$4 sm:$0xff]   ;;  %v4494_v47 = vld [vmem:[#allocation10 + $0x168] ss:$16 sps:$4 sm:$0xff]  }
  0x73   :  { %s6034_s18 = sld [smem:[#allocation61_spill]]  ;;  %v4495_v49 = vld [vmem:[#allocation10 + $0x184] ss:$16 sps:$4 sm:$0xff]   ;;  %v4497_v50 = vld [vmem:[#allocation10 + $0x18c] ss:$16 sps:$4 sm:$0xff]   ;;  %s4835_s19 = scalar_lea.hbm %s6014_s17, 4096 }
  0x74   :  { %v4499_v51 = vld [vmem:[#allocation10 + $0x180] ss:$16 sps:$4 sm:$0xff]   ;;  %v4500_v52 = vld [vmem:[#allocation10 + $0x188] ss:$16 sps:$4 sm:$0xff]   ;;  %v4501_v53 = vld [vmem:[#allocation10 + $0x1a4] ss:$16 sps:$4 sm:$0xff]   ;;  %p4836_p2 = scmp.ne.s32.totalorder %s6014_s17, %s4835_s19  ;;  %p4839_p3 = scmp.lt.u32.totalorder %s4835_s19, %s6014_s17 }
  0x75   :  { %726 = vmatpush1.bf16.msra.mxu0 %v4451_v18  ;;  %799 = vmatpush1.bf16.msra.mxu1 %v4452_v19  ;;  %v4503_v54 = vld [vmem:[#allocation10 + $0x1ac] ss:$16 sps:$4 sm:$0xff]   ;;  %v4505_v55 = vld [vmem:[#allocation10 + $0x1a0] ss:$16 sps:$4 sm:$0xff]   ;;  %v4506_v56 = vld [vmem:[#allocation10 + $0x1a8] ss:$16 sps:$4 sm:$0xff]  }
  0x76   :  { %727 = vmatprep.subr.bf16.mxu0 %v4453_v20  ;;  %800 = vmatprep.subr.bf16.mxu1 %v4455_v21  ;;  %v4507_v57 = vld [vmem:[#allocation10 + $0x1c4] ss:$16 sps:$4 sm:$0xff]   ;;  %v4509_v58 = vld [vmem:[#allocation10 + $0x1cc] ss:$16 sps:$4 sm:$0xff]   ;;  %v4511_v59 = vld [vmem:[#allocation10 + $0x1c0] ss:$16 sps:$4 sm:$0xff]   ;;  %p4841_p4 = pnand %p4839_p3, %p4836_p2 }
  0x77   :  { %v4512_v60 = vld [vmem:[#allocation10 + $0x1c8] ss:$16 sps:$4 sm:$0xff]   ;;  %v4513_v61 = vld [vmem:[#allocation10 + $0x1e4] ss:$16 sps:$4 sm:$0xff]   ;;  %v4515_v62 = vld [vmem:[#allocation10 + $0x1ec] ss:$16 sps:$4 sm:$0xff]  }
  0x78   :  { %v4517_v63 = vld [vmem:[#allocation10 + $0x1e0] ss:$16 sps:$4 sm:$0xff]   ;;  %v4518_v0 = vld [vmem:[#allocation10 + $0x1e8] ss:$16 sps:$4 sm:$0xff]   ;;  %v5095_v1 = vld [vmem:[%s6000_s3 + $0x4] ss:$16 sps:$4 sm:$0xff]  }
  0x79   :  { %728 = vmatpush1.bf16.msra.mxu0 %v4457_v22  ;;  %801 = vmatpush1.bf16.msra.mxu1 %v4458_v23  ;;  %v4521_v48 = vld [vmem:[%s6034_s18 + $0x4] ss:$8 sps:$4 sm:$0xff]   ;;  %v4519_v3 = vld [vmem:[%s6034_s18] ss:$8 sps:$4 sm:$0xff]   ;;  %v4534_v8 = vld [vmem:[%s6034_s18 + $0x14] ss:$8 sps:$4 sm:$0xff]  }
  0x7a   :  { %729 = vmatprep.subr.bf16.mxu0 %v4459_v24  ;;  %802 = vmatprep.subr.bf16.mxu1 %v4461_v25  ;;  %v5100_v2 = vld [vmem:[%s6000_s3 + $0xc] ss:$16 sps:$4 sm:$0xff]   ;;  %v5108_v4 = vld [vmem:[%s6000_s3] ss:$16 sps:$4 sm:$0xff]   ;;  %v5113_v5 = vld [vmem:[%s6000_s3 + $0x8] ss:$16 sps:$4 sm:$0xff]  }
  0x7b   :  { %749 = vmatprep.mubr.bf16.mxu0 %v4521_v48  ;;  %822 = vmatprep.mubr.bf16.mxu1 %v4521_v48  ;;  %v5118_v6 = vld [vmem:[%s6000_s3 + $0x24] ss:$16 sps:$4 sm:$0xff]   ;;  %v5125_v7 = vld [vmem:[%s6000_s3 + $0x2c] ss:$16 sps:$4 sm:$0xff]   ;;  %v5135_v9 = vld [vmem:[%s6000_s3 + $0x20] ss:$16 sps:$4 sm:$0xff]  }
  0x7c   :  { %v5140_v10 = vld [vmem:[%s6000_s3 + $0x28] ss:$16 sps:$4 sm:$0xff]   ;;  %v5147_v11 = vld [vmem:[%s6000_s3 + $0x44] ss:$16 sps:$4 sm:$0xff]   ;;  %v5152_v12 = vld [vmem:[%s6000_s3 + $0x4c] ss:$16 sps:$4 sm:$0xff]  }
  0x7d   :  { %730 = vmatpush1.bf16.msra.mxu0 %v4463_v26  ;;  %803 = vmatpush1.bf16.msra.mxu1 %v4464_v27  ;;  %v4536_v13 = vld [vmem:[%s6034_s18 + $0x10] ss:$8 sps:$4 sm:$0xff]   ;;  %v5174_v16 = vld [vmem:[%s6000_s3 + $0x64] ss:$16 sps:$4 sm:$0xff]   ;;  %v5179_v17 = vld [vmem:[%s6000_s3 + $0x6c] ss:$16 sps:$4 sm:$0xff]  }
  0x7e   :  { %731 = vmatprep.subr.bf16.mxu0 %v4465_v28  ;;  %804 = vmatprep.subr.bf16.mxu1 %v4467_v29  ;;  %v5162_v14 = vld [vmem:[%s6000_s3 + $0x40] ss:$16 sps:$4 sm:$0xff]   ;;  %v5167_v15 = vld [vmem:[%s6000_s3 + $0x48] ss:$16 sps:$4 sm:$0xff]   ;;  %v4549_v18 = vld [vmem:[%s6034_s18 + $0x24] ss:$8 sps:$4 sm:$0xff]  }
  0x7f   :  { %v5189_v19 = vld [vmem:[%s6000_s3 + $0x60] ss:$16 sps:$4 sm:$0xff]   ;;  %v5194_v20 = vld [vmem:[%s6000_s3 + $0x68] ss:$16 sps:$4 sm:$0xff]   ;;  %v5201_v21 = vld [vmem:[%s6000_s3 + $0x84] ss:$16 sps:$4 sm:$0xff]  }
  0x80   :  { %v5206_v22 = vld [vmem:[%s6000_s3 + $0x8c] ss:$16 sps:$4 sm:$0xff]   ;;  %v4551_v23 = vld [vmem:[%s6034_s18 + $0x20] ss:$8 sps:$4 sm:$0xff]   ;;  %v5228_v26 = vld [vmem:[%s6000_s3 + $0xa4] ss:$16 sps:$4 sm:$0xff]  }
  0x81   :  { %732 = vmatpush1.bf16.msra.mxu0 %v4469_v30  ;;  %805 = vmatpush1.bf16.msra.mxu1 %v4470_v31  ;;  %v5216_v24 = vld [vmem:[%s6000_s3 + $0x80] ss:$16 sps:$4 sm:$0xff]   ;;  %v5221_v25 = vld [vmem:[%s6000_s3 + $0x88] ss:$16 sps:$4 sm:$0xff]   ;;  %v5233_v27 = vld [vmem:[%s6000_s3 + $0xac] ss:$16 sps:$4 sm:$0xff]  }
  0x82   :  { %733 = vmatprep.subr.bf16.mxu0 %v4471_v32  ;;  %806 = vmatprep.subr.bf16.mxu1 %v4473_v33  ;;  %v4564_v28 = vld [vmem:[%s6034_s18 + $0x34] ss:$8 sps:$4 sm:$0xff]   ;;  %v5243_v29 = vld [vmem:[%s6000_s3 + $0xa0] ss:$16 sps:$4 sm:$0xff]   ;;  %v5248_v30 = vld [vmem:[%s6000_s3 + $0xa8] ss:$16 sps:$4 sm:$0xff]  }
  0x83   :  { %v5255_v31 = vld [vmem:[%s6000_s3 + $0xc4] ss:$16 sps:$4 sm:$0xff]   ;;  %v5260_v32 = vld [vmem:[%s6000_s3 + $0xcc] ss:$16 sps:$4 sm:$0xff]   ;;  %v4566_v33 = vld [vmem:[%s6034_s18 + $0x30] ss:$8 sps:$4 sm:$0xff]  }
  0x85   :  { %734 = vmatpush1.bf16.msra.mxu0 %v4475_v34  ;;  %807 = vmatpush1.bf16.msra.mxu1 %v4476_v35  ;;  %v5270_v34 = vld [vmem:[%s6000_s3 + $0xc0] ss:$16 sps:$4 sm:$0xff]   ;;  %v5275_v35 = vld [vmem:[%s6000_s3 + $0xc8] ss:$16 sps:$4 sm:$0xff]  }
  0x86   :  { %735 = vmatprep.subr.bf16.mxu0 %v4477_v36  ;;  %808 = vmatprep.subr.bf16.mxu1 %v4479_v37  ;;  %v5282_v36 = vld [vmem:[%s6000_s3 + $0xe4] ss:$16 sps:$4 sm:$0xff]   ;;  %v5287_v37 = vld [vmem:[%s6000_s3 + $0xec] ss:$16 sps:$4 sm:$0xff]  }
  0x89   :  { %736 = vmatpush1.bf16.msra.mxu0 %v4481_v38  ;;  %809 = vmatpush1.bf16.msra.mxu1 %v4482_v39  ;;  %v5294_v38 = vld [vmem:[%s6000_s3 + $0xe0] ss:$16 sps:$4 sm:$0xff]   ;;  %v5299_v39 = vld [vmem:[%s6000_s3 + $0xe8] ss:$16 sps:$4 sm:$0xff]  }
  0x8a   :  { %737 = vmatprep.subr.bf16.mxu0 %v4483_v40  ;;  %810 = vmatprep.subr.bf16.mxu1 %v4485_v41  ;;  %v6019_v40 = vmov 0   ;;  %v337_v41 = vlaneseq }
  0x8d   :  { %738 = vmatpush1.bf16.msra.mxu0 %v4487_v42  ;;  %811 = vmatpush1.bf16.msra.mxu1 %v4488_v43  ;;  %v338_v42 = vshrl.u32 %v337_v41, 7 }
  0x8e   :  { %739 = vmatprep.subr.bf16.mxu0 %v4489_v44  ;;  %812 = vmatprep.subr.bf16.mxu1 %v4491_v45 }
  0x8f   :  { %v5345_v43 = vsub.s32 2, %v338_v42  ;;  %v5347_v44 = vsub.s32 3, %v338_v42  ;;  %v5349_v45 = vsub.s32 0, %v338_v42 }
  0x91   :  { %740 = vmatpush1.bf16.msra.mxu0 %v4493_v46  ;;  %813 = vmatpush1.bf16.msra.mxu1 %v4494_v47  ;;  %6035 = vst [vmem:[#allocation36_spill] sm:$0xff] %v5345_v43  ;;  %6036 = vst [vmem:[#allocation37_spill] sm:$0xff] %v5347_v44  ;;  %v335_v46 = vld [vmem:[%s6001_s4] sm:$0xf]  ;;  %v5354_v47 = vsub.s32 1, %v338_v42 }
  0x92   :  { %741 = vmatprep.subr.bf16.mxu0 %v4495_v49  ;;  %814 = vmatprep.subr.bf16.mxu1 %v4497_v50  ;;  %6037 = vst [vmem:[#allocation38_spill] sm:$0xff] %v5349_v45  ;;  %v5357_v48 = vrot.slane %v335_v46, %v5345_v43 }
  0x93   :  { %6038 = vst [vmem:[#allocation39_spill] sm:$0xff] %v5354_v47 }
  0x95   :  { %742 = vmatpush1.bf16.msra.mxu0 %v4499_v51  ;;  %815 = vmatpush1.bf16.msra.mxu1 %v4500_v52  ;;  %v5364_v51 = vrot.slane %v335_v46, %v5347_v44  ;;  %v340_v52 = vrot.slane %v335_v46, %v5349_v45 }
  0x96   :  { %743 = vmatprep.subr.bf16.mxu0 %v4501_v53  ;;  %816 = vmatprep.subr.bf16.mxu1 %v4503_v54 }
  0x99   :  { %744 = vmatpush1.bf16.msra.mxu0 %v4505_v55  ;;  %817 = vmatpush1.bf16.msra.mxu1 %v4506_v56  ;;  %v344_v55 = vrot.slane %v335_v46, %v5354_v47 }
  0x9a   :  { %745 = vmatprep.subr.bf16.mxu0 %v4507_v57  ;;  %818 = vmatprep.subr.bf16.mxu1 %v4509_v58 }
  0x9d   :  { %746 = vmatpush1.bf16.msra.mxu0 %v4511_v59  ;;  %819 = vmatpush1.bf16.msra.mxu1 %v4512_v60 }
  0x9e   :  { %747 = vmatprep.subr.bf16.mxu0 %v4513_v61  ;;  %820 = vmatprep.subr.bf16.mxu1 %v4515_v62 }
  0xa1   :  { %748 = vmatpush1.bf16.msra.mxu0 %v4517_v63  ;;  %821 = vmatpush1.bf16.msra.mxu1 %v4518_v0 }
  0xa2   :  { %1094 = vmatprep.subr.bf16.mxu0 %v5095_v1  ;;  %1135 = vmatprep.subr.bf16.mxu1 %v5100_v2 }
  0xa4   :  { %750 = vmatmul.mubr.bf16.vlgmr.msra.gmra.mrb[0].mxu0 %v4519_v3  ;;  %823 = vmatmul.mubr.bf16.vlgmr.msra.gmra.mrb[0].mxu1 %v4519_v3 }
  0xa5   :  { %1095 = vmatpush1.bf16.msra.mxu0 %v5108_v4  ;;  %1136 = vmatpush1.bf16.msra.mxu1 %v5113_v5 }
  0xa6   :  { %1096 = vmatprep.subr.bf16.mxu0 %v5118_v6  ;;  %1137 = vmatprep.subr.bf16.mxu1 %v5125_v7 }
  0xa7   :  { %759 = vmatprep.mubr.bf16.mxu0 %v4534_v8  ;;  %832 = vmatprep.mubr.bf16.mxu1 %v4534_v8 }
  0xa9   :  { %1097 = vmatpush1.bf16.msra.mxu0 %v5135_v9  ;;  %1138 = vmatpush1.bf16.msra.mxu1 %v5140_v10 }
  0xaa   :  { %1098 = vmatprep.subr.bf16.mxu0 %v5147_v11  ;;  %1139 = vmatprep.subr.bf16.mxu1 %v5152_v12 }
  0xac   :  { %760 = vmatmul.mubr.bf16.gmra.mrb[4].mxu0 %v4536_v13  ;;  %833 = vmatmul.mubr.bf16.gmra.mrb[4].mxu1 %v4536_v13 }
  0xad   :  { %1099 = vmatpush1.bf16.msra.mxu0 %v5162_v14  ;;  %1140 = vmatpush1.bf16.msra.mxu1 %v5167_v15 }
  0xae   :  { %1100 = vmatprep.subr.bf16.mxu0 %v5174_v16  ;;  %1141 = vmatprep.subr.bf16.mxu1 %v5179_v17 }
  0xaf   :  { %769 = vmatprep.mubr.bf16.mxu0 %v4549_v18  ;;  %842 = vmatprep.mubr.bf16.mxu1 %v4549_v18 }
  0xb1   :  { %1101 = vmatpush1.bf16.msra.mxu0 %v5189_v19  ;;  %1142 = vmatpush1.bf16.msra.mxu1 %v5194_v20 }
  0xb2   :  { %1102 = vmatprep.subr.bf16.mxu0 %v5201_v21  ;;  %1143 = vmatprep.subr.bf16.mxu1 %v5206_v22 }
  0xb4   :  { %770 = vmatmul.mubr.bf16.gmra.mrb[8].mxu0 %v4551_v23  ;;  %843 = vmatmul.mubr.bf16.gmra.mrb[8].mxu1 %v4551_v23 }
  0xb5   :  { %1103 = vmatpush1.bf16.msra.mxu0 %v5216_v24  ;;  %1144 = vmatpush1.bf16.msra.mxu1 %v5221_v25 }
  0xb6   :  { %1104 = vmatprep.subr.bf16.mxu0 %v5228_v26  ;;  %1145 = vmatprep.subr.bf16.mxu1 %v5233_v27 }
  0xb7   :  { %779 = vmatprep.mubr.bf16.mxu0 %v4564_v28  ;;  %852 = vmatprep.mubr.bf16.mxu1 %v4564_v28 }
  0xb9   :  { %1105 = vmatpush1.bf16.msra.mxu0 %v5243_v29  ;;  %1146 = vmatpush1.bf16.msra.mxu1 %v5248_v30 }
  0xba   :  { %1106 = vmatprep.subr.bf16.mxu0 %v5255_v31  ;;  %1147 = vmatprep.subr.bf16.mxu1 %v5260_v32 }
  0xbc   :  { %780 = vmatmul.mubr.bf16.gmra.mrb[12].mxu0 %v4566_v33  ;;  %853 = vmatmul.mubr.bf16.gmra.mrb[12].mxu1 %v4566_v33 }
  0xbd   :  { %1107 = vmatpush1.bf16.msra.mxu0 %v5270_v34  ;;  %1148 = vmatpush1.bf16.msra.mxu1 %v5275_v35 }
  0xbe   :  { %1108 = vmatprep.subr.bf16.mxu0 %v5282_v36  ;;  %1149 = vmatprep.subr.bf16.mxu1 %v5287_v37 }
  0xbf   :  { %1126 = vmatprep.mubr.bf16.mxu0 %v6019_v40  ;;  %1167 = vmatprep.mubr.bf16.mxu1 %v6019_v40 }
  0xc1   :  { %1109 = vmatpush1.bf16.msra.mxu0 %v5294_v38  ;;  %1150 = vmatpush1.bf16.msra.mxu1 %v5299_v39 }
  0xc2   :  { %1212 = vmatprep.subr.bf16.mxu0 %v5095_v1  ;;  %1253 = vmatprep.subr.bf16.mxu1 %v5100_v2 }
  0xc4   :  { %1127 = vmatmul.mubr.bf16.vlgmr.msra.gmra.mrb[16].mxu0 %v6019_v40  ;;  %1168 = vmatmul.mubr.bf16.vlgmr.msra.gmra.mrb[16].mxu1 %v6019_v40 }
  0xc5   :  { %1213 = vmatpush1.bf16.msra.mxu0 %v5108_v4  ;;  %1254 = vmatpush1.bf16.msra.mxu1 %v5113_v5 }
  0xc6   :  { %1214 = vmatprep.subr.bf16.mxu0 %v5118_v6  ;;  %1255 = vmatprep.subr.bf16.mxu1 %v5125_v7 }
  0xc7   :  { %1244 = vmatprep.mubr.bf16.mxu0 %v6019_v40  ;;  %1285 = vmatprep.mubr.bf16.mxu1 %v6019_v40 }
  0xc9   :  { %1215 = vmatpush1.bf16.msra.mxu0 %v5135_v9  ;;  %1256 = vmatpush1.bf16.msra.mxu1 %v5140_v10 }
  0xca   :  { %1216 = vmatprep.subr.bf16.mxu0 %v5147_v11  ;;  %1257 = vmatprep.subr.bf16.mxu1 %v5152_v12 }
  0xcd   :  { %1217 = vmatpush1.bf16.msra.mxu0 %v5162_v14  ;;  %1258 = vmatpush1.bf16.msra.mxu1 %v5167_v15 }
  0xce   :  { %1218 = vmatprep.subr.bf16.mxu0 %v5174_v16  ;;  %1259 = vmatprep.subr.bf16.mxu1 %v5179_v17 }
  0xd1   :  { %1219 = vmatpush1.bf16.msra.mxu0 %v5189_v19  ;;  %1260 = vmatpush1.bf16.msra.mxu1 %v5194_v20 }
  0xd2   :  { %1220 = vmatprep.subr.bf16.mxu0 %v5201_v21  ;;  %1261 = vmatprep.subr.bf16.mxu1 %v5206_v22 }
  0xd5   :  { %1221 = vmatpush1.bf16.msra.mxu0 %v5216_v24  ;;  %1262 = vmatpush1.bf16.msra.mxu1 %v5221_v25 }
  0xd6   :  { %1222 = vmatprep.subr.bf16.mxu0 %v5228_v26  ;;  %1263 = vmatprep.subr.bf16.mxu1 %v5233_v27 }
  0xd9   :  { %1223 = vmatpush1.bf16.msra.mxu0 %v5243_v29  ;;  %1264 = vmatpush1.bf16.msra.mxu1 %v5248_v30 }
  0xda   :  { %1224 = vmatprep.subr.bf16.mxu0 %v5255_v31  ;;  %1265 = vmatprep.subr.bf16.mxu1 %v5260_v32 }
  0xdd   :  { %1225 = vmatpush1.bf16.msra.mxu0 %v5270_v34  ;;  %1266 = vmatpush1.bf16.msra.mxu1 %v5275_v35 }
  0xde   :  { %1226 = vmatprep.subr.bf16.mxu0 %v5282_v36  ;;  %1267 = vmatprep.subr.bf16.mxu1 %v5287_v37 }
  0xe1   :  { %1227 = vmatpush1.bf16.msra.mxu0 %v5294_v38  ;;  %1268 = vmatpush1.bf16.msra.mxu1 %v5299_v39 }
  0xe2   :  { %1330 = vmatprep.subr.bf16.mxu0 %v5095_v1  ;;  %1371 = vmatprep.subr.bf16.mxu1 %v5100_v2 }
 0x177   :  { %v5359_v49 = vpop.f32.mrb[0].mxu0  ;;  %v5361_v50 = vpop.f32.mrb[0].mxu1 }
 0x178   :  { %v753_v53 = vpop.f32.mrb[1].mxu0  ;;  %v826_v54 = vpop.f32.mrb[1].mxu1 }
 0x179   :  { %v755_v56 = vpop.f32.mrb[2].mxu0  ;;  %v828_v57 = vpop.f32.mrb[2].mxu1 }
 0x17a   :  { %v5368_v58 = vadd.f32 %v755_v56, %v340_v52  ;;  %v757_v59 = vpop.f32.mrb[3].mxu0  ;;  %v5371_v60 = vadd.f32 %v828_v57, %v5357_v48  ;;  %v830_v61 = vpop.f32.mrb[3].mxu1 }
 0x17b   :  { %v5373_v62 = vadd.f32 %v757_v59, %v344_v55  ;;  %v5376_v63 = vadd.f32 %v830_v61, %v5364_v51 }
 0x17f   :  { %v761_v0 = vpop.f32.mrb[4].mxu0  ;;  %v834_v3 = vpop.f32.mrb[4].mxu1 }
 0x180   :  { %v5378_v8 = vadd.f32 %v761_v0, %v340_v52  ;;  %v763_v13 = vpop.f32.mrb[5].mxu0  ;;  %v5381_v18 = vadd.f32 %v834_v3, %v5357_v48  ;;  %v836_v23 = vpop.f32.mrb[5].mxu1 }
 0x181   :  { %v5383_v28 = vadd.f32 %v763_v13, %v344_v55  ;;  %v765_v33 = vpop.f32.mrb[6].mxu0  ;;  %v5386_v41 = vadd.f32 %v836_v23, %v5364_v51  ;;  %v838_v42 = vpop.f32.mrb[6].mxu1 }
 0x182   :  { %v5388_v46 = vadd.f32 %v765_v33, %v340_v52  ;;  %v767_v56 = vpop.f32.mrb[7].mxu0  ;;  %v5391_v57 = vadd.f32 %v838_v42, %v5357_v48  ;;  %v840_v59 = vpop.f32.mrb[7].mxu1 }
 0x183   :  { %6039 = vst [vmem:[#allocation40_spill] sm:$0xff] %v5386_v41  ;;  %v5393_v61 = vadd.f32 %v767_v56, %v344_v55  ;;  %v5396_v0 = vadd.f32 %v840_v59, %v5364_v51 }
 0x184   :  { %6040 = vst [vmem:[#allocation41_spill] sm:$0xff] %v5388_v46  ;;  %6041 = vst [vmem:[#allocation42_spill] sm:$0xff] %v5391_v57 }
 0x185   :  { %6042 = vst [vmem:[#allocation43_spill] sm:$0xff] %v5393_v61  ;;  %6043 = vst [vmem:[#allocation44_spill] sm:$0xff] %v5396_v0 }
 0x187   :  { %v771_v3 = vpop.f32.mrb[8].mxu0  ;;  %v844_v13 = vpop.f32.mrb[8].mxu1 }
 0x188   :  { %v5398_v40 = vadd.f32 %v771_v3, %v340_v52  ;;  %v773_v44 = vpop.f32.mrb[9].mxu0  ;;  %v5401_v23 = vadd.f32 %v844_v13, %v5357_v48  ;;  %v846_v33 = vpop.f32.mrb[9].mxu1 }
 0x189   :  { %v5403_v47 = vadd.f32 %v773_v44, %v344_v55  ;;  %v775_v43 = vpop.f32.mrb[10].mxu0  ;;  %v5406_v42 = vadd.f32 %v846_v33, %v5364_v51  ;;  %v848_v56 = vpop.f32.mrb[10].mxu1 }
 0x18a   :  { %6044 = vst [vmem:[#allocation45_spill] sm:$0xff] %v5398_v40  ;;  %6045 = vst [vmem:[#allocation46_spill] sm:$0xff] %v5401_v23  ;;  %v5408_v45 = vadd.f32 %v775_v43, %v340_v52  ;;  %v777_v59 = vpop.f32.mrb[11].mxu0  ;;  %v5411_v0 = vadd.f32 %v848_v56, %v5357_v48  ;;  %v850_v3 = vpop.f32.mrb[11].mxu1 }
 0x18b   :  { %6046 = vst [vmem:[#allocation47_spill] sm:$0xff] %v5403_v47  ;;  %6047 = vst [vmem:[#allocation48_spill] sm:$0xff] %v5406_v42  ;;  %v5413_v40 = vadd.f32 %v777_v59, %v344_v55  ;;  %v5416_v13 = vadd.f32 %v850_v3, %v5364_v51 }
 0x18c   :  { %6048 = vst [vmem:[#allocation49_spill] sm:$0xff] %v5408_v45  ;;  %6049 = vst [vmem:[#allocation50_spill] sm:$0xff] %v5411_v0 }
 0x18d   :  { %6050 = vst [vmem:[#allocation51_spill] sm:$0xff] %v5413_v40  ;;  %6051 = vst [vmem:[#allocation52_spill] sm:$0xff] %v5416_v13 }
 0x18f   :  { %v781_v23 = vpop.f32.mrb[12].mxu0  ;;  %v854_v44 = vpop.f32.mrb[12].mxu1 }
 0x190   :  { %v5418_v47 = vadd.f32 %v781_v23, %v340_v52  ;;  %v783_v61 = vpop.f32.mrb[13].mxu0  ;;  %v5421_v33 = vadd.f32 %v854_v44, %v5357_v48  ;;  %v856_v43 = vpop.f32.mrb[13].mxu1 }
 0x191   :  { %v5423_v45 = vadd.f32 %v783_v61, %v344_v55  ;;  %v785_v42 = vpop.f32.mrb[14].mxu0  ;;  %v5426_v56 = vadd.f32 %v856_v43, %v5364_v51  ;;  %v858_v59 = vpop.f32.mrb[14].mxu1  ;;  %v752_v61 = vadd.f32 %v5359_v49, %v340_v52  ;;  %v754_v43 = vadd.f32 %v753_v53, %v344_v55 }
 0x192   :  { %6052 = vst [vmem:[#allocation53_spill] sm:$0xff] %v5418_v47  ;;  %6053 = vst [vmem:[#allocation54_spill] sm:$0xff] %v5421_v33  ;;  %v5428_v40 = vadd.f32 %v785_v42, %v340_v52  ;;  %v787_v3 = vpop.f32.mrb[15].mxu0  ;;  %v5431_v13 = vadd.f32 %v858_v59, %v5357_v48  ;;  %v860_v23 = vpop.f32.mrb[15].mxu1 }
 0x193   :  { %6054 = vst [vmem:[#allocation55_spill] sm:$0xff] %v5423_v45  ;;  %6055 = vst [vmem:[#allocation56_spill] sm:$0xff] %v5426_v56  ;;  %v5433_v47 = vadd.f32 %v787_v3, %v344_v55  ;;  %v5436_v44 = vadd.f32 %v860_v23, %v5364_v51  ;;  %v825_v45 = vadd.f32 %v5361_v50, %v5357_v48 }
 0x194   :  { %6056 = vst [vmem:[#allocation57_spill] sm:$0xff] %v5428_v40  ;;  %6057 = vst [vmem:[#allocation58_spill] sm:$0xff] %v5431_v13  ;;  %v827_v56 = vadd.f32 %v826_v54, %v5364_v51 }
 0x195   :  { %6058 = vst [vmem:[#allocation59_spill] sm:$0xff] %v5433_v47  ;;  %6059 = vst [vmem:[#allocation60_spill] sm:$0xff] %v5436_v44 }
 0x197   :  { %v1128_v42 = vpop.f32.mrb[16].mxu0  ;;  %v1169_v40 = vpop.f32.mrb[16].mxu1 }
 0x198   :  { %v1176_v33 = vadd.f32 %v1128_v42, %v752_v61  ;;  %v1178_v0 = vadd.f32 %v1169_v40, %v825_v45  ;;  %v1130_v59 = vpop.f32.mrb[17].mxu0  ;;  %v1171_v13 = vpop.f32.mrb[17].mxu1 }
 0x199   :  { %v1177_v57 = vadd.f32 %v1130_v59, %v754_v43  ;;  %v1179_v3 = vadd.f32 %v1171_v13, %v827_v56  ;;  %v1132_v47 = vpop.f32.mrb[18].mxu0  ;;  %v1173_v46 = vpop.f32.mrb[18].mxu1 }
 0x19a   :  { %v4238_v23 = vmul.f32 -1.442695, %v1176_v33  ;;  %v1133_v44 = vpop.f32.mrb[19].mxu0  ;;  %v1174_v41 = vpop.f32.mrb[19].mxu1 }
 0x19b   :  { %v4239_v49 = vmul.f32 -1.442695, %v1177_v57  ;;  %v4240_v48 = vmul.f32 -1.442695, %v1179_v3 }
 0x19c   :  { %4579 = vpow2.f32 %v4238_v23 }
 0x19d   :  { %4581 = vpow2.f32 %v4239_v49 }
 0x19e   :  { %4583 = vpow2.f32 %v4240_v48 }
 0x19f   :  { %4585 = vtanh.f32 %v1178_v0  ;;  %v6060_v0 = vmov 0  }
 0x1a6   :  { %v4580_v50 = vpop.eup %4579 }
 0x1a7   :  { %v4582_v52 = vpop.eup %4581  ;;  %v1183_v51 = vadd.f32 1.0, %v4580_v50 }
 0x1a8   :  { %v1189_v53 = vadd.f32 1.0, %v4582_v52  ;;  %v4584_v40 = vpop.eup %4583 }
 0x1a9   :  { %4587 = vrcp.f32 %v1183_v51  ;;  %v4586_v45 = vpop.eup %4585  ;;  %v1196_v46 = vadd.f32 1.0, %v4584_v40 }
 0x1aa   :  { %4589 = vrcp.f32 %v1189_v53 }
 0x1ab   :  { %4591 = vrcp.f32 %v1196_v46 }
 0x1b3   :  { %v4588_v54 = vpop.eup %4587 }
 0x1b4   :  { %v4590_v47 = vpop.eup %4589  ;;  %v1200_v55 = vmul.f32 %v4588_v54, %v4586_v45 }
 0x1b5   :  { %v1199_v13 = vmul.f32 0.0, %v4590_v47  ;;  %v4592_v57 = vpop.eup %4591 }
 0x1b7   :  { %v5442_v41 = vadd.f32 %v1200_v55, %v1199_v13 }
 0x1b9   :  { %4593 = vtanh.f32 %v5442_v41 }
 0x1c3   :  { %v4594_v33 = vpop.eup %4593 }
 0x1c4   :  { %v1203_v56 = vmul.f32 %v4594_v33, %v4592_v57 }
 0x1c6   :  { %v1211_v44 = vpack.c.bf16 %v1203_v56, %v1203_v56 }
 0x1c8   :  { %1245 = vmatmul.mubr.bf16.vlgmr.msra.gmra.mrb[20].mxu0 %v1211_v44  ;;  %1286 = vmatmul.mubr.bf16.vlgmr.msra.gmra.mrb[20].mxu1 %v1211_v44 }
 0x1c9   :  { %1331 = vmatpush1.bf16.msra.mxu0 %v5108_v4  ;;  %1372 = vmatpush1.bf16.msra.mxu1 %v5113_v5 }
 0x1ca   :  { %1332 = vmatprep.subr.bf16.mxu0 %v5118_v6  ;;  %1373 = vmatprep.subr.bf16.mxu1 %v5125_v7 }
 0x1cb   :  { %1362 = vmatprep.mubr.bf16.mxu0 %v6060_v0  ;;  %1403 = vmatprep.mubr.bf16.mxu1 %v6060_v0 }
 0x1cd   :  { %1333 = vmatpush1.bf16.msra.mxu0 %v5135_v9  ;;  %1374 = vmatpush1.bf16.msra.mxu1 %v5140_v10 }
 0x1ce   :  { %1334 = vmatprep.subr.bf16.mxu0 %v5147_v11  ;;  %1375 = vmatprep.subr.bf16.mxu1 %v5152_v12 }
 0x1d1   :  { %1335 = vmatpush1.bf16.msra.mxu0 %v5162_v14  ;;  %1376 = vmatpush1.bf16.msra.mxu1 %v5167_v15 }
 0x1d2   :  { %1336 = vmatprep.subr.bf16.mxu0 %v5174_v16  ;;  %1377 = vmatprep.subr.bf16.mxu1 %v5179_v17 }
 0x1d5   :  { %1337 = vmatpush1.bf16.msra.mxu0 %v5189_v19  ;;  %1378 = vmatpush1.bf16.msra.mxu1 %v5194_v20 }
 0x1d6   :  { %1338 = vmatprep.subr.bf16.mxu0 %v5201_v21  ;;  %1379 = vmatprep.subr.bf16.mxu1 %v5206_v22 }
 0x1d9   :  { %1339 = vmatpush1.bf16.msra.mxu0 %v5216_v24  ;;  %1380 = vmatpush1.bf16.msra.mxu1 %v5221_v25 }
 0x1da   :  { %1340 = vmatprep.subr.bf16.mxu0 %v5228_v26  ;;  %1381 = vmatprep.subr.bf16.mxu1 %v5233_v27 }
 0x1dd   :  { %1341 = vmatpush1.bf16.msra.mxu0 %v5243_v29  ;;  %1382 = vmatpush1.bf16.msra.mxu1 %v5248_v30 }
 0x1de   :  { %1342 = vmatprep.subr.bf16.mxu0 %v5255_v31  ;;  %1383 = vmatprep.subr.bf16.mxu1 %v5260_v32 }
 0x1e1   :  { %1343 = vmatpush1.bf16.msra.mxu0 %v5270_v34  ;;  %1384 = vmatpush1.bf16.msra.mxu1 %v5275_v35 }
 0x1e2   :  { %1344 = vmatprep.subr.bf16.mxu0 %v5282_v36  ;;  %1385 = vmatprep.subr.bf16.mxu1 %v5287_v37 }
 0x1e5   :  { %1345 = vmatpush1.bf16.msra.mxu0 %v5294_v38  ;;  %1386 = vmatpush1.bf16.msra.mxu1 %v5299_v39 }
 0x1e6   :  { %1448 = vmatprep.subr.bf16.mxu0 %v5095_v1  ;;  %1489 = vmatprep.subr.bf16.mxu1 %v5100_v2 }
 0x29b   :  { %v1246_v61 = vpop.f32.mrb[20].mxu0  ;;  %v1287_v43 = vpop.f32.mrb[20].mxu1 }
 0x29c   :  { %v1294_v42 = vadd.f32 %v1246_v61, %v5368_v58  ;;  %v1296_v59 = vadd.f32 %v1287_v43, %v5371_v60  ;;  %v1248_v3 = vpop.f32.mrb[21].mxu0  ;;  %v1289_v23 = vpop.f32.mrb[21].mxu1 }
 0x29d   :  { %v1295_v49 = vadd.f32 %v1248_v3, %v5373_v62  ;;  %v1297_v48 = vadd.f32 %v1289_v23, %v5376_v63  ;;  %v1250_v50 = vpop.f32.mrb[22].mxu0  ;;  %v1291_v52 = vpop.f32.mrb[22].mxu1 }
 0x29e   :  { %v4241_v51 = vmul.f32 -1.442695, %v1294_v42  ;;  %v1251_v53 = vpop.f32.mrb[23].mxu0  ;;  %v1292_v40 = vpop.f32.mrb[23].mxu1 }
 0x29f   :  { %v4242_v45 = vmul.f32 -1.442695, %v1295_v49  ;;  %v4243_v54 = vmul.f32 -1.442695, %v1297_v48 }
 0x2a0   :  { %4595 = vpow2.f32 %v4241_v51  ;;  %v6061_v51 = vld [vmem:[#allocation40_spill] sm:$0xff] }
 0x2a1   :  { %4597 = vpow2.f32 %v4242_v45 }
 0x2a2   :  { %4599 = vpow2.f32 %v4243_v54 }
 0x2a3   :  { %4601 = vtanh.f32 %v1296_v59 }
 0x2aa   :  { %v4596_v47 = vpop.eup %4595 }
 0x2ab   :  { %v4598_v55 = vpop.eup %4597  ;;  %v1301_v58 = vadd.f32 1.0, %v4596_v47 }
 0x2ac   :  { %v1307_v60 = vadd.f32 1.0, %v4598_v55  ;;  %v4600_v62 = vpop.eup %4599 }
 0x2ad   :  { %4603 = vrcp.f32 %v1301_v58  ;;  %v4602_v46 = vpop.eup %4601  ;;  %v1314_v33 = vadd.f32 1.0, %v4600_v62 }
 0x2ae   :  { %4605 = vrcp.f32 %v1307_v60 }
 0x2af   :  { %4607 = vrcp.f32 %v1314_v33 }
 0x2b7   :  { %v4604_v63 = vpop.eup %4603 }
 0x2b8   :  { %v4606_v13 = vpop.eup %4605  ;;  %v1318_v57 = vmul.f32 %v4604_v63, %v4602_v46 }
 0x2b9   :  { %v1317_v56 = vmul.f32 %v4606_v13, %v5442_v41  ;;  %v4608_v61 = vpop.eup %4607 }
 0x2bb   :  { %v5484_v44 = vadd.f32 %v1318_v57, %v1317_v56 }
 0x2bd   :  { %4609 = vtanh.f32 %v5484_v44 }
 0x2c7   :  { %v4610_v43 = vpop.eup %4609 }
 0x2c8   :  { %v1321_v42 = vmul.f32 %v4610_v43, %v4608_v61 }
 0x2ca   :  { %v1329_v59 = vpack.c.bf16 %v1321_v42, %v1321_v42 }
 0x2cc   :  { %1363 = vmatmul.mubr.bf16.vlgmr.msra.gmra.mrb[24].mxu0 %v1329_v59  ;;  %1404 = vmatmul.mubr.bf16.vlgmr.msra.gmra.mrb[24].mxu1 %v1329_v59 }
 0x2cd   :  { %1449 = vmatpush1.bf16.msra.mxu0 %v5108_v4  ;;  %1490 = vmatpush1.bf16.msra.mxu1 %v5113_v5 }
 0x2ce   :  { %1450 = vmatprep.subr.bf16.mxu0 %v5118_v6  ;;  %1491 = vmatprep.subr.bf16.mxu1 %v5125_v7 }
 0x2cf   :  { %1480 = vmatprep.mubr.bf16.mxu0 %v6060_v0  ;;  %1521 = vmatprep.mubr.bf16.mxu1 %v6060_v0 }
 0x2d1   :  { %1451 = vmatpush1.bf16.msra.mxu0 %v5135_v9  ;;  %1492 = vmatpush1.bf16.msra.mxu1 %v5140_v10 }
 0x2d2   :  { %1452 = vmatprep.subr.bf16.mxu0 %v5147_v11  ;;  %1493 = vmatprep.subr.bf16.mxu1 %v5152_v12 }
 0x2d5   :  { %1453 = vmatpush1.bf16.msra.mxu0 %v5162_v14  ;;  %1494 = vmatpush1.bf16.msra.mxu1 %v5167_v15 }
 0x2d6   :  { %1454 = vmatprep.subr.bf16.mxu0 %v5174_v16  ;;  %1495 = vmatprep.subr.bf16.mxu1 %v5179_v17 }
 0x2d9   :  { %1455 = vmatpush1.bf16.msra.mxu0 %v5189_v19  ;;  %1496 = vmatpush1.bf16.msra.mxu1 %v5194_v20 }
 0x2da   :  { %1456 = vmatprep.subr.bf16.mxu0 %v5201_v21  ;;  %1497 = vmatprep.subr.bf16.mxu1 %v5206_v22 }
 0x2dd   :  { %1457 = vmatpush1.bf16.msra.mxu0 %v5216_v24  ;;  %1498 = vmatpush1.bf16.msra.mxu1 %v5221_v25 }
 0x2de   :  { %1458 = vmatprep.subr.bf16.mxu0 %v5228_v26  ;;  %1499 = vmatprep.subr.bf16.mxu1 %v5233_v27 }
 0x2e1   :  { %1459 = vmatpush1.bf16.msra.mxu0 %v5243_v29  ;;  %1500 = vmatpush1.bf16.msra.mxu1 %v5248_v30 }
 0x2e2   :  { %1460 = vmatprep.subr.bf16.mxu0 %v5255_v31  ;;  %1501 = vmatprep.subr.bf16.mxu1 %v5260_v32 }
 0x2e5   :  { %1461 = vmatpush1.bf16.msra.mxu0 %v5270_v34  ;;  %1502 = vmatpush1.bf16.msra.mxu1 %v5275_v35 }
 0x2e6   :  { %1462 = vmatprep.subr.bf16.mxu0 %v5282_v36  ;;  %1503 = vmatprep.subr.bf16.mxu1 %v5287_v37 }
 0x2e9   :  { %1463 = vmatpush1.bf16.msra.mxu0 %v5294_v38  ;;  %1504 = vmatpush1.bf16.msra.mxu1 %v5299_v39 }
 0x2ea   :  { %1566 = vmatprep.subr.bf16.mxu0 %v5095_v1  ;;  %1607 = vmatprep.subr.bf16.mxu1 %v5100_v2 }
 0x39f   :  { %v1364_v41 = vpop.f32.mrb[24].mxu0  ;;  %v1405_v3 = vpop.f32.mrb[24].mxu1 }
 0x3a0   :  { %v1412_v23 = vadd.f32 %v1364_v41, %v5378_v8  ;;  %v1414_v49 = vadd.f32 %v1405_v3, %v5381_v18  ;;  %v1366_v48 = vpop.f32.mrb[25].mxu0  ;;  %v1407_v50 = vpop.f32.mrb[25].mxu1 }
 0x3a1   :  { %v1413_v52 = vadd.f32 %v1366_v48, %v5383_v28  ;;  %v1415_v53 = vadd.f32 %v1407_v50, %v6061_v51  ;;  %v1368_v40 = vpop.f32.mrb[26].mxu0  ;;  %v1409_v45 = vpop.f32.mrb[26].mxu1  ;;  %v6063_v50 = vld [vmem:[#allocation42_spill] sm:$0xff] }
 0x3a2   :  { %v4244_v54 = vmul.f32 -1.442695, %v1412_v23  ;;  %v1369_v47 = vpop.f32.mrb[27].mxu0  ;;  %v1410_v55 = vpop.f32.mrb[27].mxu1  ;;  %v6064_v40 = vld [vmem:[#allocation43_spill] sm:$0xff] }
 0x3a3   :  { %v4245_v58 = vmul.f32 -1.442695, %v1413_v52  ;;  %v4246_v60 = vmul.f32 -1.442695, %v1415_v53 }
 0x3a4   :  { %4611 = vpow2.f32 %v4244_v54  ;;  %v6065_v54 = vld [vmem:[#allocation44_spill] sm:$0xff] }
 0x3a5   :  { %4613 = vpow2.f32 %v4245_v58 }
 0x3a6   :  { %4615 = vpow2.f32 %v4246_v60 }
 0x3a7   :  { %4617 = vtanh.f32 %v1414_v49  ;;  %v6062_v49 = vld [vmem:[#allocation41_spill] sm:$0xff] }
 0x3ae   :  { %v4612_v62 = vpop.eup %4611 }
 0x3af   :  { %v4614_v46 = vpop.eup %4613  ;;  %v1419_v8 = vadd.f32 1.0, %v4612_v62 }
 0x3b0   :  { %v1425_v18 = vadd.f32 1.0, %v4614_v46  ;;  %v4616_v28 = vpop.eup %4615 }
 0x3b1   :  { %4619 = vrcp.f32 %v1419_v8  ;;  %v4618_v63 = vpop.eup %4617  ;;  %v1432_v56 = vadd.f32 1.0, %v4616_v28 }
 0x3b2   :  { %4621 = vrcp.f32 %v1425_v18 }
 0x3b3   :  { %4623 = vrcp.f32 %v1432_v56 }
 0x3bb   :  { %v4620_v13 = vpop.eup %4619 }
 0x3bc   :  { %v4622_v57 = vpop.eup %4621  ;;  %v1436_v33 = vmul.f32 %v4620_v13, %v4618_v63 }
 0x3bd   :  { %v1435_v61 = vmul.f32 %v4622_v57, %v5484_v44  ;;  %v4624_v42 = vpop.eup %4623 }
 0x3bf   :  { %v5526_v43 = vadd.f32 %v1436_v33, %v1435_v61 }
 0x3c1   :  { %4625 = vtanh.f32 %v5526_v43 }
 0x3cb   :  { %v4626_v59 = vpop.eup %4625 }
 0x3cc   :  { %v1439_v41 = vmul.f32 %v4626_v59, %v4624_v42 }
 0x3ce   :  { %v1447_v3 = vpack.c.bf16 %v1439_v41, %v1439_v41 }
 0x3d0   :  { %1481 = vmatmul.mubr.bf16.vlgmr.msra.gmra.mrb[28].mxu0 %v1447_v3  ;;  %1522 = vmatmul.mubr.bf16.vlgmr.msra.gmra.mrb[28].mxu1 %v1447_v3 }
 0x3d1   :  { %1567 = vmatpush1.bf16.msra.mxu0 %v5108_v4  ;;  %1608 = vmatpush1.bf16.msra.mxu1 %v5113_v5 }
 0x3d2   :  { %1568 = vmatprep.subr.bf16.mxu0 %v5118_v6  ;;  %1609 = vmatprep.subr.bf16.mxu1 %v5125_v7 }
 0x3d3   :  { %1598 = vmatprep.mubr.bf16.mxu0 %v6060_v0  ;;  %1639 = vmatprep.mubr.bf16.mxu1 %v6060_v0 }
 0x3d5   :  { %1569 = vmatpush1.bf16.msra.mxu0 %v5135_v9  ;;  %1610 = vmatpush1.bf16.msra.mxu1 %v5140_v10 }
 0x3d6   :  { %1570 = vmatprep.subr.bf16.mxu0 %v5147_v11  ;;  %1611 = vmatprep.subr.bf16.mxu1 %v5152_v12 }
 0x3d9   :  { %1571 = vmatpush1.bf16.msra.mxu0 %v5162_v14  ;;  %1612 = vmatpush1.bf16.msra.mxu1 %v5167_v15 }
 0x3da   :  { %1572 = vmatprep.subr.bf16.mxu0 %v5174_v16  ;;  %1613 = vmatprep.subr.bf16.mxu1 %v5179_v17 }
 0x3dd   :  { %1573 = vmatpush1.bf16.msra.mxu0 %v5189_v19  ;;  %1614 = vmatpush1.bf16.msra.mxu1 %v5194_v20 }
 0x3de   :  { %1574 = vmatprep.subr.bf16.mxu0 %v5201_v21  ;;  %1615 = vmatprep.subr.bf16.mxu1 %v5206_v22 }
 0x3e1   :  { %1575 = vmatpush1.bf16.msra.mxu0 %v5216_v24  ;;  %1616 = vmatpush1.bf16.msra.mxu1 %v5221_v25 }
 0x3e2   :  { %1576 = vmatprep.subr.bf16.mxu0 %v5228_v26  ;;  %1617 = vmatprep.subr.bf16.mxu1 %v5233_v27 }
 0x3e5   :  { %1577 = vmatpush1.bf16.msra.mxu0 %v5243_v29  ;;  %1618 = vmatpush1.bf16.msra.mxu1 %v5248_v30 }
 0x3e6   :  { %1578 = vmatprep.subr.bf16.mxu0 %v5255_v31  ;;  %1619 = vmatprep.subr.bf16.mxu1 %v5260_v32 }
 0x3e9   :  { %1579 = vmatpush1.bf16.msra.mxu0 %v5270_v34  ;;  %1620 = vmatpush1.bf16.msra.mxu1 %v5275_v35 }
 0x3ea   :  { %1580 = vmatprep.subr.bf16.mxu0 %v5282_v36  ;;  %1621 = vmatprep.subr.bf16.mxu1 %v5287_v37 }
 0x3ed   :  { %1581 = vmatpush1.bf16.msra.mxu0 %v5294_v38  ;;  %1622 = vmatpush1.bf16.msra.mxu1 %v5299_v39 }
 0x3ee   :  { %1684 = vmatprep.subr.bf16.mxu0 %v5095_v1  ;;  %1725 = vmatprep.subr.bf16.mxu1 %v5100_v2 }
 0x4a3   :  { %v1482_v44 = vpop.f32.mrb[28].mxu0  ;;  %v1523_v23 = vpop.f32.mrb[28].mxu1 }
 0x4a4   :  { %v1530_v48 = vadd.f32 %v1482_v44, %v6062_v49  ;;  %v1532_v52 = vadd.f32 %v1523_v23, %v6063_v50  ;;  %v1484_v51 = vpop.f32.mrb[29].mxu0  ;;  %v1525_v53 = vpop.f32.mrb[29].mxu1 }
 0x4a5   :  { %v1531_v45 = vadd.f32 %v1484_v51, %v6064_v40  ;;  %v1533_v47 = vadd.f32 %v1525_v53, %v6065_v54  ;;  %v1486_v55 = vpop.f32.mrb[30].mxu0  ;;  %v1527_v58 = vpop.f32.mrb[30].mxu1 }
 0x4a6   :  { %v4247_v60 = vmul.f32 -1.442695, %v1530_v48  ;;  %v1487_v62 = vpop.f32.mrb[31].mxu0  ;;  %v1528_v46 = vpop.f32.mrb[31].mxu1 }
 0x4a7   :  { %v4248_v1 = vmul.f32 -1.442695, %v1531_v45  ;;  %v4249_v2 = vmul.f32 -1.442695, %v1533_v47 }
 0x4a8   :  { %4627 = vpow2.f32 %v4247_v60 }
 0x4a9   :  { %4629 = vpow2.f32 %v4248_v1 }
 0x4aa   :  { %4631 = vpow2.f32 %v4249_v2 }
 0x4ab   :  { %4633 = vtanh.f32 %v1532_v52 }
 0x4b2   :  { %v4628_v8 = vpop.eup %4627 }
 0x4b3   :  { %v4630_v18 = vpop.eup %4629  ;;  %v1537_v28 = vadd.f32 1.0, %v4628_v8 }
 0x4b4   :  { %v1543_v63 = vadd.f32 1.0, %v4630_v18  ;;  %v4632_v13 = vpop.eup %4631 }
 0x4b5   :  { %4635 = vrcp.f32 %v1537_v28  ;;  %v4634_v57 = vpop.eup %4633  ;;  %v1550_v42 = vadd.f32 1.0, %v4632_v13  ;;  %v5626_v28 = vld [vmem:[%s6000_s3] ss:$16 sps:$4 sm:$0xff]   ;;  %v5638_v13 = vld [vmem:[%s6000_s3 + $0x24] ss:$16 sps:$4 sm:$0xff]  }
 0x4b6   :  { %4637 = vrcp.f32 %v1543_v63  ;;  %v5632_v63 = vld [vmem:[%s6000_s3 + $0x8] ss:$16 sps:$4 sm:$0xff]  }
 0x4b7   :  { %4639 = vrcp.f32 %v1550_v42  ;;  %v5670_v42 = vld [vmem:[%s6000_s3 + $0x4c] ss:$16 sps:$4 sm:$0xff]  }
 0x4bf   :  { %v4636_v33 = vpop.eup %4635 }
 0x4c0   :  { %v4638_v56 = vpop.eup %4637  ;;  %v1554_v61 = vmul.f32 %v4636_v33, %v4634_v57  ;;  %v5644_v57 = vld [vmem:[%s6000_s3 + $0x2c] ss:$16 sps:$4 sm:$0xff]   ;;  %v5652_v33 = vld [vmem:[%s6000_s3 + $0x20] ss:$16 sps:$4 sm:$0xff]  }
 0x4c1   :  { %v1553_v59 = vmul.f32 %v4638_v56, %v5526_v43  ;;  %v4640_v3 = vpop.eup %4639  ;;  %v5658_v56 = vld [vmem:[%s6000_s3 + $0x28] ss:$16 sps:$4 sm:$0xff]  }
 0x4c3   :  { %v5568_v41 = vadd.f32 %v1554_v61, %v1553_v59  ;;  %v5664_v61 = vld [vmem:[%s6000_s3 + $0x44] ss:$16 sps:$4 sm:$0xff]   ;;  %v5676_v59 = vld [vmem:[%s6000_s3 + $0x40] ss:$16 sps:$4 sm:$0xff]  }
 0x4c5   :  { %4641 = vtanh.f32 %v5568_v41 }
 0x4cf   :  { %v4642_v44 = vpop.eup %4641 }
 0x4d0   :  { %v1557_v23 = vmul.f32 %v4642_v44, %v4640_v3  ;;  %v5688_v3 = vld [vmem:[%s6000_s3 + $0x64] ss:$16 sps:$4 sm:$0xff]   ;;  %v5694_v44 = vld [vmem:[%s6000_s3 + $0x6c] ss:$16 sps:$4 sm:$0xff]  }
 0x4d2   :  { %v1565_v49 = vpack.c.bf16 %v1557_v23, %v1557_v23  ;;  %v5700_v23 = vld [vmem:[%s6000_s3 + $0x60] ss:$16 sps:$4 sm:$0xff]  }
 0x4d4   :  { %1599 = vmatmul.mubr.bf16.vlgmr.msra.gmra.mrb[32].mxu0 %v1565_v49  ;;  %1640 = vmatmul.mubr.bf16.vlgmr.msra.gmra.mrb[32].mxu1 %v1565_v49  ;;  %v5706_v49 = vld [vmem:[%s6000_s3 + $0x68] ss:$16 sps:$4 sm:$0xff]  }
 0x4d5   :  { %1685 = vmatpush1.bf16.msra.mxu0 %v5108_v4  ;;  %1726 = vmatpush1.bf16.msra.mxu1 %v5113_v5  ;;  %v5606_v4 = vld [vmem:[%s6000_s3 + $0x4] ss:$16 sps:$4 sm:$0xff]   ;;  %v5612_v5 = vld [vmem:[%s6000_s3 + $0xc] ss:$16 sps:$4 sm:$0xff]  }
 0x4d6   :  { %1686 = vmatprep.subr.bf16.mxu0 %v5118_v6  ;;  %1727 = vmatprep.subr.bf16.mxu1 %v5125_v7 }
 0x4d7   :  { %1716 = vmatprep.mubr.bf16.mxu0 %v6060_v0  ;;  %1757 = vmatprep.mubr.bf16.mxu1 %v6060_v0 }
 0x4d9   :  { %1687 = vmatpush1.bf16.msra.mxu0 %v5135_v9  ;;  %1728 = vmatpush1.bf16.msra.mxu1 %v5140_v10  ;;  %v6066_v9 = vld [vmem:[#allocation45_spill] sm:$0xff] }
 0x4da   :  { %1688 = vmatprep.subr.bf16.mxu0 %v5147_v11  ;;  %1729 = vmatprep.subr.bf16.mxu1 %v5152_v12  ;;  %v6067_v11 = vld [vmem:[#allocation46_spill] sm:$0xff] }
 0x4dd   :  { %1689 = vmatpush1.bf16.msra.mxu0 %v5162_v14  ;;  %1730 = vmatpush1.bf16.msra.mxu1 %v5167_v15 }
 0x4de   :  { %1690 = vmatprep.subr.bf16.mxu0 %v5174_v16  ;;  %1731 = vmatprep.subr.bf16.mxu1 %v5179_v17  ;;  %v6068_v16 = vld [vmem:[#allocation47_spill] sm:$0xff] }
 0x4e1   :  { %1691 = vmatpush1.bf16.msra.mxu0 %v5189_v19  ;;  %1732 = vmatpush1.bf16.msra.mxu1 %v5194_v20  ;;  %v6069_v19 = vld [vmem:[#allocation48_spill] sm:$0xff] }
 0x4e2   :  { %1692 = vmatprep.subr.bf16.mxu0 %v5201_v21  ;;  %1733 = vmatprep.subr.bf16.mxu1 %v5206_v22 }
 0x4e5   :  { %1693 = vmatpush1.bf16.msra.mxu0 %v5216_v24  ;;  %1734 = vmatpush1.bf16.msra.mxu1 %v5221_v25 }
 0x4e6   :  { %1694 = vmatprep.subr.bf16.mxu0 %v5228_v26  ;;  %1735 = vmatprep.subr.bf16.mxu1 %v5233_v27 }
 0x4e9   :  { %1695 = vmatpush1.bf16.msra.mxu0 %v5243_v29  ;;  %1736 = vmatpush1.bf16.msra.mxu1 %v5248_v30 }
 0x4ea   :  { %1696 = vmatprep.subr.bf16.mxu0 %v5255_v31  ;;  %1737 = vmatprep.subr.bf16.mxu1 %v5260_v32 }
 0x4ed   :  { %1697 = vmatpush1.bf16.msra.mxu0 %v5270_v34  ;;  %1738 = vmatpush1.bf16.msra.mxu1 %v5275_v35 }
 0x4ee   :  { %1698 = vmatprep.subr.bf16.mxu0 %v5282_v36  ;;  %1739 = vmatprep.subr.bf16.mxu1 %v5287_v37 }
 0x4f1   :  { %1699 = vmatpush1.bf16.msra.mxu0 %v5294_v38  ;;  %1740 = vmatpush1.bf16.msra.mxu1 %v5299_v39 }
 0x4f2   :  { %1802 = vmatprep.subr.bf16.mxu0 %v5606_v4  ;;  %1843 = vmatprep.subr.bf16.mxu1 %v5612_v5 }
 0x5a7   :  { %v1600_v6 = vpop.f32.mrb[32].mxu0  ;;  %v1641_v7 = vpop.f32.mrb[32].mxu1 }
 0x5a8   :  { %v1648_v10 = vadd.f32 %v1600_v6, %v6066_v9  ;;  %v1650_v12 = vadd.f32 %v1641_v7, %v6067_v11  ;;  %v1602_v14 = vpop.f32.mrb[33].mxu0  ;;  %v1643_v15 = vpop.f32.mrb[33].mxu1  ;;  %v5712_v6 = vld [vmem:[%s6000_s3 + $0x84] ss:$16 sps:$4 sm:$0xff]   ;;  %v5718_v7 = vld [vmem:[%s6000_s3 + $0x8c] ss:$16 sps:$4 sm:$0xff]  }
 0x5a9   :  { %v1649_v17 = vadd.f32 %v1602_v14, %v6068_v16  ;;  %v1651_v20 = vadd.f32 %v1643_v15, %v6069_v19  ;;  %v1604_v21 = vpop.f32.mrb[34].mxu0  ;;  %v1645_v22 = vpop.f32.mrb[34].mxu1  ;;  %v5724_v9 = vld [vmem:[%s6000_s3 + $0x80] ss:$16 sps:$4 sm:$0xff]   ;;  %v6072_v11 = vld [vmem:[#allocation51_spill] sm:$0xff] }
 0x5aa   :  { %v4250_v24 = vmul.f32 -1.442695, %v1648_v10  ;;  %v1605_v25 = vpop.f32.mrb[35].mxu0  ;;  %v1646_v43 = vpop.f32.mrb[35].mxu1  ;;  %v5730_v10 = vld [vmem:[%s6000_s3 + $0x88] ss:$16 sps:$4 sm:$0xff]  }
 0x5ab   :  { %v4251_v48 = vmul.f32 -1.442695, %v1649_v17  ;;  %v4252_v50 = vmul.f32 -1.442695, %v1651_v20 }
 0x5ac   :  { %4643 = vpow2.f32 %v4250_v24 }
 0x5ad   :  { %4645 = vpow2.f32 %v4251_v48 }
 0x5ae   :  { %4647 = vpow2.f32 %v4252_v50 }
 0x5af   :  { %4649 = vtanh.f32 %v1650_v12  ;;  %v6073_v12 = vld [vmem:[#allocation52_spill] sm:$0xff] }
 0x5b6   :  { %v4644_v52 = vpop.eup %4643 }
 0x5b7   :  { %v4646_v51 = vpop.eup %4645  ;;  %v1655_v53 = vadd.f32 1.0, %v4644_v52 }
 0x5b8   :  { %v1661_v40 = vadd.f32 1.0, %v4646_v51  ;;  %v4648_v45 = vpop.eup %4647 }
 0x5b9   :  { %4651 = vrcp.f32 %v1655_v53  ;;  %v4650_v54 = vpop.eup %4649  ;;  %v1668_v60 = vadd.f32 1.0, %v4648_v45 }
 0x5ba   :  { %4653 = vrcp.f32 %v1661_v40 }
 0x5bb   :  { %4655 = vrcp.f32 %v1668_v60  ;;  %v4730_v60 = vld [vmem:[%s6000_s3 + $0xa8] ss:$16 sps:$4 sm:$0xff]  }
 0x5c3   :  { %v4652_v47 = vpop.eup %4651 }
 0x5c4   :  { %v4654_v55 = vpop.eup %4653  ;;  %v1672_v58 = vmul.f32 %v4652_v47, %v4650_v54  ;;  %v4727_v47 = vld [vmem:[%s6000_s3 + $0xa4] ss:$16 sps:$4 sm:$0xff]  }
 0x5c5   :  { %v1671_v62 = vmul.f32 %v4654_v55, %v5568_v41  ;;  %v4656_v1 = vpop.eup %4655  ;;  %v5682_v41 = vld [vmem:[%s6000_s3 + $0x48] ss:$16 sps:$4 sm:$0xff]   ;;  %v4728_v55 = vld [vmem:[%s6000_s3 + $0xac] ss:$16 sps:$4 sm:$0xff]  }
 0x5c7   :  { %v5620_v46 = vadd.f32 %v1672_v58, %v1671_v62  ;;  %v4729_v58 = vld [vmem:[%s6000_s3 + $0xa0] ss:$16 sps:$4 sm:$0xff]   ;;  %v4731_v62 = vld [vmem:[%s6000_s3 + $0xc4] ss:$16 sps:$4 sm:$0xff]  }
 0x5c9   :  { %4657 = vtanh.f32 %v5620_v46 }
 0x5d3   :  { %v4658_v2 = vpop.eup %4657 }
 0x5d4   :  { %v1675_v8 = vmul.f32 %v4658_v2, %v4656_v1  ;;  %v4733_v1 = vld [vmem:[%s6000_s3 + $0xc0] ss:$16 sps:$4 sm:$0xff]   ;;  %v4734_v2 = vld [vmem:[%s6000_s3 + $0xc8] ss:$16 sps:$4 sm:$0xff]  }
 0x5d6   :  { %v1683_v18 = vpack.c.bf16 %v1675_v8, %v1675_v8  ;;  %v4735_v8 = vld [vmem:[%s6000_s3 + $0xe4] ss:$16 sps:$4 sm:$0xff]  }
 0x5d8   :  { %1717 = vmatmul.mubr.bf16.vlgmr.msra.gmra.mrb[36].mxu0 %v1683_v18  ;;  %1758 = vmatmul.mubr.bf16.vlgmr.msra.gmra.mrb[36].mxu1 %v1683_v18  ;;  %v4736_v18 = vld [vmem:[%s6000_s3 + $0xec] ss:$16 sps:$4 sm:$0xff]  }
 0x5d9   :  { %1803 = vmatpush1.bf16.msra.mxu0 %v5626_v28  ;;  %1844 = vmatpush1.bf16.msra.mxu1 %v5632_v63 }
 0x5da   :  { %1804 = vmatprep.subr.bf16.mxu0 %v5638_v13  ;;  %1845 = vmatprep.subr.bf16.mxu1 %v5644_v57 }
 0x5db   :  { %1834 = vmatprep.mubr.bf16.mxu0 %v6060_v0  ;;  %1875 = vmatprep.mubr.bf16.mxu1 %v6060_v0 }
 0x5dd   :  { %1805 = vmatpush1.bf16.msra.mxu0 %v5652_v33  ;;  %1846 = vmatpush1.bf16.msra.mxu1 %v5658_v56 }
 0x5de   :  { %1806 = vmatprep.subr.bf16.mxu0 %v5664_v61  ;;  %1847 = vmatprep.subr.bf16.mxu1 %v5670_v42 }
 0x5e1   :  { %1807 = vmatpush1.bf16.msra.mxu0 %v5676_v59  ;;  %1848 = vmatpush1.bf16.msra.mxu1 %v5682_v41 }
 0x5e2   :  { %1808 = vmatprep.subr.bf16.mxu0 %v5688_v3  ;;  %1849 = vmatprep.subr.bf16.mxu1 %v5694_v44 }
 0x5e5   :  { %1809 = vmatpush1.bf16.msra.mxu0 %v5700_v23  ;;  %1850 = vmatpush1.bf16.msra.mxu1 %v5706_v49 }
 0x5e6   :  { %1810 = vmatprep.subr.bf16.mxu0 %v5712_v6  ;;  %1851 = vmatprep.subr.bf16.mxu1 %v5718_v7 }
 0x5e9   :  { %1811 = vmatpush1.bf16.msra.mxu0 %v5724_v9  ;;  %1852 = vmatpush1.bf16.msra.mxu1 %v5730_v10 }
 0x5ea   :  { %1812 = vmatprep.subr.bf16.mxu0 %v5228_v26  ;;  %1853 = vmatprep.subr.bf16.mxu1 %v5233_v27 }
 0x5ed   :  { %1813 = vmatpush1.bf16.msra.mxu0 %v5243_v29  ;;  %1854 = vmatpush1.bf16.msra.mxu1 %v5248_v30  ;;  %v6070_v29 = vld [vmem:[#allocation49_spill] sm:$0xff] }
 0x5ee   :  { %1814 = vmatprep.subr.bf16.mxu0 %v5255_v31  ;;  %1855 = vmatprep.subr.bf16.mxu1 %v5260_v32  ;;  %v6071_v31 = vld [vmem:[#allocation50_spill] sm:$0xff] }
 0x5f1   :  { %1815 = vmatpush1.bf16.msra.mxu0 %v5270_v34  ;;  %1856 = vmatpush1.bf16.msra.mxu1 %v5275_v35 }
 0x5f2   :  { %1816 = vmatprep.subr.bf16.mxu0 %v5282_v36  ;;  %1857 = vmatprep.subr.bf16.mxu1 %v5287_v37 }
 0x5f5   :  { %1817 = vmatpush1.bf16.msra.mxu0 %v5294_v38  ;;  %1858 = vmatpush1.bf16.msra.mxu1 %v5299_v39 }
 0x5f6   :  { %1920 = vmatprep.subr.bf16.mxu0 %v5606_v4  ;;  %1961 = vmatprep.subr.bf16.mxu1 %v5612_v5 }
 0x6ab   :  { %v1718_v26 = vpop.f32.mrb[36].mxu0  ;;  %v1759_v27 = vpop.f32.mrb[36].mxu1 }
 0x6ac   :  { %v1766_v30 = vadd.f32 %v1718_v26, %v6070_v29  ;;  %v1768_v32 = vadd.f32 %v1759_v27, %v6071_v31  ;;  %v1720_v34 = vpop.f32.mrb[37].mxu0  ;;  %v1761_v35 = vpop.f32.mrb[37].mxu1 }
 0x6ad   :  { %v1767_v36 = vadd.f32 %v1720_v34, %v6072_v11  ;;  %v1769_v37 = vadd.f32 %v1761_v35, %v6073_v12  ;;  %v1722_v14 = vpop.f32.mrb[38].mxu0  ;;  %v1763_v38 = vpop.f32.mrb[38].mxu1 }
 0x6ae   :  { %v4253_v15 = vmul.f32 -1.442695, %v1766_v30  ;;  %v1723_v39 = vpop.f32.mrb[39].mxu0  ;;  %v1764_v16 = vpop.f32.mrb[39].mxu1 }
 0x6af   :  { %v4254_v4 = vmul.f32 -1.442695, %v1767_v36  ;;  %v4255_v5 = vmul.f32 -1.442695, %v1769_v37 }
 0x6b0   :  { %4659 = vpow2.f32 %v4253_v15 }
 0x6b1   :  { %4661 = vpow2.f32 %v4254_v4 }
 0x6b2   :  { %4663 = vpow2.f32 %v4255_v5 }
 0x6b3   :  { %4665 = vtanh.f32 %v1768_v32 }
 0x6ba   :  { %v4660_v17 = vpop.eup %4659 }
 0x6bb   :  { %v4662_v19 = vpop.eup %4661  ;;  %v1773_v20 = vadd.f32 1.0, %v4660_v17 }
 0x6bc   :  { %v1779_v21 = vadd.f32 1.0, %v4662_v19  ;;  %v4664_v22 = vpop.eup %4663 }
 0x6bd   :  { %4667 = vrcp.f32 %v1773_v20  ;;  %v4666_v24 = vpop.eup %4665  ;;  %v1786_v50 = vadd.f32 1.0, %v4664_v22 }
 0x6be   :  { %4669 = vrcp.f32 %v1779_v21 }
 0x6bf   :  { %4671 = vrcp.f32 %v1786_v50 }
 0x6c7   :  { %v4668_v25 = vpop.eup %4667 }
 0x6c8   :  { %v4670_v43 = vpop.eup %4669  ;;  %v1790_v48 = vmul.f32 %v4668_v25, %v4666_v24 }
 0x6c9   :  { %v1789_v52 = vmul.f32 %v4670_v43, %v5620_v46  ;;  %v4672_v53 = vpop.eup %4671  ;;  %v4732_v46 = vld [vmem:[%s6000_s3 + $0xcc] ss:$16 sps:$4 sm:$0xff]  }
 0x6cb   :  { %v5752_v51 = vadd.f32 %v1790_v48, %v1789_v52 }
 0x6cd   :  { %4673 = vtanh.f32 %v5752_v51 }
 0x6d7   :  { %v4674_v40 = vpop.eup %4673 }
 0x6d8   :  { %v1793_v45 = vmul.f32 %v4674_v40, %v4672_v53 }
 0x6da   :  { %v1801_v54 = vpack.c.bf16 %v1793_v45, %v1793_v45 }
 0x6dc   :  { %1835 = vmatmul.mubr.bf16.vlgmr.msra.gmra.mrb[40].mxu0 %v1801_v54  ;;  %1876 = vmatmul.mubr.bf16.vlgmr.msra.gmra.mrb[40].mxu1 %v1801_v54 }
 0x6dd   :  { %1921 = vmatpush1.bf16.msra.mxu0 %v5626_v28  ;;  %1962 = vmatpush1.bf16.msra.mxu1 %v5632_v63  ;;  %v4737_v28 = vld [vmem:[%s6000_s3 + $0xe0] ss:$16 sps:$4 sm:$0xff]   ;;  %v4738_v63 = vld [vmem:[%s6000_s3 + $0xe8] ss:$16 sps:$4 sm:$0xff]   ;;  %s4898_s3 = smov [#allocation7]  }
 0x6de   :  { %1922 = vmatprep.subr.bf16.mxu0 %v5638_v13  ;;  %1963 = vmatprep.subr.bf16.mxu1 %v5644_v57  ;;  %s259_s25 = sshll.u32 %s4898_s3, 4  ;;  %s260_s25 = int_to_ptr.vmem [resolvable:$true] %s259_s25 }
 0x6df   :  { %1952 = vmatprep.mubr.bf16.mxu0 %v6060_v0  ;;  %1993 = vmatprep.mubr.bf16.mxu1 %v6060_v0 }
 0x6e1   :  { %1923 = vmatpush1.bf16.msra.mxu0 %v5652_v33  ;;  %1964 = vmatpush1.bf16.msra.mxu1 %v5658_v56  ;;  %v6074_v33 = vld [vmem:[#allocation53_spill] sm:$0xff] }
 0x6e2   :  { %1924 = vmatprep.subr.bf16.mxu0 %v5664_v61  ;;  %1965 = vmatprep.subr.bf16.mxu1 %v5670_v42  ;;  %v6075_v61 = vld [vmem:[#allocation54_spill] sm:$0xff] }
 0x6e5   :  { %1925 = vmatpush1.bf16.msra.mxu0 %v5676_v59  ;;  %1966 = vmatpush1.bf16.msra.mxu1 %v5682_v41 }
 0x6e6   :  { %1926 = vmatprep.subr.bf16.mxu0 %v5688_v3  ;;  %1967 = vmatprep.subr.bf16.mxu1 %v5694_v44  ;;  %v6076_v3 = vld [vmem:[#allocation55_spill] sm:$0xff] }
 0x6e9   :  { %1927 = vmatpush1.bf16.msra.mxu0 %v5700_v23  ;;  %1968 = vmatpush1.bf16.msra.mxu1 %v5706_v49  ;;  %v6077_v23 = vld [vmem:[#allocation56_spill] sm:$0xff] }
 0x6ea   :  { %1928 = vmatprep.subr.bf16.mxu0 %v5712_v6  ;;  %1969 = vmatprep.subr.bf16.mxu1 %v5718_v7 }
 0x6ed   :  { %1929 = vmatpush1.bf16.msra.mxu0 %v5724_v9  ;;  %1970 = vmatpush1.bf16.msra.mxu1 %v5730_v10 }
 0x6ee   :  { %1930 = vmatprep.subr.bf16.mxu0 %v4727_v47  ;;  %1971 = vmatprep.subr.bf16.mxu1 %v4728_v55 }
 0x6f1   :  { %1931 = vmatpush1.bf16.msra.mxu0 %v4729_v58  ;;  %1972 = vmatpush1.bf16.msra.mxu1 %v4730_v60 }
 0x6f2   :  { %1932 = vmatprep.subr.bf16.mxu0 %v4731_v62  ;;  %1973 = vmatprep.subr.bf16.mxu1 %v4732_v46 }
 0x6f5   :  { %1933 = vmatpush1.bf16.msra.mxu0 %v4733_v1  ;;  %1974 = vmatpush1.bf16.msra.mxu1 %v4734_v2 }
 0x6f6   :  { %1934 = vmatprep.subr.bf16.mxu0 %v4735_v8  ;;  %1975 = vmatprep.subr.bf16.mxu1 %v4736_v18 }
 0x6f9   :  { %1935 = vmatpush1.bf16.msra.mxu0 %v4737_v28  ;;  %1976 = vmatpush1.bf16.msra.mxu1 %v4738_v63 }
 0x7af   :  { %v1836_v13 = vpop.f32.mrb[40].mxu0  ;;  %v1877_v57 = vpop.f32.mrb[40].mxu1 }
 0x7b0   :  { %v1884_v56 = vadd.f32 %v1836_v13, %v6074_v33  ;;  %v1886_v42 = vadd.f32 %v1877_v57, %v6075_v61  ;;  %v1838_v59 = vpop.f32.mrb[41].mxu0  ;;  %v1879_v41 = vpop.f32.mrb[41].mxu1 }
 0x7b1   :  { %v1885_v44 = vadd.f32 %v1838_v59, %v6076_v3  ;;  %v1887_v49 = vadd.f32 %v1879_v41, %v6077_v23  ;;  %v1840_v6 = vpop.f32.mrb[42].mxu0  ;;  %v1881_v7 = vpop.f32.mrb[42].mxu1 }
 0x7b2   :  { %v4256_v9 = vmul.f32 -1.442695, %v1884_v56  ;;  %v1841_v10 = vpop.f32.mrb[43].mxu0  ;;  %v1882_v26 = vpop.f32.mrb[43].mxu1 }
 0x7b3   :  { %v4257_v27 = vmul.f32 -1.442695, %v1885_v44  ;;  %v4258_v29 = vmul.f32 -1.442695, %v1887_v49 }
 0x7b4   :  { %4675 = vpow2.f32 %v4256_v9 }
 0x7b5   :  { %4677 = vpow2.f32 %v4257_v27 }
 0x7b6   :  { %4679 = vpow2.f32 %v4258_v29 }
 0x7b7   :  { %4681 = vtanh.f32 %v1886_v42 }
 0x7be   :  { %v4676_v30 = vpop.eup %4675 }
 0x7bf   :  { %v4678_v31 = vpop.eup %4677  ;;  %v1891_v32 = vadd.f32 1.0, %v4676_v30 }
 0x7c0   :  { %v1897_v34 = vadd.f32 1.0, %v4678_v31  ;;  %v4680_v35 = vpop.eup %4679 }
 0x7c1   :  { %4683 = vrcp.f32 %v1891_v32  ;;  %v4682_v11 = vpop.eup %4681  ;;  %v1904_v14 = vadd.f32 1.0, %v4680_v35 }
 0x7c2   :  { %4685 = vrcp.f32 %v1897_v34 }
 0x7c3   :  { %4687 = vrcp.f32 %v1904_v14 }
 0x7cb   :  { %v4684_v36 = vpop.eup %4683 }
 0x7cc   :  { %v4686_v12 = vpop.eup %4685  ;;  %v1908_v37 = vmul.f32 %v4684_v36, %v4682_v11 }
 0x7cd   :  { %v1907_v38 = vmul.f32 %v4686_v12, %v5752_v51  ;;  %v4688_v39 = vpop.eup %4687 }
 0x7cf   :  { %v1909_v15 = vadd.f32 %v1908_v37, %v1907_v38 }
 0x7d1   :  { %4689 = vtanh.f32 %v1909_v15 }
 0x7db   :  { %v4690_v16 = vpop.eup %4689 }
 0x7dc   :  { %v1911_v4 = vmul.f32 %v4690_v16, %v4688_v39 }
 0x7de   :  { %v1919_v5 = vpack.c.bf16 %v1911_v4, %v1911_v4 }
 0x7e0   :  { %1953 = vmatmul.mubr.bf16.vlgmr.msra.gmra.mrb[44].mxu0 %v1919_v5  ;;  %1994 = vmatmul.mubr.bf16.vlgmr.msra.gmra.mrb[44].mxu1 %v1919_v5 }
 0x7e1   :  { %4844 = shalt.err (!%p4841_p4)  }
 0x7e2   :  { %s4845_s13 = scalar_lea.vmem %s260_s25, 4096  ;;  %p4850_p6 = scmp.lt.s32.totalorder %s260_s25, %s260_s25 }
 0x7e3   :  { %p4846_p5 = scmp.ne.s32.totalorder %s260_s25, %s4845_s13  ;;  %p4851_p7 = scmp.lt.s32.totalorder %s4845_s13, %s4845_s13 }
 0x7e5   :  { %p4852_p8 = por %p4851_p7, %p4850_p6 }
 0x7e7   :  { %p4853_p9 = pnand %p4852_p8, %p4846_p5 }
 0x7e9   :  { %4856 = shalt.err (!%p4853_p9)  }
 0x7ea   :  { %262 = dma.hbm_to_vmem [thread:$0]  %s6014_s17, 4096, %s260_s25, [#allocation9 + $0x5]  ;;  %v6078_v20 = vld [vmem:[#allocation57_spill] sm:$0xff]  ;;  %v6079_v22 = vld [vmem:[#allocation58_spill] sm:$0xff]  ;;  %v6080_v48 = vld [vmem:[#allocation59_spill] sm:$0xff] }
 0x7eb   :  { %v6081_v52 = vld [vmem:[#allocation60_spill] sm:$0xff] }
 0x8b3   :  { %v1954_v17 = vpop.f32.mrb[44].mxu0  ;;  %v1995_v19 = vpop.f32.mrb[44].mxu1 }
 0x8b4   :  { %v2002_v21 = vadd.f32 %v1954_v17, %v6078_v20  ;;  %v2004_v24 = vadd.f32 %v1995_v19, %v6079_v22  ;;  %v1956_v25 = vpop.f32.mrb[45].mxu0  ;;  %v1997_v43 = vpop.f32.mrb[45].mxu1 }
 0x8b5   :  { %v2003_v50 = vadd.f32 %v1956_v25, %v6080_v48  ;;  %v2005_v51 = vadd.f32 %v1997_v43, %v6081_v52  ;;  %v1958_v53 = vpop.f32.mrb[46].mxu0  ;;  %v1999_v40 = vpop.f32.mrb[46].mxu1 }
 0x8b6   :  { %v4259_v45 = vmul.f32 -1.442695, %v2002_v21  ;;  %v1959_v54 = vpop.f32.mrb[47].mxu0  ;;  %v2000_v47 = vpop.f32.mrb[47].mxu1 }
 0x8b7   :  { %v4260_v55 = vmul.f32 -1.442695, %v2003_v50  ;;  %v4261_v58 = vmul.f32 -1.442695, %v2005_v51 }
 0x8b8   :  { %4691 = vpow2.f32 %v4259_v45 }
 0x8b9   :  { %4693 = vpow2.f32 %v4260_v55 }
 0x8ba   :  { %4695 = vpow2.f32 %v4261_v58 }
 0x8bb   :  { %4697 = vtanh.f32 %v2004_v24 }
 0x8c2   :  { %v4692_v60 = vpop.eup %4691 }
 0x8c3   :  { %v4694_v62 = vpop.eup %4693  ;;  %v2009_v46 = vadd.f32 1.0, %v4692_v60 }
 0x8c4   :  { %v2015_v1 = vadd.f32 1.0, %v4694_v62  ;;  %v4696_v2 = vpop.eup %4695 }
 0x8c5   :  { %4699 = vrcp.f32 %v2009_v46  ;;  %v4698_v8 = vpop.eup %4697  ;;  %v2022_v13 = vadd.f32 1.0, %v4696_v2 }
 0x8c6   :  { %4701 = vrcp.f32 %v2015_v1 }
 0x8c7   :  { %4703 = vrcp.f32 %v2022_v13 }
 0x8cf   :  { %v4700_v18 = vpop.eup %4699 }
 0x8d0   :  { %v4702_v28 = vpop.eup %4701  ;;  %v2026_v63 = vmul.f32 %v4700_v18, %v4698_v8 }
 0x8d1   :  { %v2025_v57 = vmul.f32 %v4702_v28, %v1909_v15  ;;  %v4704_v56 = vpop.eup %4703 }
 0x8d3   :  { %v2027_v33 = vadd.f32 %v2026_v63, %v2025_v57 }
 0x8d5   :  { %4705 = vtanh.f32 %v2027_v33 }
 0x8df   :  { %v4706_v61 = vpop.eup %4705 }
 0x8e0   :  { %v5832_v42 = vmul.f32 %v4706_v61, %v4704_v56 }
 0x8e1   :  { %4861 = dma.done.wait [#allocation9], 16384 }
 0x8e2   :  { %4862 = vsyncadd [#allocation9], 4294950912  ;;  %v2070_v59 = vld [vmem:[#allocation2 + $0x8] sm:$0xff]  ;;  %v2069_v3 = vld [vmem:[#allocation2] sm:$0xff]  ;;  %s6082_s30 = sld [smem:[#allocation62_spill]] }
 0x8e3   :  { %v2134_v41 = vld [vmem:[#allocation2 + $0x208] sm:$0xff]  ;;  %2211 = vmatprep.subr.bf16.mxu0 %v2070_v59  ;;  %v2133_v44 = vld [vmem:[#allocation2 + $0x200] sm:$0xff] }
 0x8e4   :  { %2252 = vmatprep.subr.bf16.mxu1 %v2134_v41  ;;  %v2074_v23 = vld [vmem:[#allocation2 + $0x28] sm:$0xff]  ;;  %2212 = vmatpush1.bf16.msra.mxu0 %v2069_v3  ;;  %v2073_v6 = vld [vmem:[#allocation2 + $0x20] sm:$0xff] }
 0x8e5   :  { %v2138_v49 = vld [vmem:[#allocation2 + $0x228] sm:$0xff]  ;;  %2253 = vmatpush1.bf16.msra.mxu1 %v2133_v44  ;;  %2213 = vmatprep.subr.bf16.mxu0 %v2074_v23  ;;  %v2137_v7 = vld [vmem:[#allocation2 + $0x220] sm:$0xff] }
 0x8e6   :  { %2254 = vmatprep.subr.bf16.mxu1 %v2138_v49  ;;  %v2078_v9 = vld [vmem:[#allocation2 + $0x48] sm:$0xff]  ;;  %v2077_v26 = vld [vmem:[#allocation2 + $0x40] sm:$0xff] }
 0x8e7   :  { %v2142_v10 = vld [vmem:[#allocation2 + $0x248] sm:$0xff]  ;;  %v2141_v27 = vld [vmem:[#allocation2 + $0x240] sm:$0xff] }
 0x8e8   :  { %2214 = vmatpush1.bf16.msra.mxu0 %v2073_v6  ;;  %v2082_v29 = vld [vmem:[#allocation2 + $0x68] sm:$0xff]  ;;  %v2081_v31 = vld [vmem:[#allocation2 + $0x60] sm:$0xff]  ;;  %v2072_v6 = vld [vmem:[#allocation2 + $0x18] sm:$0xff] }
 0x8e9   :  { %2255 = vmatpush1.bf16.msra.mxu1 %v2137_v7  ;;  %2215 = vmatprep.subr.bf16.mxu0 %v2078_v9  ;;  %v2146_v30 = vld [vmem:[#allocation2 + $0x268] sm:$0xff]  ;;  %v2145_v32 = vld [vmem:[#allocation2 + $0x260] sm:$0xff]  ;;  %v2136_v7 = vld [vmem:[#allocation2 + $0x218] sm:$0xff] }
 0x8ea   :  { %2256 = vmatprep.subr.bf16.mxu1 %v2142_v10  ;;  %v2086_v34 = vld [vmem:[#allocation2 + $0x88] sm:$0xff]  ;;  %v2085_v11 = vld [vmem:[#allocation2 + $0x80] sm:$0xff] }
 0x8eb   :  { %v2150_v35 = vld [vmem:[#allocation2 + $0x288] sm:$0xff]  ;;  %v2149_v36 = vld [vmem:[#allocation2 + $0x280] sm:$0xff] }
 0x8ec   :  { %2216 = vmatpush1.bf16.msra.mxu0 %v2077_v26  ;;  %v2090_v12 = vld [vmem:[#allocation2 + $0xa8] sm:$0xff]  ;;  %v2089_v14 = vld [vmem:[#allocation2 + $0xa0] sm:$0xff]  ;;  %v2071_v26 = vld [vmem:[#allocation2 + $0x10] sm:$0xff] }
 0x8ed   :  { %2257 = vmatpush1.bf16.msra.mxu1 %v2141_v27  ;;  %2217 = vmatprep.subr.bf16.mxu0 %v2082_v29  ;;  %v2154_v37 = vld [vmem:[#allocation2 + $0x2a8] sm:$0xff]  ;;  %v2153_v38 = vld [vmem:[#allocation2 + $0x2a0] sm:$0xff]  ;;  %v2135_v27 = vld [vmem:[#allocation2 + $0x210] sm:$0xff] }
 0x8ee   :  { %2258 = vmatprep.subr.bf16.mxu1 %v2146_v30  ;;  %v2094_v15 = vld [vmem:[#allocation2 + $0xc8] sm:$0xff]  ;;  %v5837_v16 = vld [vmem:[%s6082_s30] sm:$0xff]  ;;  %v2076_v29 = vld [vmem:[#allocation2 + $0x38] sm:$0xff] }
 0x8ef   :  { %v2158_v39 = vld [vmem:[#allocation2 + $0x2c8] sm:$0xff]  ;;  %v5846_v5 = vcombine.high %v5837_v16, %v5837_v16  ;;  %v2093_v17 = vld [vmem:[#allocation2 + $0xc0] sm:$0xff]  ;;  %v5856_v9 = vcombine.low %v5837_v16, %v5837_v16  ;;  %v2140_v30 = vld [vmem:[#allocation2 + $0x238] sm:$0xff] }
 0x8f0   :  { %2218 = vmatpush1.bf16.msra.mxu0 %v2081_v31  ;;  %v5842_v4 = vld [vmem:[%s6082_s30 + $0x8] sm:$0xff]  ;;  %v2157_v19 = vld [vmem:[#allocation2 + $0x2c0] sm:$0xff]  ;;  %v2075_v31 = vld [vmem:[#allocation2 + $0x30] sm:$0xff] }
 0x8f1   :  { %2259 = vmatpush1.bf16.msra.mxu1 %v2145_v32  ;;  %2219 = vmatprep.subr.bf16.mxu0 %v2086_v34  ;;  %v5850_v20 = vcombine.high %v5842_v4, %v5842_v4  ;;  %v2098_v21 = vld [vmem:[#allocation2 + $0xe8] sm:$0xff]  ;;  %v2097_v24 = vld [vmem:[#allocation2 + $0xe0] sm:$0xff]  ;;  %v5860_v10 = vcombine.low %v5842_v4, %v5842_v4  ;;  %v2139_v32 = vld [vmem:[#allocation2 + $0x230] sm:$0xff] }
 0x8f2   :  { %2260 = vmatprep.subr.bf16.mxu1 %v2150_v35  ;;  %v2162_v22 = vld [vmem:[#allocation2 + $0x2e8] sm:$0xff]  ;;  %2243 = vmatprep.mubr.bf16.mxu0 %v5846_v5  ;;  %v2161_v25 = vld [vmem:[#allocation2 + $0x2e0] sm:$0xff]  ;;  %v2080_v34 = vld [vmem:[#allocation2 + $0x58] sm:$0xff] }
 0x8f3   :  { %2284 = vmatprep.mubr.bf16.mxu1 %v5850_v20  ;;  %v2102_v43 = vld [vmem:[#allocation2 + $0x108] sm:$0xff]  ;;  %v2101_v50 = vld [vmem:[#allocation2 + $0x100] sm:$0xff]  ;;  %v2144_v35 = vld [vmem:[#allocation2 + $0x258] sm:$0xff] }
 0x8f4   :  { %2220 = vmatpush1.bf16.msra.mxu0 %v2085_v11  ;;  %v2166_v48 = vld [vmem:[#allocation2 + $0x308] sm:$0xff]  ;;  %v2165_v52 = vld [vmem:[#allocation2 + $0x300] sm:$0xff]  ;;  %v2079_v11 = vld [vmem:[#allocation2 + $0x50] sm:$0xff] }
 0x8f5   :  { %2261 = vmatpush1.bf16.msra.mxu1 %v2149_v36  ;;  %2221 = vmatprep.subr.bf16.mxu0 %v2090_v12  ;;  %v2106_v51 = vld [vmem:[#allocation2 + $0x128] sm:$0xff]  ;;  %v2105_v40 = vld [vmem:[#allocation2 + $0x120] sm:$0xff]  ;;  %v2143_v36 = vld [vmem:[#allocation2 + $0x250] sm:$0xff] }
 0x8f6   :  { %2262 = vmatprep.subr.bf16.mxu1 %v2154_v37  ;;  %v2170_v53 = vld [vmem:[#allocation2 + $0x328] sm:$0xff]  ;;  %v2169_v45 = vld [vmem:[#allocation2 + $0x320] sm:$0xff]  ;;  %v2084_v12 = vld [vmem:[#allocation2 + $0x78] sm:$0xff] }
 0x8f7   :  { %v2110_v54 = vld [vmem:[#allocation2 + $0x148] sm:$0xff]  ;;  %v2109_v55 = vld [vmem:[#allocation2 + $0x140] sm:$0xff]  ;;  %v2148_v37 = vld [vmem:[#allocation2 + $0x278] sm:$0xff] }
 0x8f8   :  { %2222 = vmatpush1.bf16.msra.mxu0 %v2089_v14  ;;  %v2174_v47 = vld [vmem:[#allocation2 + $0x348] sm:$0xff]  ;;  %v2173_v58 = vld [vmem:[#allocation2 + $0x340] sm:$0xff]  ;;  %v2083_v14 = vld [vmem:[#allocation2 + $0x70] sm:$0xff] }
 0x8f9   :  { %2263 = vmatpush1.bf16.msra.mxu1 %v2153_v38  ;;  %2223 = vmatprep.subr.bf16.mxu0 %v2094_v15  ;;  %v2114_v60 = vld [vmem:[#allocation2 + $0x168] sm:$0xff]  ;;  %v2113_v46 = vld [vmem:[#allocation2 + $0x160] sm:$0xff]  ;;  %v2147_v38 = vld [vmem:[#allocation2 + $0x270] sm:$0xff] }
 0x8fa   :  { %2264 = vmatprep.subr.bf16.mxu1 %v2158_v39  ;;  %v2178_v62 = vld [vmem:[#allocation2 + $0x368] sm:$0xff]  ;;  %v2177_v1 = vld [vmem:[#allocation2 + $0x360] sm:$0xff]  ;;  %v2088_v15 = vld [vmem:[#allocation2 + $0x98] sm:$0xff] }
 0x8fb   :  { %v2118_v2 = vld [vmem:[#allocation2 + $0x188] sm:$0xff]  ;;  %v2117_v18 = vld [vmem:[#allocation2 + $0x180] sm:$0xff]  ;;  %v2152_v39 = vld [vmem:[#allocation2 + $0x298] sm:$0xff] }
 0x8fc   :  { %2224 = vmatpush1.bf16.msra.mxu0 %v2093_v17  ;;  %v2182_v8 = vld [vmem:[#allocation2 + $0x388] sm:$0xff]  ;;  %v2181_v28 = vld [vmem:[#allocation2 + $0x380] sm:$0xff]  ;;  %v2087_v16 = vld [vmem:[#allocation2 + $0x90] sm:$0xff] }
 0x8fd   :  { %2265 = vmatpush1.bf16.msra.mxu1 %v2157_v19  ;;  %2225 = vmatprep.subr.bf16.mxu0 %v2098_v21  ;;  %v2122_v63 = vld [vmem:[#allocation2 + $0x1a8] sm:$0xff]  ;;  %v2121_v57 = vld [vmem:[#allocation2 + $0x1a0] sm:$0xff]  ;;  %v2151_v4 = vld [vmem:[#allocation2 + $0x290] sm:$0xff] }
 0x8fe   :  { %2266 = vmatprep.subr.bf16.mxu1 %v2162_v22  ;;  %v2186_v13 = vld [vmem:[#allocation2 + $0x3a8] sm:$0xff]  ;;  %v2185_v33 = vld [vmem:[#allocation2 + $0x3a0] sm:$0xff]  ;;  %v2156_v17 = vld [vmem:[#allocation2 + $0x2b8] sm:$0xff] }
 0x8ff   :  { %v2126_v56 = vld [vmem:[#allocation2 + $0x1c8] sm:$0xff]  ;;  %v2125_v59 = vld [vmem:[#allocation2 + $0x1c0] sm:$0xff]  ;;  %v2091_v19 = vld [vmem:[#allocation2 + $0xb0] sm:$0xff] }
 0x900   :  { %2226 = vmatpush1.bf16.msra.mxu0 %v2097_v24  ;;  %v2190_v61 = vld [vmem:[#allocation2 + $0x3c8] sm:$0xff]  ;;  %v2189_v41 = vld [vmem:[#allocation2 + $0x3c0] sm:$0xff]  ;;  %v2096_v21 = vld [vmem:[#allocation2 + $0xd8] sm:$0xff] }
 0x901   :  { %2267 = vmatpush1.bf16.msra.mxu1 %v2161_v25  ;;  %2227 = vmatprep.subr.bf16.mxu0 %v2102_v43  ;;  %v2130_v3 = vld [vmem:[#allocation2 + $0x1e8] sm:$0xff]  ;;  %v2129_v23 = vld [vmem:[#allocation2 + $0x1e0] sm:$0xff]  ;;  %v2160_v22 = vld [vmem:[#allocation2 + $0x2d8] sm:$0xff] }
 0x902   :  { %2268 = vmatprep.subr.bf16.mxu1 %v2166_v48  ;;  %v2194_v44 = vld [vmem:[#allocation2 + $0x3e8] sm:$0xff]  ;;  %v2193_v49 = vld [vmem:[#allocation2 + $0x3e0] sm:$0xff]  ;;  %v2095_v24 = vld [vmem:[#allocation2 + $0xd0] sm:$0xff] }
 0x903   :  { %v2159_v25 = vld [vmem:[#allocation2 + $0x2d0] sm:$0xff]  ;;  %v2100_v43 = vld [vmem:[#allocation2 + $0xf8] sm:$0xff] }
 0x904   :  { %2228 = vmatpush1.bf16.msra.mxu0 %v2101_v50  ;;  %v2164_v48 = vld [vmem:[#allocation2 + $0x2f8] sm:$0xff]  ;;  %v2099_v50 = vld [vmem:[#allocation2 + $0xf0] sm:$0xff] }
 0x905   :  { %2269 = vmatpush1.bf16.msra.mxu1 %v2165_v52  ;;  %2229 = vmatprep.subr.bf16.mxu0 %v2106_v51  ;;  %v2163_v52 = vld [vmem:[#allocation2 + $0x2f0] sm:$0xff]  ;;  %v2104_v51 = vld [vmem:[#allocation2 + $0x118] sm:$0xff] }
 0x906   :  { %2270 = vmatprep.subr.bf16.mxu1 %v2170_v53  ;;  %v2168_v53 = vld [vmem:[#allocation2 + $0x318] sm:$0xff] }
 0x908   :  { %2230 = vmatpush1.bf16.msra.mxu0 %v2105_v40  ;;  %v2103_v40 = vld [vmem:[#allocation2 + $0x110] sm:$0xff] }
 0x909   :  { %2271 = vmatpush1.bf16.msra.mxu1 %v2169_v45  ;;  %2231 = vmatprep.subr.bf16.mxu0 %v2110_v54  ;;  %v2167_v45 = vld [vmem:[#allocation2 + $0x310] sm:$0xff]  ;;  %v2108_v54 = vld [vmem:[#allocation2 + $0x138] sm:$0xff] }
 0x90a   :  { %2272 = vmatprep.subr.bf16.mxu1 %v2174_v47  ;;  %v2172_v47 = vld [vmem:[#allocation2 + $0x338] sm:$0xff] }
 0x90c   :  { %2232 = vmatpush1.bf16.msra.mxu0 %v2109_v55  ;;  %v2107_v55 = vld [vmem:[#allocation2 + $0x130] sm:$0xff] }
 0x90d   :  { %2273 = vmatpush1.bf16.msra.mxu1 %v2173_v58  ;;  %2233 = vmatprep.subr.bf16.mxu0 %v2114_v60  ;;  %v2171_v58 = vld [vmem:[#allocation2 + $0x330] sm:$0xff]  ;;  %v2112_v60 = vld [vmem:[#allocation2 + $0x158] sm:$0xff] }
 0x90e   :  { %2274 = vmatprep.subr.bf16.mxu1 %v2178_v62  ;;  %v2176_v62 = vld [vmem:[#allocation2 + $0x358] sm:$0xff] }
 0x910   :  { %2234 = vmatpush1.bf16.msra.mxu0 %v2113_v46  ;;  %v2111_v46 = vld [vmem:[#allocation2 + $0x150] sm:$0xff] }
 0x911   :  { %2275 = vmatpush1.bf16.msra.mxu1 %v2177_v1  ;;  %2235 = vmatprep.subr.bf16.mxu0 %v2118_v2  ;;  %v2175_v1 = vld [vmem:[#allocation2 + $0x350] sm:$0xff]  ;;  %v2116_v2 = vld [vmem:[#allocation2 + $0x178] sm:$0xff] }
 0x912   :  { %2276 = vmatprep.subr.bf16.mxu1 %v2182_v8  ;;  %v2180_v8 = vld [vmem:[#allocation2 + $0x378] sm:$0xff] }
 0x914   :  { %2236 = vmatpush1.bf16.msra.mxu0 %v2117_v18  ;;  %v2115_v18 = vld [vmem:[#allocation2 + $0x170] sm:$0xff] }
 0x915   :  { %2277 = vmatpush1.bf16.msra.mxu1 %v2181_v28  ;;  %2237 = vmatprep.subr.bf16.mxu0 %v2122_v63  ;;  %v2179_v28 = vld [vmem:[#allocation2 + $0x370] sm:$0xff]  ;;  %v2120_v63 = vld [vmem:[#allocation2 + $0x198] sm:$0xff] }
 0x916   :  { %2278 = vmatprep.subr.bf16.mxu1 %v2186_v13  ;;  %v2184_v13 = vld [vmem:[#allocation2 + $0x398] sm:$0xff] }
 0x918   :  { %2238 = vmatpush1.bf16.msra.mxu0 %v2121_v57  ;;  %v2119_v57 = vld [vmem:[#allocation2 + $0x190] sm:$0xff] }
 0x919   :  { %2279 = vmatpush1.bf16.msra.mxu1 %v2185_v33  ;;  %2239 = vmatprep.subr.bf16.mxu0 %v2126_v56  ;;  %v2183_v33 = vld [vmem:[#allocation2 + $0x390] sm:$0xff]  ;;  %v2124_v56 = vld [vmem:[#allocation2 + $0x1b8] sm:$0xff] }
 0x91a   :  { %2280 = vmatprep.subr.bf16.mxu1 %v2190_v61  ;;  %v2188_v61 = vld [vmem:[#allocation2 + $0x3b8] sm:$0xff] }
 0x91c   :  { %2240 = vmatpush1.bf16.msra.mxu0 %v2125_v59  ;;  %v2123_v59 = vld [vmem:[#allocation2 + $0x1b0] sm:$0xff] }
 0x91d   :  { %2281 = vmatpush1.bf16.msra.mxu1 %v2189_v41  ;;  %2241 = vmatprep.subr.bf16.mxu0 %v2130_v3  ;;  %v2187_v41 = vld [vmem:[#allocation2 + $0x3b0] sm:$0xff]  ;;  %v2128_v3 = vld [vmem:[#allocation2 + $0x1d8] sm:$0xff] }
 0x91e   :  { %2282 = vmatprep.subr.bf16.mxu1 %v2194_v44  ;;  %v2192_v44 = vld [vmem:[#allocation2 + $0x3d8] sm:$0xff] }
 0x920   :  { %2242 = vmatpush1.bf16.msra.mxu0 %v2129_v23  ;;  %v2127_v23 = vld [vmem:[#allocation2 + $0x1d0] sm:$0xff] }
 0x921   :  { %2283 = vmatpush1.bf16.msra.mxu1 %v2193_v49  ;;  %2293 = vmatprep.subr.bf16.mxu0 %v2072_v6  ;;  %v2191_v49 = vld [vmem:[#allocation2 + $0x3d0] sm:$0xff]  ;;  %v2132_v6 = vld [vmem:[#allocation2 + $0x1f8] sm:$0xff] }
 0x922   :  { %2334 = vmatprep.subr.bf16.mxu1 %v2136_v7  ;;  %v2196_v7 = vld [vmem:[#allocation2 + $0x3f8] sm:$0xff] }
 0x923   :  { %2244 = vmatmul.mubr.bf16.vlgmr.msra.gmra.mrb[48].mxu0 %v5856_v9 }
 0x924   :  { %2285 = vmatmul.mubr.bf16.vlgmr.msra.gmra.mrb[48].mxu1 %v5860_v10  ;;  %2294 = vmatpush1.bf16.msra.mxu0 %v2071_v26  ;;  %v2131_v26 = vld [vmem:[#allocation2 + $0x1f0] sm:$0xff] }
 0x925   :  { %2335 = vmatpush1.bf16.msra.mxu1 %v2135_v27  ;;  %2295 = vmatprep.subr.bf16.mxu0 %v2076_v29  ;;  %v2195_v27 = vld [vmem:[#allocation2 + $0x3f0] sm:$0xff] }
 0x926   :  { %2336 = vmatprep.subr.bf16.mxu1 %v2140_v30  ;;  %2325 = vmatprep.mubr.bf16.mxu0 %v5846_v5  ;;  %v2092_v5 = vld [vmem:[#allocation2 + $0xb8] sm:$0xff]  ;;  %v4745_v29 = vld [vmem:[#allocation12 + $0x4] ss:$16 sps:$4 sm:$0xff]  }
 0x927   :  { %2366 = vmatprep.mubr.bf16.mxu1 %v5850_v20  ;;  %v2155_v20 = vld [vmem:[#allocation2 + $0x2b0] sm:$0xff]  ;;  %v4748_v30 = vld [vmem:[#allocation12 + $0xc] ss:$16 sps:$4 sm:$0xff]  }
 0x928   :  { %2296 = vmatpush1.bf16.msra.mxu0 %v2075_v31  ;;  %v4743_v31 = vld [vmem:[#allocation12] ss:$16 sps:$4 sm:$0xff]  }
 0x929   :  { %2337 = vmatpush1.bf16.msra.mxu1 %v2139_v32  ;;  %2297 = vmatprep.subr.bf16.mxu0 %v2080_v34  ;;  %v4746_v32 = vld [vmem:[#allocation12 + $0x8] ss:$16 sps:$4 sm:$0xff]   ;;  %v4751_v34 = vld [vmem:[#allocation12 + $0x24] ss:$16 sps:$4 sm:$0xff]  }
 0x92a   :  { %2338 = vmatprep.subr.bf16.mxu1 %v2144_v35  ;;  %v4754_v35 = vld [vmem:[#allocation12 + $0x2c] ss:$16 sps:$4 sm:$0xff]  }
 0x92c   :  { %2298 = vmatpush1.bf16.msra.mxu0 %v2079_v11  ;;  %v4749_v11 = vld [vmem:[#allocation12 + $0x20] ss:$16 sps:$4 sm:$0xff]  }
 0x92d   :  { %2339 = vmatpush1.bf16.msra.mxu1 %v2143_v36  ;;  %2299 = vmatprep.subr.bf16.mxu0 %v2084_v12  ;;  %v4752_v36 = vld [vmem:[#allocation12 + $0x28] ss:$16 sps:$4 sm:$0xff]   ;;  %v4757_v12 = vld [vmem:[#allocation12 + $0x44] ss:$16 sps:$4 sm:$0xff]  }
 0x92e   :  { %2340 = vmatprep.subr.bf16.mxu1 %v2148_v37  ;;  %v4760_v37 = vld [vmem:[#allocation12 + $0x4c] ss:$16 sps:$4 sm:$0xff]  }
 0x930   :  { %2300 = vmatpush1.bf16.msra.mxu0 %v2083_v14  ;;  %v4755_v14 = vld [vmem:[#allocation12 + $0x40] ss:$16 sps:$4 sm:$0xff]  }
 0x931   :  { %2341 = vmatpush1.bf16.msra.mxu1 %v2147_v38  ;;  %2301 = vmatprep.subr.bf16.mxu0 %v2088_v15  ;;  %v4758_v38 = vld [vmem:[#allocation12 + $0x48] ss:$16 sps:$4 sm:$0xff]   ;;  %v4761_v15 = vld [vmem:[#allocation12 + $0x60] ss:$16 sps:$4 sm:$0xff]  }
 0x932   :  { %2342 = vmatprep.subr.bf16.mxu1 %v2152_v39  ;;  %v4764_v39 = vld [vmem:[#allocation12 + $0x68] ss:$16 sps:$4 sm:$0xff]  }
 0x934   :  { %2302 = vmatpush1.bf16.msra.mxu0 %v2087_v16  ;;  %v4769_v16 = vld [vmem:[#allocation12 + $0x84] ss:$16 sps:$4 sm:$0xff]  }
 0x935   :  { %2343 = vmatpush1.bf16.msra.mxu1 %v2151_v4  ;;  %2303 = vmatprep.subr.bf16.mxu0 %v2092_v5  ;;  %v4772_v4 = vld [vmem:[#allocation12 + $0x8c] ss:$16 sps:$4 sm:$0xff]   ;;  %v4767_v5 = vld [vmem:[#allocation12 + $0x80] ss:$16 sps:$4 sm:$0xff]  }
 0x936   :  { %2344 = vmatprep.subr.bf16.mxu1 %v2156_v17  ;;  %v4775_v17 = vld [vmem:[#allocation12 + $0xa4] ss:$16 sps:$4 sm:$0xff]  }
 0x938   :  { %2304 = vmatpush1.bf16.msra.mxu0 %v2091_v19  ;;  %v4778_v19 = vld [vmem:[#allocation12 + $0xac] ss:$16 sps:$4 sm:$0xff]  }
 0x939   :  { %2345 = vmatpush1.bf16.msra.mxu1 %v2155_v20  ;;  %2305 = vmatprep.subr.bf16.mxu0 %v2096_v21  ;;  %v4773_v20 = vld [vmem:[#allocation12 + $0xa0] ss:$16 sps:$4 sm:$0xff]   ;;  %v4776_v21 = vld [vmem:[#allocation12 + $0xa8] ss:$16 sps:$4 sm:$0xff]  }
 0x93a   :  { %2346 = vmatprep.subr.bf16.mxu1 %v2160_v22  ;;  %v4781_v22 = vld [vmem:[#allocation12 + $0xc4] ss:$16 sps:$4 sm:$0xff]  }
 0x93c   :  { %2306 = vmatpush1.bf16.msra.mxu0 %v2095_v24  ;;  %v4784_v24 = vld [vmem:[#allocation12 + $0xcc] ss:$16 sps:$4 sm:$0xff]  }
 0x93d   :  { %2347 = vmatpush1.bf16.msra.mxu1 %v2159_v25  ;;  %2307 = vmatprep.subr.bf16.mxu0 %v2100_v43  ;;  %v4779_v25 = vld [vmem:[#allocation12 + $0xc0] ss:$16 sps:$4 sm:$0xff]   ;;  %v4782_v43 = vld [vmem:[#allocation12 + $0xc8] ss:$16 sps:$4 sm:$0xff]  }
 0x93e   :  { %2348 = vmatprep.subr.bf16.mxu1 %v2164_v48  ;;  %v4787_v48 = vld [vmem:[#allocation12 + $0xe4] ss:$16 sps:$4 sm:$0xff]  }
 0x940   :  { %2308 = vmatpush1.bf16.msra.mxu0 %v2099_v50  ;;  %v4790_v50 = vld [vmem:[#allocation12 + $0xec] ss:$16 sps:$4 sm:$0xff]  }
 0x941   :  { %2349 = vmatpush1.bf16.msra.mxu1 %v2163_v52  ;;  %2309 = vmatprep.subr.bf16.mxu0 %v2104_v51  ;;  %v4785_v52 = vld [vmem:[#allocation12 + $0xe0] ss:$16 sps:$4 sm:$0xff]   ;;  %v4788_v51 = vld [vmem:[#allocation12 + $0xe8] ss:$16 sps:$4 sm:$0xff]  }
 0x942   :  { %2350 = vmatprep.subr.bf16.mxu1 %v2168_v53  ;;  %v2034_v53 = vpack.c.bf16 %v5832_v42, %v5832_v42 }
 0x944   :  { %2310 = vmatpush1.bf16.msra.mxu0 %v2103_v40 }
 0x945   :  { %2351 = vmatpush1.bf16.msra.mxu1 %v2167_v45  ;;  %2311 = vmatprep.subr.bf16.mxu0 %v2108_v54 }
 0x946   :  { %2352 = vmatprep.subr.bf16.mxu1 %v2172_v47 }
 0x948   :  { %2312 = vmatpush1.bf16.msra.mxu0 %v2107_v55 }
 0x949   :  { %2353 = vmatpush1.bf16.msra.mxu1 %v2171_v58  ;;  %2313 = vmatprep.subr.bf16.mxu0 %v2112_v60 }
 0x94a   :  { %2354 = vmatprep.subr.bf16.mxu1 %v2176_v62 }
 0x94c   :  { %2314 = vmatpush1.bf16.msra.mxu0 %v2111_v46 }
 0x94d   :  { %2355 = vmatpush1.bf16.msra.mxu1 %v2175_v1  ;;  %2315 = vmatprep.subr.bf16.mxu0 %v2116_v2 }
 0x94e   :  { %2356 = vmatprep.subr.bf16.mxu1 %v2180_v8 }
 0x950   :  { %2316 = vmatpush1.bf16.msra.mxu0 %v2115_v18 }
 0x951   :  { %2357 = vmatpush1.bf16.msra.mxu1 %v2179_v28  ;;  %2317 = vmatprep.subr.bf16.mxu0 %v2120_v63 }
 0x952   :  { %2358 = vmatprep.subr.bf16.mxu1 %v2184_v13 }
 0x954   :  { %2318 = vmatpush1.bf16.msra.mxu0 %v2119_v57 }
 0x955   :  { %2359 = vmatpush1.bf16.msra.mxu1 %v2183_v33  ;;  %2319 = vmatprep.subr.bf16.mxu0 %v2124_v56 }
 0x956   :  { %2360 = vmatprep.subr.bf16.mxu1 %v2188_v61  ;;  %v2617_v61 = vld [vmem:[%s6003_s6] sm:$0xf] }
 0x958   :  { %2320 = vmatpush1.bf16.msra.mxu0 %v2123_v59  ;;  %v6083_v59 = vld [vmem:[#allocation38_spill] sm:$0xff] }
 0x959   :  { %2361 = vmatpush1.bf16.msra.mxu1 %v2187_v41  ;;  %2321 = vmatprep.subr.bf16.mxu0 %v2128_v3  ;;  %v2622_v41 = vrot.slane %v2617_v61, %v6083_v59  ;;  %v6084_v3 = vld [vmem:[#allocation36_spill] sm:$0xff] }
 0x95a   :  { %2362 = vmatprep.subr.bf16.mxu1 %v2192_v44  ;;  %v2630_v44 = vrot.slane %v2617_v61, %v6084_v3 }
 0x95c   :  { %2322 = vmatpush1.bf16.msra.mxu0 %v2127_v23 }
 0x95d   :  { %2363 = vmatpush1.bf16.msra.mxu1 %v2191_v49  ;;  %2323 = vmatprep.subr.bf16.mxu0 %v2132_v6  ;;  %v6085_v6 = vld [vmem:[#allocation39_spill] sm:$0xff] }
 0x95e   :  { %2364 = vmatprep.subr.bf16.mxu1 %v2196_v7  ;;  %v2626_v7 = vrot.slane %v2617_v61, %v6085_v6 }
 0x960   :  { %2324 = vmatpush1.bf16.msra.mxu0 %v2131_v26  ;;  %v6086_v26 = vld [vmem:[#allocation37_spill] sm:$0xff] }
 0x961   :  { %2365 = vmatpush1.bf16.msra.mxu1 %v2195_v27  ;;  %2535 = vmatprep.subr.bf16.mxu0 %v4745_v29  ;;  %v2634_v27 = vrot.slane %v2617_v61, %v6086_v26 }
 0x962   :  { %2576 = vmatprep.subr.bf16.mxu1 %v4748_v30 }
 0x963   :  { %2326 = vmatmul.mubr.bf16.vlgmr.msra.gmra.mrb[52].mxu0 %v5856_v9  ;;  %v4763_v9 = vld [vmem:[#allocation12 + $0x64] ss:$16 sps:$4 sm:$0xff]  }
 0x964   :  { %2367 = vmatmul.mubr.bf16.vlgmr.msra.gmra.mrb[52].mxu1 %v5860_v10  ;;  %2536 = vmatpush1.bf16.msra.mxu0 %v4743_v31  ;;  %v4766_v10 = vld [vmem:[#allocation12 + $0x6c] ss:$16 sps:$4 sm:$0xff]  }
 0x965   :  { %2577 = vmatpush1.bf16.msra.mxu1 %v4746_v32  ;;  %2537 = vmatprep.subr.bf16.mxu0 %v4751_v34 }
 0x966   :  { %2578 = vmatprep.subr.bf16.mxu1 %v4754_v35  ;;  %2567 = vmatprep.mubr.bf16.mxu0 %v6060_v0 }
 0x967   :  { %2608 = vmatprep.mubr.bf16.mxu1 %v6060_v0  ;;  %v4770_v0 = vld [vmem:[#allocation12 + $0x88] ss:$16 sps:$4 sm:$0xff]  }
 0x968   :  { %2538 = vmatpush1.bf16.msra.mxu0 %v4749_v11 }
 0x969   :  { %2579 = vmatpush1.bf16.msra.mxu1 %v4752_v36  ;;  %2539 = vmatprep.subr.bf16.mxu0 %v4757_v12 }
 0x96a   :  { %2580 = vmatprep.subr.bf16.mxu1 %v4760_v37 }
 0x96c   :  { %2540 = vmatpush1.bf16.msra.mxu0 %v4755_v14 }
 0x96d   :  { %2581 = vmatpush1.bf16.msra.mxu1 %v4758_v38  ;;  %2541 = vmatprep.subr.bf16.mxu0 %v4763_v9 }
 0x96e   :  { %2582 = vmatprep.subr.bf16.mxu1 %v4766_v10 }
 0x970   :  { %2542 = vmatpush1.bf16.msra.mxu0 %v4761_v15 }
 0x971   :  { %2583 = vmatpush1.bf16.msra.mxu1 %v4764_v39  ;;  %2543 = vmatprep.subr.bf16.mxu0 %v4769_v16 }
 0x972   :  { %2584 = vmatprep.subr.bf16.mxu1 %v4772_v4 }
 0x974   :  { %2544 = vmatpush1.bf16.msra.mxu0 %v4767_v5 }
 0x975   :  { %2585 = vmatpush1.bf16.msra.mxu1 %v4770_v0  ;;  %2545 = vmatprep.subr.bf16.mxu0 %v4775_v17 }
 0x976   :  { %2586 = vmatprep.subr.bf16.mxu1 %v4778_v19 }
 0x978   :  { %2546 = vmatpush1.bf16.msra.mxu0 %v4773_v20 }
 0x979   :  { %2587 = vmatpush1.bf16.msra.mxu1 %v4776_v21  ;;  %2547 = vmatprep.subr.bf16.mxu0 %v4781_v22 }
 0x97a   :  { %2588 = vmatprep.subr.bf16.mxu1 %v4784_v24 }
 0x97c   :  { %2548 = vmatpush1.bf16.msra.mxu0 %v4779_v25 }
 0x97d   :  { %2589 = vmatpush1.bf16.msra.mxu1 %v4782_v43  ;;  %2549 = vmatprep.subr.bf16.mxu0 %v4787_v48 }
 0x97e   :  { %2590 = vmatprep.subr.bf16.mxu1 %v4790_v50 }
 0x980   :  { %2550 = vmatpush1.bf16.msra.mxu0 %v4785_v52 }
 0x981   :  { %2591 = vmatpush1.bf16.msra.mxu1 %v4788_v51 }
 0x983   :  { %2568 = vmatmul.mubr.bf16.vlgmr.msra.gmra.mrb[56].mxu0 %v2034_v53 }
 0x984   :  { %2609 = vmatmul.mubr.bf16.vlgmr.msra.gmra.mrb[56].mxu1 %v2034_v53 }
 0x9f6   :  { %v2245_v40 = vpop.f32.mrb[48].mxu0 }
 0x9f7   :  { %v2286_v45 = vpop.f32.mrb[48].mxu1  ;;  %v2247_v47 = vpop.f32.mrb[49].mxu0 }
 0x9f8   :  { %v2287_v54 = vadd.f32 %v2286_v45, %v2245_v40  ;;  %v2288_v55 = vpop.f32.mrb[49].mxu1  ;;  %v2249_v60 = vpop.f32.mrb[50].mxu0 }
 0x9f9   :  { %v2289_v58 = vadd.f32 %v2288_v55, %v2247_v47  ;;  %v2290_v62 = vpop.f32.mrb[50].mxu1  ;;  %v2250_v46 = vpop.f32.mrb[51].mxu0 }
 0x9fa   :  { %v2291_v1 = vpop.f32.mrb[51].mxu1 }
 0xa36   :  { %v2327_v2 = vpop.f32.mrb[52].mxu0 }
 0xa37   :  { %v2368_v8 = vpop.f32.mrb[52].mxu1  ;;  %v2329_v28 = vpop.f32.mrb[53].mxu0 }
 0xa38   :  { %v2369_v18 = vadd.f32 %v2368_v8, %v2327_v2  ;;  %v2370_v63 = vpop.f32.mrb[53].mxu1  ;;  %v2331_v13 = vpop.f32.mrb[54].mxu0 }
 0xa39   :  { %v2371_v42 = vadd.f32 %v2370_v63, %v2329_v28  ;;  %v2372_v57 = vpop.f32.mrb[54].mxu1  ;;  %v2332_v33 = vpop.f32.mrb[55].mxu0 }
 0xa3a   :  { %v2373_v56 = vpop.f32.mrb[55].mxu1 }
 0xa56   :  { %v2569_v23 = vpop.f32.mrb[56].mxu0 }
 0xa57   :  { %v2610_v49 = vpop.f32.mrb[56].mxu1  ;;  %v2570_v29 = vadd.f32 %v2569_v23, %v2287_v54  ;;  %v2571_v31 = vpop.f32.mrb[57].mxu0 }
 0xa58   :  { %v2611_v30 = vadd.f32 %v2610_v49, %v2369_v18  ;;  %v2612_v32 = vpop.f32.mrb[57].mxu1  ;;  %v2572_v34 = vadd.f32 %v2571_v31, %v2289_v58  ;;  %v2573_v11 = vpop.f32.mrb[58].mxu0 }
 0xa59   :  { %v2613_v35 = vadd.f32 %v2612_v32, %v2371_v42  ;;  %v2614_v36 = vpop.f32.mrb[58].mxu1  ;;  %v5879_v12 = vadd.f32 %v2622_v41, %v2570_v29  ;;  %v2574_v14 = vpop.f32.mrb[59].mxu0 }
 0xa5a   :  { %v5881_v37 = vadd.f32 %v2630_v44, %v2611_v30  ;;  %v2615_v38 = vpop.f32.mrb[59].mxu1  ;;  %v2640_v9 = vadd.f32 %v2626_v7, %v2572_v34 }
 0xa5b   :  { %v5883_v10 = vadd.f32 %v2634_v27, %v2613_v35  ;;  %v2643_v15 = vmax.f32 %v5879_v12, 0.0 }
 0xa5c   :  { %v2645_v39 = vmax.f32 %v5881_v37, 0.0  ;;  %v2644_v16 = vmax.f32 %v2640_v9, 0.0 }
 0xa5d   :  { %v2646_v4 = vmax.f32 %v5883_v10, 0.0 }
 0xa5e   :  { %4863 = dma.done.wait [#allocation9 + $0x1], 16384 }
 0xa5f   :  { %4864 = vsyncadd [#allocation9 + $0x1], 4294950912  ;;  %v2650_v5 = vpack.c.bf16 %v2644_v16, %v2644_v16  ;;  %v2654_v0 = vld [vmem:[#allocation3 + $0x8] sm:$0xff]  ;;  %v2656_v17 = vld [vmem:[#allocation3 + $0x18] sm:$0xff] }
 0xa60   :  { %v2653_v19 = vld [vmem:[#allocation3] sm:$0xff]  ;;  %2803 = vmatprep.subr.bf16.mxu0 %v2654_v0  ;;  %2885 = vmatprep.subr.bf16.mxu1 %v2656_v17  ;;  %v2655_v20 = vld [vmem:[#allocation3 + $0x10] sm:$0xff]  ;;  %v2658_v21 = vld [vmem:[#allocation3 + $0x28] sm:$0xff] }
 0xa61   :  { %2835 = vmatprep.mubr.bf16.mxu0 %v2650_v5  ;;  %2917 = vmatprep.mubr.bf16.mxu1 %v2650_v5  ;;  %v2660_v22 = vld [vmem:[#allocation3 + $0x38] sm:$0xff]  ;;  %v2657_v24 = vld [vmem:[#allocation3 + $0x20] sm:$0xff]  ;;  %v2659_v25 = vld [vmem:[#allocation3 + $0x30] sm:$0xff] }
 0xa62   :  { %2804 = vmatpush1.bf16.msra.mxu0 %v2653_v19  ;;  %2886 = vmatpush1.bf16.msra.mxu1 %v2655_v20  ;;  %v2662_v43 = vld [vmem:[#allocation3 + $0x48] sm:$0xff]  ;;  %v2664_v48 = vld [vmem:[#allocation3 + $0x58] sm:$0xff]  ;;  %v2661_v50 = vld [vmem:[#allocation3 + $0x40] sm:$0xff] }
 0xa63   :  { %2805 = vmatprep.subr.bf16.mxu0 %v2658_v21  ;;  %2887 = vmatprep.subr.bf16.mxu1 %v2660_v22  ;;  %v2663_v52 = vld [vmem:[#allocation3 + $0x50] sm:$0xff]  ;;  %v2666_v51 = vld [vmem:[#allocation3 + $0x68] sm:$0xff]  ;;  %v2668_v53 = vld [vmem:[#allocation3 + $0x78] sm:$0xff] }
 0xa64   :  { %v2665_v40 = vld [vmem:[#allocation3 + $0x60] sm:$0xff]  ;;  %v2667_v45 = vld [vmem:[#allocation3 + $0x70] sm:$0xff]  ;;  %v2670_v54 = vld [vmem:[#allocation3 + $0x88] sm:$0xff] }
 0xa65   :  { %v2672_v47 = vld [vmem:[#allocation3 + $0x98] sm:$0xff]  ;;  %v2669_v55 = vld [vmem:[#allocation3 + $0x80] sm:$0xff]  ;;  %v2671_v58 = vld [vmem:[#allocation3 + $0x90] sm:$0xff] }
 0xa66   :  { %2806 = vmatpush1.bf16.msra.mxu0 %v2657_v24  ;;  %2888 = vmatpush1.bf16.msra.mxu1 %v2659_v25  ;;  %v2674_v60 = vld [vmem:[#allocation3 + $0xa8] sm:$0xff]  ;;  %v2676_v62 = vld [vmem:[#allocation3 + $0xb8] sm:$0xff]  ;;  %v2673_v46 = vld [vmem:[#allocation3 + $0xa0] sm:$0xff] }
 0xa67   :  { %2807 = vmatprep.subr.bf16.mxu0 %v2662_v43  ;;  %2889 = vmatprep.subr.bf16.mxu1 %v2664_v48  ;;  %v2675_v1 = vld [vmem:[#allocation3 + $0xb0] sm:$0xff]  ;;  %v2678_v2 = vld [vmem:[#allocation3 + $0xc8] sm:$0xff]  ;;  %v2680_v8 = vld [vmem:[#allocation3 + $0xd8] sm:$0xff] }
 0xa68   :  { %v2677_v18 = vld [vmem:[#allocation3 + $0xc0] sm:$0xff]  ;;  %v2679_v28 = vld [vmem:[#allocation3 + $0xd0] sm:$0xff]  ;;  %v2682_v63 = vld [vmem:[#allocation3 + $0xe8] sm:$0xff] }
 0xa69   :  { %v2684_v42 = vld [vmem:[#allocation3 + $0xf8] sm:$0xff]  ;;  %v2681_v13 = vld [vmem:[#allocation3 + $0xe0] sm:$0xff]  ;;  %v2683_v57 = vld [vmem:[#allocation3 + $0xf0] sm:$0xff] }
 0xa6a   :  { %2808 = vmatpush1.bf16.msra.mxu0 %v2661_v50  ;;  %2890 = vmatpush1.bf16.msra.mxu1 %v2663_v52  ;;  %v2686_v33 = vld [vmem:[#allocation3 + $0x108] sm:$0xff]  ;;  %v2688_v56 = vld [vmem:[#allocation3 + $0x118] sm:$0xff]  ;;  %v2685_v61 = vld [vmem:[#allocation3 + $0x100] sm:$0xff] }
 0xa6b   :  { %2809 = vmatprep.subr.bf16.mxu0 %v2666_v51  ;;  %2891 = vmatprep.subr.bf16.mxu1 %v2668_v53  ;;  %v2687_v41 = vld [vmem:[#allocation3 + $0x110] sm:$0xff]  ;;  %v2690_v44 = vld [vmem:[#allocation3 + $0x128] sm:$0xff]  ;;  %v2692_v23 = vld [vmem:[#allocation3 + $0x138] sm:$0xff]  ;;  %v2649_v51 = vpack.c.bf16 %v2643_v15, %v2643_v15 }
 0xa6c   :  { %v2689_v49 = vld [vmem:[#allocation3 + $0x120] sm:$0xff]  ;;  %v2691_v7 = vld [vmem:[#allocation3 + $0x130] sm:$0xff]  ;;  %v2694_v27 = vld [vmem:[#allocation3 + $0x148] sm:$0xff] }
 0xa6d   :  { %v2696_v29 = vld [vmem:[#allocation3 + $0x158] sm:$0xff]  ;;  %v2693_v30 = vld [vmem:[#allocation3 + $0x140] sm:$0xff]  ;;  %v2695_v31 = vld [vmem:[#allocation3 + $0x150] sm:$0xff] }
 0xa6e   :  { %2810 = vmatpush1.bf16.msra.mxu0 %v2665_v40  ;;  %2892 = vmatpush1.bf16.msra.mxu1 %v2667_v45  ;;  %v2698_v32 = vld [vmem:[#allocation3 + $0x168] sm:$0xff]  ;;  %v2700_v34 = vld [vmem:[#allocation3 + $0x178] sm:$0xff]  ;;  %v2697_v35 = vld [vmem:[#allocation3 + $0x160] sm:$0xff] }
 0xa6f   :  { %2811 = vmatprep.subr.bf16.mxu0 %v2670_v54  ;;  %2893 = vmatprep.subr.bf16.mxu1 %v2672_v47  ;;  %v2699_v11 = vld [vmem:[#allocation3 + $0x170] sm:$0xff]  ;;  %v2702_v36 = vld [vmem:[#allocation3 + $0x188] sm:$0xff]  ;;  %v2704_v14 = vld [vmem:[#allocation3 + $0x198] sm:$0xff]  ;;  %v2652_v47 = vpack.c.bf16 %v2646_v4, %v2646_v4 }
 0xa70   :  { %v2701_v38 = vld [vmem:[#allocation3 + $0x180] sm:$0xff]  ;;  %v2703_v9 = vld [vmem:[#allocation3 + $0x190] sm:$0xff]  ;;  %v2706_v16 = vld [vmem:[#allocation3 + $0x1a8] sm:$0xff] }
 0xa71   :  { %v2708_v5 = vld [vmem:[#allocation3 + $0x1b8] sm:$0xff]  ;;  %v2705_v0 = vld [vmem:[#allocation3 + $0x1a0] sm:$0xff]  ;;  %v2707_v17 = vld [vmem:[#allocation3 + $0x1b0] sm:$0xff] }
 0xa72   :  { %2812 = vmatpush1.bf16.msra.mxu0 %v2669_v55  ;;  %2894 = vmatpush1.bf16.msra.mxu1 %v2671_v58  ;;  %v2710_v19 = vld [vmem:[#allocation3 + $0x1c8] sm:$0xff]  ;;  %v2712_v20 = vld [vmem:[#allocation3 + $0x1d8] sm:$0xff]  ;;  %v2709_v21 = vld [vmem:[#allocation3 + $0x1c0] sm:$0xff] }
 0xa73   :  { %2813 = vmatprep.subr.bf16.mxu0 %v2674_v60  ;;  %2895 = vmatprep.subr.bf16.mxu1 %v2676_v62  ;;  %v2711_v22 = vld [vmem:[#allocation3 + $0x1d0] sm:$0xff]  ;;  %v2714_v24 = vld [vmem:[#allocation3 + $0x1e8] sm:$0xff]  ;;  %v2716_v25 = vld [vmem:[#allocation3 + $0x1f8] sm:$0xff] }
 0xa74   :  { %v2713_v43 = vld [vmem:[#allocation3 + $0x1e0] sm:$0xff]  ;;  %v2715_v48 = vld [vmem:[#allocation3 + $0x1f0] sm:$0xff]  ;;  %v2718_v50 = vld [vmem:[#allocation3 + $0x208] sm:$0xff] }
 0xa75   :  { %v2720_v52 = vld [vmem:[#allocation3 + $0x218] sm:$0xff]  ;;  %v2717_v53 = vld [vmem:[#allocation3 + $0x200] sm:$0xff]  ;;  %v2719_v40 = vld [vmem:[#allocation3 + $0x210] sm:$0xff] }
 0xa76   :  { %2814 = vmatpush1.bf16.msra.mxu0 %v2673_v46  ;;  %2896 = vmatpush1.bf16.msra.mxu1 %v2675_v1  ;;  %v2722_v45 = vld [vmem:[#allocation3 + $0x228] sm:$0xff]  ;;  %v2724_v54 = vld [vmem:[#allocation3 + $0x238] sm:$0xff]  ;;  %v2721_v12 = vld [vmem:[#allocation3 + $0x220] sm:$0xff] }
 0xa77   :  { %2815 = vmatprep.subr.bf16.mxu0 %v2678_v2  ;;  %2897 = vmatprep.subr.bf16.mxu1 %v2680_v8  ;;  %v2723_v15 = vld [vmem:[#allocation3 + $0x230] sm:$0xff]  ;;  %v2726_v55 = vld [vmem:[#allocation3 + $0x248] sm:$0xff]  ;;  %v2728_v58 = vld [vmem:[#allocation3 + $0x258] sm:$0xff] }
 0xa78   :  { %v2725_v60 = vld [vmem:[#allocation3 + $0x240] sm:$0xff]  ;;  %v2727_v10 = vld [vmem:[#allocation3 + $0x250] sm:$0xff]  ;;  %v2730_v62 = vld [vmem:[#allocation3 + $0x268] sm:$0xff] }
 0xa79   :  { %v2732_v4 = vld [vmem:[#allocation3 + $0x278] sm:$0xff]  ;;  %v2729_v46 = vld [vmem:[#allocation3 + $0x260] sm:$0xff]  ;;  %v2731_v1 = vld [vmem:[#allocation3 + $0x270] sm:$0xff] }
 0xa7a   :  { %2816 = vmatpush1.bf16.msra.mxu0 %v2677_v18  ;;  %2898 = vmatpush1.bf16.msra.mxu1 %v2679_v28  ;;  %v2734_v2 = vld [vmem:[#allocation3 + $0x288] sm:$0xff]  ;;  %v2736_v8 = vld [vmem:[#allocation3 + $0x298] sm:$0xff]  ;;  %v2733_v18 = vld [vmem:[#allocation3 + $0x280] sm:$0xff] }
 0xa7b   :  { %2817 = vmatprep.subr.bf16.mxu0 %v2682_v63  ;;  %2899 = vmatprep.subr.bf16.mxu1 %v2684_v42  ;;  %v2735_v28 = vld [vmem:[#allocation3 + $0x290] sm:$0xff]  ;;  %v2738_v63 = vld [vmem:[#allocation3 + $0x2a8] sm:$0xff]  ;;  %v2740_v42 = vld [vmem:[#allocation3 + $0x2b8] sm:$0xff] }
 0xa7e   :  { %2818 = vmatpush1.bf16.msra.mxu0 %v2681_v13  ;;  %2900 = vmatpush1.bf16.msra.mxu1 %v2683_v57  ;;  %v2737_v13 = vld [vmem:[#allocation3 + $0x2a0] sm:$0xff]  ;;  %v2739_v57 = vld [vmem:[#allocation3 + $0x2b0] sm:$0xff] }
 0xa7f   :  { %2819 = vmatprep.subr.bf16.mxu0 %v2686_v33  ;;  %2901 = vmatprep.subr.bf16.mxu1 %v2688_v56  ;;  %v2742_v33 = vld [vmem:[#allocation3 + $0x2c8] sm:$0xff]  ;;  %v2744_v56 = vld [vmem:[#allocation3 + $0x2d8] sm:$0xff] }
 0xa82   :  { %2820 = vmatpush1.bf16.msra.mxu0 %v2685_v61  ;;  %2902 = vmatpush1.bf16.msra.mxu1 %v2687_v41  ;;  %v2741_v61 = vld [vmem:[#allocation3 + $0x2c0] sm:$0xff]  ;;  %v2743_v41 = vld [vmem:[#allocation3 + $0x2d0] sm:$0xff] }
 0xa83   :  { %2821 = vmatprep.subr.bf16.mxu0 %v2690_v44  ;;  %2903 = vmatprep.subr.bf16.mxu1 %v2692_v23  ;;  %v2746_v44 = vld [vmem:[#allocation3 + $0x2e8] sm:$0xff]  ;;  %v2748_v23 = vld [vmem:[#allocation3 + $0x2f8] sm:$0xff] }
 0xa86   :  { %2822 = vmatpush1.bf16.msra.mxu0 %v2689_v49  ;;  %2904 = vmatpush1.bf16.msra.mxu1 %v2691_v7  ;;  %v2745_v49 = vld [vmem:[#allocation3 + $0x2e0] sm:$0xff]  ;;  %v2747_v7 = vld [vmem:[#allocation3 + $0x2f0] sm:$0xff] }
 0xa87   :  { %2823 = vmatprep.subr.bf16.mxu0 %v2694_v27  ;;  %2905 = vmatprep.subr.bf16.mxu1 %v2696_v29  ;;  %v2750_v27 = vld [vmem:[#allocation3 + $0x308] sm:$0xff]  ;;  %v2752_v29 = vld [vmem:[#allocation3 + $0x318] sm:$0xff] }
 0xa8a   :  { %2824 = vmatpush1.bf16.msra.mxu0 %v2693_v30  ;;  %2906 = vmatpush1.bf16.msra.mxu1 %v2695_v31  ;;  %v2749_v30 = vld [vmem:[#allocation3 + $0x300] sm:$0xff]  ;;  %v2751_v31 = vld [vmem:[#allocation3 + $0x310] sm:$0xff] }
 0xa8b   :  { %2825 = vmatprep.subr.bf16.mxu0 %v2698_v32  ;;  %2907 = vmatprep.subr.bf16.mxu1 %v2700_v34  ;;  %v2754_v32 = vld [vmem:[#allocation3 + $0x328] sm:$0xff]  ;;  %v2756_v34 = vld [vmem:[#allocation3 + $0x338] sm:$0xff] }
 0xa8e   :  { %2826 = vmatpush1.bf16.msra.mxu0 %v2697_v35  ;;  %2908 = vmatpush1.bf16.msra.mxu1 %v2699_v11  ;;  %v2753_v35 = vld [vmem:[#allocation3 + $0x320] sm:$0xff]  ;;  %v2755_v11 = vld [vmem:[#allocation3 + $0x330] sm:$0xff] }
 0xa8f   :  { %2827 = vmatprep.subr.bf16.mxu0 %v2702_v36  ;;  %2909 = vmatprep.subr.bf16.mxu1 %v2704_v14  ;;  %v2758_v36 = vld [vmem:[#allocation3 + $0x348] sm:$0xff]  ;;  %v2760_v14 = vld [vmem:[#allocation3 + $0x358] sm:$0xff] }
 0xa92   :  { %2828 = vmatpush1.bf16.msra.mxu0 %v2701_v38  ;;  %2910 = vmatpush1.bf16.msra.mxu1 %v2703_v9  ;;  %v2757_v38 = vld [vmem:[#allocation3 + $0x340] sm:$0xff]  ;;  %v2759_v9 = vld [vmem:[#allocation3 + $0x350] sm:$0xff] }
 0xa93   :  { %2829 = vmatprep.subr.bf16.mxu0 %v2706_v16  ;;  %2911 = vmatprep.subr.bf16.mxu1 %v2708_v5  ;;  %v2762_v16 = vld [vmem:[#allocation3 + $0x368] sm:$0xff]  ;;  %v2764_v5 = vld [vmem:[#allocation3 + $0x378] sm:$0xff] }
 0xa96   :  { %2830 = vmatpush1.bf16.msra.mxu0 %v2705_v0  ;;  %2912 = vmatpush1.bf16.msra.mxu1 %v2707_v17  ;;  %v2761_v0 = vld [vmem:[#allocation3 + $0x360] sm:$0xff]  ;;  %v2763_v17 = vld [vmem:[#allocation3 + $0x370] sm:$0xff] }
 0xa97   :  { %2831 = vmatprep.subr.bf16.mxu0 %v2710_v19  ;;  %2913 = vmatprep.subr.bf16.mxu1 %v2712_v20  ;;  %v2766_v19 = vld [vmem:[#allocation3 + $0x388] sm:$0xff]  ;;  %v2768_v20 = vld [vmem:[#allocation3 + $0x398] sm:$0xff] }
 0xa9a   :  { %2832 = vmatpush1.bf16.msra.mxu0 %v2709_v21  ;;  %2914 = vmatpush1.bf16.msra.mxu1 %v2711_v22  ;;  %v2765_v21 = vld [vmem:[#allocation3 + $0x380] sm:$0xff]  ;;  %v2767_v22 = vld [vmem:[#allocation3 + $0x390] sm:$0xff] }
 0xa9b   :  { %2833 = vmatprep.subr.bf16.mxu0 %v2714_v24  ;;  %2915 = vmatprep.subr.bf16.mxu1 %v2716_v25  ;;  %v2770_v24 = vld [vmem:[#allocation3 + $0x3a8] sm:$0xff]  ;;  %v2772_v25 = vld [vmem:[#allocation3 + $0x3b8] sm:$0xff] }
 0xa9e   :  { %2834 = vmatpush1.bf16.msra.mxu0 %v2713_v43  ;;  %2916 = vmatpush1.bf16.msra.mxu1 %v2715_v48  ;;  %v2769_v43 = vld [vmem:[#allocation3 + $0x3a0] sm:$0xff]  ;;  %v2771_v48 = vld [vmem:[#allocation3 + $0x3b0] sm:$0xff] }
 0xa9f   :  { %2844 = vmatprep.subr.bf16.mxu0 %v2718_v50  ;;  %2926 = vmatprep.subr.bf16.mxu1 %v2720_v52  ;;  %v2774_v50 = vld [vmem:[#allocation3 + $0x3c8] sm:$0xff]  ;;  %v2776_v52 = vld [vmem:[#allocation3 + $0x3d8] sm:$0xff] }
 0xaa1   :  { %2836 = vmatmul.mubr.bf16.vlgmr.msra.gmra.mrb[60].mxu0 %v2649_v51  ;;  %2918 = vmatmul.mubr.bf16.vlgmr.msra.gmra.mrb[60].mxu1 %v2649_v51  ;;  %v2773_v51 = vld [vmem:[#allocation3 + $0x3c0] sm:$0xff] }
 0xaa2   :  { %2845 = vmatpush1.bf16.msra.mxu0 %v2717_v53  ;;  %2927 = vmatpush1.bf16.msra.mxu1 %v2719_v40  ;;  %v2775_v53 = vld [vmem:[#allocation3 + $0x3d0] sm:$0xff]  ;;  %v2778_v40 = vld [vmem:[#allocation3 + $0x3e8] sm:$0xff] }
 0xaa3   :  { %2846 = vmatprep.subr.bf16.mxu0 %v2722_v45  ;;  %2928 = vmatprep.subr.bf16.mxu1 %v2724_v54  ;;  %v2780_v45 = vld [vmem:[#allocation3 + $0x3f8] sm:$0xff]  ;;  %v2777_v54 = vld [vmem:[#allocation3 + $0x3e0] sm:$0xff] }
 0xaa4   :  { %2876 = vmatprep.mubr.bf16.mxu0 %v2652_v47  ;;  %2958 = vmatprep.mubr.bf16.mxu1 %v2652_v47  ;;  %v2779_v47 = vld [vmem:[#allocation3 + $0x3f0] sm:$0xff] }
 0xaa6   :  { %2847 = vmatpush1.bf16.msra.mxu0 %v2721_v12  ;;  %2929 = vmatpush1.bf16.msra.mxu1 %v2723_v15  ;;  %v2651_v12 = vpack.c.bf16 %v2645_v39, %v2645_v39  ;;  %v2781_v15 = vld [vmem:[%s6004_s7] sm:$0xf] }
 0xaa7   :  { %2848 = vmatprep.subr.bf16.mxu0 %v2726_v55  ;;  %2930 = vmatprep.subr.bf16.mxu1 %v2728_v58  ;;  %v2786_v55 = vrot.slane %v2781_v15, %v6083_v59  ;;  %v2794_v58 = vrot.slane %v2781_v15, %v6084_v3 }
 0xaaa   :  { %2849 = vmatpush1.bf16.msra.mxu0 %v2725_v60  ;;  %2931 = vmatpush1.bf16.msra.mxu1 %v2727_v10  ;;  %v2790_v60 = vrot.slane %v2781_v15, %v6085_v6  ;;  %v2798_v10 = vrot.slane %v2781_v15, %v6086_v26 }
 0xaab   :  { %2850 = vmatprep.subr.bf16.mxu0 %v2730_v62  ;;  %2932 = vmatprep.subr.bf16.mxu1 %v2732_v4 }
 0xaae   :  { %2851 = vmatpush1.bf16.msra.mxu0 %v2729_v46  ;;  %2933 = vmatpush1.bf16.msra.mxu1 %v2731_v1 }
 0xaaf   :  { %2852 = vmatprep.subr.bf16.mxu0 %v2734_v2  ;;  %2934 = vmatprep.subr.bf16.mxu1 %v2736_v8 }
 0xab2   :  { %2853 = vmatpush1.bf16.msra.mxu0 %v2733_v18  ;;  %2935 = vmatpush1.bf16.msra.mxu1 %v2735_v28 }
 0xab3   :  { %2854 = vmatprep.subr.bf16.mxu0 %v2738_v63  ;;  %2936 = vmatprep.subr.bf16.mxu1 %v2740_v42 }
 0xab6   :  { %2855 = vmatpush1.bf16.msra.mxu0 %v2737_v13  ;;  %2937 = vmatpush1.bf16.msra.mxu1 %v2739_v57 }
 0xab7   :  { %2856 = vmatprep.subr.bf16.mxu0 %v2742_v33  ;;  %2938 = vmatprep.subr.bf16.mxu1 %v2744_v56 }
 0xaba   :  { %2857 = vmatpush1.bf16.msra.mxu0 %v2741_v61  ;;  %2939 = vmatpush1.bf16.msra.mxu1 %v2743_v41 }
 0xabb   :  { %2858 = vmatprep.subr.bf16.mxu0 %v2746_v44  ;;  %2940 = vmatprep.subr.bf16.mxu1 %v2748_v23 }
 0xabe   :  { %2859 = vmatpush1.bf16.msra.mxu0 %v2745_v49  ;;  %2941 = vmatpush1.bf16.msra.mxu1 %v2747_v7 }
 0xabf   :  { %2860 = vmatprep.subr.bf16.mxu0 %v2750_v27  ;;  %2942 = vmatprep.subr.bf16.mxu1 %v2752_v29 }
 0xac2   :  { %2861 = vmatpush1.bf16.msra.mxu0 %v2749_v30  ;;  %2943 = vmatpush1.bf16.msra.mxu1 %v2751_v31 }
 0xac3   :  { %2862 = vmatprep.subr.bf16.mxu0 %v2754_v32  ;;  %2944 = vmatprep.subr.bf16.mxu1 %v2756_v34 }
 0xac6   :  { %2863 = vmatpush1.bf16.msra.mxu0 %v2753_v35  ;;  %2945 = vmatpush1.bf16.msra.mxu1 %v2755_v11 }
 0xac7   :  { %2864 = vmatprep.subr.bf16.mxu0 %v2758_v36  ;;  %2946 = vmatprep.subr.bf16.mxu1 %v2760_v14 }
 0xaca   :  { %2865 = vmatpush1.bf16.msra.mxu0 %v2757_v38  ;;  %2947 = vmatpush1.bf16.msra.mxu1 %v2759_v9 }
 0xacb   :  { %2866 = vmatprep.subr.bf16.mxu0 %v2762_v16  ;;  %2948 = vmatprep.subr.bf16.mxu1 %v2764_v5 }
 0xace   :  { %2867 = vmatpush1.bf16.msra.mxu0 %v2761_v0  ;;  %2949 = vmatpush1.bf16.msra.mxu1 %v2763_v17 }
 0xacf   :  { %2868 = vmatprep.subr.bf16.mxu0 %v2766_v19  ;;  %2950 = vmatprep.subr.bf16.mxu1 %v2768_v20 }
 0xad2   :  { %2869 = vmatpush1.bf16.msra.mxu0 %v2765_v21  ;;  %2951 = vmatpush1.bf16.msra.mxu1 %v2767_v22 }
 0xad3   :  { %2870 = vmatprep.subr.bf16.mxu0 %v2770_v24  ;;  %2952 = vmatprep.subr.bf16.mxu1 %v2772_v25 }
 0xad6   :  { %2871 = vmatpush1.bf16.msra.mxu0 %v2769_v43  ;;  %2953 = vmatpush1.bf16.msra.mxu1 %v2771_v48 }
 0xad7   :  { %2872 = vmatprep.subr.bf16.mxu0 %v2774_v50  ;;  %2954 = vmatprep.subr.bf16.mxu1 %v2776_v52 }
 0xada   :  { %2873 = vmatpush1.bf16.msra.mxu0 %v2773_v51  ;;  %2955 = vmatpush1.bf16.msra.mxu1 %v2775_v53 }
 0xadb   :  { %2874 = vmatprep.subr.bf16.mxu0 %v2778_v40  ;;  %2956 = vmatprep.subr.bf16.mxu1 %v2780_v45 }
 0xade   :  { %2875 = vmatpush1.bf16.msra.mxu0 %v2777_v54  ;;  %2957 = vmatpush1.bf16.msra.mxu1 %v2779_v47 }
 0xae1   :  { %2877 = vmatmul.mubr.bf16.vlgmr.msra.gmra.mrb[60].mxu0 %v2651_v12  ;;  %2959 = vmatmul.mubr.bf16.vlgmr.msra.gmra.mrb[60].mxu1 %v2651_v12 }
 0xbb4   :  { %v2878_v62 = vpop.f32.mrb[60].mxu0  ;;  %v2960_v37 = vpop.f32.mrb[60].mxu1 }
 0xbb5   :  { %v5904_v4 = vadd.f32 %v2878_v62, %v2786_v55  ;;  %v5906_v39 = vadd.f32 %v2960_v37, %v2794_v58  ;;  %v2880_v46 = vpop.f32.mrb[61].mxu0  ;;  %v2962_v1 = vpop.f32.mrb[61].mxu1 }
 0xbb6   :  { %v4350_v2 = vadd.f32 %v2880_v46, %v2790_v60  ;;  %v5908_v8 = vadd.f32 %v2962_v1, %v2798_v10  ;;  %v2882_v18 = vpop.f32.mrb[62].mxu0  ;;  %v2964_v28 = vpop.f32.mrb[62].mxu1 }
 0xbb7   :  { %v2967_v63 = vmax.f32 %v5904_v4, 0.0  ;;  %v2969_v42 = vmax.f32 %v5906_v39, 0.0  ;;  %v2883_v13 = vpop.f32.mrb[63].mxu0  ;;  %v2965_v57 = vpop.f32.mrb[63].mxu1 }
 0xbb8   :  { %v2968_v33 = vmax.f32 %v4350_v2, 0.0  ;;  %v2970_v56 = vmax.f32 %v5908_v8, 0.0 }
 0xbb9   :  { %4865 = dma.done.wait [#allocation9 + $0x2], 16384 }
 0xbba   :  { %4866 = vsyncadd [#allocation9 + $0x2], 4294950912  ;;  %v2974_v61 = vpack.c.bf16 %v2968_v33, %v2968_v33  ;;  %v2978_v41 = vld [vmem:[#allocation4 + $0x8] sm:$0xff]  ;;  %v2980_v44 = vld [vmem:[#allocation4 + $0x18] sm:$0xff] }
 0xbbb   :  { %v2977_v23 = vld [vmem:[#allocation4] sm:$0xff]  ;;  %3127 = vmatprep.subr.bf16.mxu0 %v2978_v41  ;;  %3209 = vmatprep.subr.bf16.mxu1 %v2980_v44  ;;  %v2979_v49 = vld [vmem:[#allocation4 + $0x10] sm:$0xff]  ;;  %v2982_v7 = vld [vmem:[#allocation4 + $0x28] sm:$0xff] }
 0xbbc   :  { %3159 = vmatprep.mubr.bf16.mxu0 %v2974_v61  ;;  %3241 = vmatprep.mubr.bf16.mxu1 %v2974_v61  ;;  %v2984_v27 = vld [vmem:[#allocation4 + $0x38] sm:$0xff]  ;;  %v2981_v29 = vld [vmem:[#allocation4 + $0x20] sm:$0xff]  ;;  %v2983_v30 = vld [vmem:[#allocation4 + $0x30] sm:$0xff] }
 0xbbd   :  { %3128 = vmatpush1.bf16.msra.mxu0 %v2977_v23  ;;  %3210 = vmatpush1.bf16.msra.mxu1 %v2979_v49  ;;  %v2986_v31 = vld [vmem:[#allocation4 + $0x48] sm:$0xff]  ;;  %v2988_v32 = vld [vmem:[#allocation4 + $0x58] sm:$0xff]  ;;  %v2985_v34 = vld [vmem:[#allocation4 + $0x40] sm:$0xff] }
 0xbbe   :  { %3129 = vmatprep.subr.bf16.mxu0 %v2982_v7  ;;  %3211 = vmatprep.subr.bf16.mxu1 %v2984_v27  ;;  %v2987_v35 = vld [vmem:[#allocation4 + $0x50] sm:$0xff]  ;;  %v2990_v11 = vld [vmem:[#allocation4 + $0x68] sm:$0xff]  ;;  %v2992_v36 = vld [vmem:[#allocation4 + $0x78] sm:$0xff] }
 0xbbf   :  { %v2989_v14 = vld [vmem:[#allocation4 + $0x60] sm:$0xff]  ;;  %v2991_v38 = vld [vmem:[#allocation4 + $0x70] sm:$0xff]  ;;  %v2994_v9 = vld [vmem:[#allocation4 + $0x88] sm:$0xff] }
 0xbc0   :  { %v2996_v16 = vld [vmem:[#allocation4 + $0x98] sm:$0xff]  ;;  %v2993_v5 = vld [vmem:[#allocation4 + $0x80] sm:$0xff]  ;;  %v2995_v0 = vld [vmem:[#allocation4 + $0x90] sm:$0xff] }
 0xbc1   :  { %3130 = vmatpush1.bf16.msra.mxu0 %v2981_v29  ;;  %3212 = vmatpush1.bf16.msra.mxu1 %v2983_v30  ;;  %v2998_v17 = vld [vmem:[#allocation4 + $0xa8] sm:$0xff]  ;;  %v3000_v19 = vld [vmem:[#allocation4 + $0xb8] sm:$0xff]  ;;  %v2997_v20 = vld [vmem:[#allocation4 + $0xa0] sm:$0xff] }
 0xbc2   :  { %3131 = vmatprep.subr.bf16.mxu0 %v2986_v31  ;;  %3213 = vmatprep.subr.bf16.mxu1 %v2988_v32  ;;  %v2999_v21 = vld [vmem:[#allocation4 + $0xb0] sm:$0xff]  ;;  %v3002_v22 = vld [vmem:[#allocation4 + $0xc8] sm:$0xff]  ;;  %v3004_v24 = vld [vmem:[#allocation4 + $0xd8] sm:$0xff] }
 0xbc3   :  { %v3001_v25 = vld [vmem:[#allocation4 + $0xc0] sm:$0xff]  ;;  %v3003_v43 = vld [vmem:[#allocation4 + $0xd0] sm:$0xff]  ;;  %v3006_v48 = vld [vmem:[#allocation4 + $0xe8] sm:$0xff] }
 0xbc4   :  { %v3008_v50 = vld [vmem:[#allocation4 + $0xf8] sm:$0xff]  ;;  %v3005_v52 = vld [vmem:[#allocation4 + $0xe0] sm:$0xff]  ;;  %v3007_v51 = vld [vmem:[#allocation4 + $0xf0] sm:$0xff] }
 0xbc5   :  { %3132 = vmatpush1.bf16.msra.mxu0 %v2985_v34  ;;  %3214 = vmatpush1.bf16.msra.mxu1 %v2987_v35  ;;  %v3010_v53 = vld [vmem:[#allocation4 + $0x108] sm:$0xff]  ;;  %v3012_v40 = vld [vmem:[#allocation4 + $0x118] sm:$0xff]  ;;  %v3009_v45 = vld [vmem:[#allocation4 + $0x100] sm:$0xff] }
 0xbc6   :  { %3133 = vmatprep.subr.bf16.mxu0 %v2990_v11  ;;  %3215 = vmatprep.subr.bf16.mxu1 %v2992_v36  ;;  %v3011_v54 = vld [vmem:[#allocation4 + $0x110] sm:$0xff]  ;;  %v3014_v47 = vld [vmem:[#allocation4 + $0x128] sm:$0xff]  ;;  %v3016_v12 = vld [vmem:[#allocation4 + $0x138] sm:$0xff]  ;;  %v2973_v11 = vpack.c.bf16 %v2967_v63, %v2967_v63 }
 0xbc7   :  { %v3013_v15 = vld [vmem:[#allocation4 + $0x120] sm:$0xff]  ;;  %v3015_v55 = vld [vmem:[#allocation4 + $0x130] sm:$0xff]  ;;  %v3018_v58 = vld [vmem:[#allocation4 + $0x148] sm:$0xff] }
 0xbc8   :  { %v3020_v60 = vld [vmem:[#allocation4 + $0x158] sm:$0xff]  ;;  %v3017_v10 = vld [vmem:[#allocation4 + $0x140] sm:$0xff]  ;;  %v3019_v62 = vld [vmem:[#allocation4 + $0x150] sm:$0xff] }
 0xbc9   :  { %3134 = vmatpush1.bf16.msra.mxu0 %v2989_v14  ;;  %3216 = vmatpush1.bf16.msra.mxu1 %v2991_v38  ;;  %v3022_v37 = vld [vmem:[#allocation4 + $0x168] sm:$0xff]  ;;  %v3024_v46 = vld [vmem:[#allocation4 + $0x178] sm:$0xff]  ;;  %v3021_v1 = vld [vmem:[#allocation4 + $0x160] sm:$0xff] }
 0xbca   :  { %3135 = vmatprep.subr.bf16.mxu0 %v2994_v9  ;;  %3217 = vmatprep.subr.bf16.mxu1 %v2996_v16  ;;  %v3023_v2 = vld [vmem:[#allocation4 + $0x170] sm:$0xff]  ;;  %v3026_v18 = vld [vmem:[#allocation4 + $0x188] sm:$0xff]  ;;  %v3028_v28 = vld [vmem:[#allocation4 + $0x198] sm:$0xff]  ;;  %v2976_v16 = vpack.c.bf16 %v2970_v56, %v2970_v56 }
 0xbcb   :  { %v3025_v13 = vld [vmem:[#allocation4 + $0x180] sm:$0xff]  ;;  %v3027_v57 = vld [vmem:[#allocation4 + $0x190] sm:$0xff]  ;;  %v3030_v33 = vld [vmem:[#allocation4 + $0x1a8] sm:$0xff] }
 0xbcc   :  { %v3032_v61 = vld [vmem:[#allocation4 + $0x1b8] sm:$0xff]  ;;  %v3029_v41 = vld [vmem:[#allocation4 + $0x1a0] sm:$0xff]  ;;  %v3031_v44 = vld [vmem:[#allocation4 + $0x1b0] sm:$0xff] }
 0xbcd   :  { %3136 = vmatpush1.bf16.msra.mxu0 %v2993_v5  ;;  %3218 = vmatpush1.bf16.msra.mxu1 %v2995_v0  ;;  %v3034_v23 = vld [vmem:[#allocation4 + $0x1c8] sm:$0xff]  ;;  %v3036_v49 = vld [vmem:[#allocation4 + $0x1d8] sm:$0xff]  ;;  %v3033_v7 = vld [vmem:[#allocation4 + $0x1c0] sm:$0xff] }
 0xbce   :  { %3137 = vmatprep.subr.bf16.mxu0 %v2998_v17  ;;  %3219 = vmatprep.subr.bf16.mxu1 %v3000_v19  ;;  %v3035_v27 = vld [vmem:[#allocation4 + $0x1d0] sm:$0xff]  ;;  %v3038_v29 = vld [vmem:[#allocation4 + $0x1e8] sm:$0xff]  ;;  %v3040_v30 = vld [vmem:[#allocation4 + $0x1f8] sm:$0xff] }
 0xbcf   :  { %v3037_v31 = vld [vmem:[#allocation4 + $0x1e0] sm:$0xff]  ;;  %v3039_v32 = vld [vmem:[#allocation4 + $0x1f0] sm:$0xff]  ;;  %v3042_v34 = vld [vmem:[#allocation4 + $0x208] sm:$0xff] }
 0xbd0   :  { %v3044_v35 = vld [vmem:[#allocation4 + $0x218] sm:$0xff]  ;;  %v3041_v36 = vld [vmem:[#allocation4 + $0x200] sm:$0xff]  ;;  %v3043_v14 = vld [vmem:[#allocation4 + $0x210] sm:$0xff] }
 0xbd1   :  { %3138 = vmatpush1.bf16.msra.mxu0 %v2997_v20  ;;  %3220 = vmatpush1.bf16.msra.mxu1 %v2999_v21  ;;  %v3046_v38 = vld [vmem:[#allocation4 + $0x228] sm:$0xff]  ;;  %v3048_v9 = vld [vmem:[#allocation4 + $0x238] sm:$0xff]  ;;  %v3045_v4 = vld [vmem:[#allocation4 + $0x220] sm:$0xff] }
 0xbd2   :  { %3139 = vmatprep.subr.bf16.mxu0 %v3002_v22  ;;  %3221 = vmatprep.subr.bf16.mxu1 %v3004_v24  ;;  %v3047_v63 = vld [vmem:[#allocation4 + $0x230] sm:$0xff]  ;;  %v3050_v5 = vld [vmem:[#allocation4 + $0x248] sm:$0xff]  ;;  %v3052_v0 = vld [vmem:[#allocation4 + $0x258] sm:$0xff] }
 0xbd3   :  { %v3049_v17 = vld [vmem:[#allocation4 + $0x240] sm:$0xff]  ;;  %v3051_v8 = vld [vmem:[#allocation4 + $0x250] sm:$0xff]  ;;  %v3054_v19 = vld [vmem:[#allocation4 + $0x268] sm:$0xff] }
 0xbd4   :  { %v3056_v56 = vld [vmem:[#allocation4 + $0x278] sm:$0xff]  ;;  %v3053_v20 = vld [vmem:[#allocation4 + $0x260] sm:$0xff]  ;;  %v3055_v21 = vld [vmem:[#allocation4 + $0x270] sm:$0xff] }
 0xbd5   :  { %3140 = vmatpush1.bf16.msra.mxu0 %v3001_v25  ;;  %3222 = vmatpush1.bf16.msra.mxu1 %v3003_v43  ;;  %v3058_v22 = vld [vmem:[#allocation4 + $0x288] sm:$0xff]  ;;  %v3060_v24 = vld [vmem:[#allocation4 + $0x298] sm:$0xff]  ;;  %v3057_v25 = vld [vmem:[#allocation4 + $0x280] sm:$0xff] }
 0xbd6   :  { %3141 = vmatprep.subr.bf16.mxu0 %v3006_v48  ;;  %3223 = vmatprep.subr.bf16.mxu1 %v3008_v50  ;;  %v3059_v43 = vld [vmem:[#allocation4 + $0x290] sm:$0xff]  ;;  %v3062_v48 = vld [vmem:[#allocation4 + $0x2a8] sm:$0xff]  ;;  %v3064_v50 = vld [vmem:[#allocation4 + $0x2b8] sm:$0xff] }
 0xbd9   :  { %3142 = vmatpush1.bf16.msra.mxu0 %v3005_v52  ;;  %3224 = vmatpush1.bf16.msra.mxu1 %v3007_v51  ;;  %v3061_v52 = vld [vmem:[#allocation4 + $0x2a0] sm:$0xff]  ;;  %v3063_v51 = vld [vmem:[#allocation4 + $0x2b0] sm:$0xff] }
 0xbda   :  { %3143 = vmatprep.subr.bf16.mxu0 %v3010_v53  ;;  %3225 = vmatprep.subr.bf16.mxu1 %v3012_v40  ;;  %v3066_v53 = vld [vmem:[#allocation4 + $0x2c8] sm:$0xff]  ;;  %v3068_v40 = vld [vmem:[#allocation4 + $0x2d8] sm:$0xff] }
 0xbdd   :  { %3144 = vmatpush1.bf16.msra.mxu0 %v3009_v45  ;;  %3226 = vmatpush1.bf16.msra.mxu1 %v3011_v54  ;;  %v3065_v45 = vld [vmem:[#allocation4 + $0x2c0] sm:$0xff]  ;;  %v3067_v54 = vld [vmem:[#allocation4 + $0x2d0] sm:$0xff] }
 0xbde   :  { %3145 = vmatprep.subr.bf16.mxu0 %v3014_v47  ;;  %3227 = vmatprep.subr.bf16.mxu1 %v3016_v12  ;;  %v3070_v47 = vld [vmem:[#allocation4 + $0x2e8] sm:$0xff]  ;;  %v3072_v12 = vld [vmem:[#allocation4 + $0x2f8] sm:$0xff] }
 0xbe1   :  { %3146 = vmatpush1.bf16.msra.mxu0 %v3013_v15  ;;  %3228 = vmatpush1.bf16.msra.mxu1 %v3015_v55  ;;  %v3069_v15 = vld [vmem:[#allocation4 + $0x2e0] sm:$0xff]  ;;  %v3071_v55 = vld [vmem:[#allocation4 + $0x2f0] sm:$0xff] }
 0xbe2   :  { %3147 = vmatprep.subr.bf16.mxu0 %v3018_v58  ;;  %3229 = vmatprep.subr.bf16.mxu1 %v3020_v60  ;;  %v3074_v58 = vld [vmem:[#allocation4 + $0x308] sm:$0xff]  ;;  %v3076_v60 = vld [vmem:[#allocation4 + $0x318] sm:$0xff] }
 0xbe5   :  { %3148 = vmatpush1.bf16.msra.mxu0 %v3017_v10  ;;  %3230 = vmatpush1.bf16.msra.mxu1 %v3019_v62  ;;  %v3073_v10 = vld [vmem:[#allocation4 + $0x300] sm:$0xff]  ;;  %v3075_v62 = vld [vmem:[#allocation4 + $0x310] sm:$0xff] }
 0xbe6   :  { %3149 = vmatprep.subr.bf16.mxu0 %v3022_v37  ;;  %3231 = vmatprep.subr.bf16.mxu1 %v3024_v46  ;;  %v3078_v37 = vld [vmem:[#allocation4 + $0x328] sm:$0xff]  ;;  %v3080_v46 = vld [vmem:[#allocation4 + $0x338] sm:$0xff] }
 0xbe9   :  { %3150 = vmatpush1.bf16.msra.mxu0 %v3021_v1  ;;  %3232 = vmatpush1.bf16.msra.mxu1 %v3023_v2  ;;  %v3077_v1 = vld [vmem:[#allocation4 + $0x320] sm:$0xff]  ;;  %v3079_v2 = vld [vmem:[#allocation4 + $0x330] sm:$0xff] }
 0xbea   :  { %3151 = vmatprep.subr.bf16.mxu0 %v3026_v18  ;;  %3233 = vmatprep.subr.bf16.mxu1 %v3028_v28  ;;  %v3082_v18 = vld [vmem:[#allocation4 + $0x348] sm:$0xff]  ;;  %v3084_v28 = vld [vmem:[#allocation4 + $0x358] sm:$0xff] }
 0xbed   :  { %3152 = vmatpush1.bf16.msra.mxu0 %v3025_v13  ;;  %3234 = vmatpush1.bf16.msra.mxu1 %v3027_v57  ;;  %v3081_v13 = vld [vmem:[#allocation4 + $0x340] sm:$0xff]  ;;  %v3083_v57 = vld [vmem:[#allocation4 + $0x350] sm:$0xff] }
 0xbee   :  { %3153 = vmatprep.subr.bf16.mxu0 %v3030_v33  ;;  %3235 = vmatprep.subr.bf16.mxu1 %v3032_v61  ;;  %v3086_v33 = vld [vmem:[#allocation4 + $0x368] sm:$0xff]  ;;  %v3088_v61 = vld [vmem:[#allocation4 + $0x378] sm:$0xff] }
 0xbf1   :  { %3154 = vmatpush1.bf16.msra.mxu0 %v3029_v41  ;;  %3236 = vmatpush1.bf16.msra.mxu1 %v3031_v44  ;;  %v3085_v41 = vld [vmem:[#allocation4 + $0x360] sm:$0xff]  ;;  %v3087_v44 = vld [vmem:[#allocation4 + $0x370] sm:$0xff] }
 0xbf2   :  { %3155 = vmatprep.subr.bf16.mxu0 %v3034_v23  ;;  %3237 = vmatprep.subr.bf16.mxu1 %v3036_v49  ;;  %v3090_v23 = vld [vmem:[#allocation4 + $0x388] sm:$0xff]  ;;  %v3092_v49 = vld [vmem:[#allocation4 + $0x398] sm:$0xff] }
 0xbf5   :  { %3156 = vmatpush1.bf16.msra.mxu0 %v3033_v7  ;;  %3238 = vmatpush1.bf16.msra.mxu1 %v3035_v27  ;;  %v3089_v7 = vld [vmem:[#allocation4 + $0x380] sm:$0xff]  ;;  %v3091_v27 = vld [vmem:[#allocation4 + $0x390] sm:$0xff] }
 0xbf6   :  { %3157 = vmatprep.subr.bf16.mxu0 %v3038_v29  ;;  %3239 = vmatprep.subr.bf16.mxu1 %v3040_v30  ;;  %v3094_v29 = vld [vmem:[#allocation4 + $0x3a8] sm:$0xff]  ;;  %v3096_v30 = vld [vmem:[#allocation4 + $0x3b8] sm:$0xff] }
 0xbf9   :  { %3158 = vmatpush1.bf16.msra.mxu0 %v3037_v31  ;;  %3240 = vmatpush1.bf16.msra.mxu1 %v3039_v32  ;;  %v3093_v31 = vld [vmem:[#allocation4 + $0x3a0] sm:$0xff]  ;;  %v3095_v32 = vld [vmem:[#allocation4 + $0x3b0] sm:$0xff] }
 0xbfa   :  { %3168 = vmatprep.subr.bf16.mxu0 %v3042_v34  ;;  %3250 = vmatprep.subr.bf16.mxu1 %v3044_v35  ;;  %v3098_v34 = vld [vmem:[#allocation4 + $0x3c8] sm:$0xff]  ;;  %v3100_v35 = vld [vmem:[#allocation4 + $0x3d8] sm:$0xff] }
 0xbfc   :  { %3160 = vmatmul.mubr.bf16.vlgmr.msra.gmra.mrb[64].mxu0 %v2973_v11  ;;  %3242 = vmatmul.mubr.bf16.vlgmr.msra.gmra.mrb[64].mxu1 %v2973_v11  ;;  %v3097_v11 = vld [vmem:[#allocation4 + $0x3c0] sm:$0xff] }
 0xbfd   :  { %3169 = vmatpush1.bf16.msra.mxu0 %v3041_v36  ;;  %3251 = vmatpush1.bf16.msra.mxu1 %v3043_v14  ;;  %v3099_v36 = vld [vmem:[#allocation4 + $0x3d0] sm:$0xff]  ;;  %v3102_v14 = vld [vmem:[#allocation4 + $0x3e8] sm:$0xff] }
 0xbfe   :  { %3170 = vmatprep.subr.bf16.mxu0 %v3046_v38  ;;  %3252 = vmatprep.subr.bf16.mxu1 %v3048_v9  ;;  %v3104_v38 = vld [vmem:[#allocation4 + $0x3f8] sm:$0xff]  ;;  %v3101_v9 = vld [vmem:[#allocation4 + $0x3e0] sm:$0xff] }
 0xbff   :  { %3200 = vmatprep.mubr.bf16.mxu0 %v2976_v16  ;;  %3282 = vmatprep.mubr.bf16.mxu1 %v2976_v16  ;;  %v3103_v16 = vld [vmem:[#allocation4 + $0x3f0] sm:$0xff] }
 0xc01   :  { %3171 = vmatpush1.bf16.msra.mxu0 %v3045_v4  ;;  %3253 = vmatpush1.bf16.msra.mxu1 %v3047_v63  ;;  %v2975_v4 = vpack.c.bf16 %v2969_v42, %v2969_v42  ;;  %v3105_v63 = vld [vmem:[%s6005_s8] sm:$0xf] }
 0xc02   :  { %3172 = vmatprep.subr.bf16.mxu0 %v3050_v5  ;;  %3254 = vmatprep.subr.bf16.mxu1 %v3052_v0  ;;  %v3110_v5 = vrot.slane %v3105_v63, %v6083_v59  ;;  %v3118_v0 = vrot.slane %v3105_v63, %v6084_v3 }
 0xc05   :  { %3173 = vmatpush1.bf16.msra.mxu0 %v3049_v17  ;;  %3255 = vmatpush1.bf16.msra.mxu1 %v3051_v8  ;;  %v3114_v17 = vrot.slane %v3105_v63, %v6085_v6  ;;  %v3122_v8 = vrot.slane %v3105_v63, %v6086_v26 }
 0xc06   :  { %3174 = vmatprep.subr.bf16.mxu0 %v3054_v19  ;;  %3256 = vmatprep.subr.bf16.mxu1 %v3056_v56 }
 0xc09   :  { %3175 = vmatpush1.bf16.msra.mxu0 %v3053_v20  ;;  %3257 = vmatpush1.bf16.msra.mxu1 %v3055_v21 }
 0xc0a   :  { %3176 = vmatprep.subr.bf16.mxu0 %v3058_v22  ;;  %3258 = vmatprep.subr.bf16.mxu1 %v3060_v24 }
 0xc0d   :  { %3177 = vmatpush1.bf16.msra.mxu0 %v3057_v25  ;;  %3259 = vmatpush1.bf16.msra.mxu1 %v3059_v43 }
 0xc0e   :  { %3178 = vmatprep.subr.bf16.mxu0 %v3062_v48  ;;  %3260 = vmatprep.subr.bf16.mxu1 %v3064_v50 }
 0xc11   :  { %3179 = vmatpush1.bf16.msra.mxu0 %v3061_v52  ;;  %3261 = vmatpush1.bf16.msra.mxu1 %v3063_v51 }
 0xc12   :  { %3180 = vmatprep.subr.bf16.mxu0 %v3066_v53  ;;  %3262 = vmatprep.subr.bf16.mxu1 %v3068_v40 }
 0xc15   :  { %3181 = vmatpush1.bf16.msra.mxu0 %v3065_v45  ;;  %3263 = vmatpush1.bf16.msra.mxu1 %v3067_v54 }
 0xc16   :  { %3182 = vmatprep.subr.bf16.mxu0 %v3070_v47  ;;  %3264 = vmatprep.subr.bf16.mxu1 %v3072_v12 }
 0xc19   :  { %3183 = vmatpush1.bf16.msra.mxu0 %v3069_v15  ;;  %3265 = vmatpush1.bf16.msra.mxu1 %v3071_v55 }
 0xc1a   :  { %3184 = vmatprep.subr.bf16.mxu0 %v3074_v58  ;;  %3266 = vmatprep.subr.bf16.mxu1 %v3076_v60 }
 0xc1d   :  { %3185 = vmatpush1.bf16.msra.mxu0 %v3073_v10  ;;  %3267 = vmatpush1.bf16.msra.mxu1 %v3075_v62 }
 0xc1e   :  { %3186 = vmatprep.subr.bf16.mxu0 %v3078_v37  ;;  %3268 = vmatprep.subr.bf16.mxu1 %v3080_v46 }
 0xc21   :  { %3187 = vmatpush1.bf16.msra.mxu0 %v3077_v1  ;;  %3269 = vmatpush1.bf16.msra.mxu1 %v3079_v2 }
 0xc22   :  { %3188 = vmatprep.subr.bf16.mxu0 %v3082_v18  ;;  %3270 = vmatprep.subr.bf16.mxu1 %v3084_v28 }
 0xc25   :  { %3189 = vmatpush1.bf16.msra.mxu0 %v3081_v13  ;;  %3271 = vmatpush1.bf16.msra.mxu1 %v3083_v57 }
 0xc26   :  { %3190 = vmatprep.subr.bf16.mxu0 %v3086_v33  ;;  %3272 = vmatprep.subr.bf16.mxu1 %v3088_v61 }
 0xc29   :  { %3191 = vmatpush1.bf16.msra.mxu0 %v3085_v41  ;;  %3273 = vmatpush1.bf16.msra.mxu1 %v3087_v44 }
 0xc2a   :  { %3192 = vmatprep.subr.bf16.mxu0 %v3090_v23  ;;  %3274 = vmatprep.subr.bf16.mxu1 %v3092_v49 }
 0xc2d   :  { %3193 = vmatpush1.bf16.msra.mxu0 %v3089_v7  ;;  %3275 = vmatpush1.bf16.msra.mxu1 %v3091_v27 }
 0xc2e   :  { %3194 = vmatprep.subr.bf16.mxu0 %v3094_v29  ;;  %3276 = vmatprep.subr.bf16.mxu1 %v3096_v30 }
 0xc31   :  { %3195 = vmatpush1.bf16.msra.mxu0 %v3093_v31  ;;  %3277 = vmatpush1.bf16.msra.mxu1 %v3095_v32 }
 0xc32   :  { %3196 = vmatprep.subr.bf16.mxu0 %v3098_v34  ;;  %3278 = vmatprep.subr.bf16.mxu1 %v3100_v35 }
 0xc35   :  { %3197 = vmatpush1.bf16.msra.mxu0 %v3097_v11  ;;  %3279 = vmatpush1.bf16.msra.mxu1 %v3099_v36 }
 0xc36   :  { %3198 = vmatprep.subr.bf16.mxu0 %v3102_v14  ;;  %3280 = vmatprep.subr.bf16.mxu1 %v3104_v38 }
 0xc39   :  { %3199 = vmatpush1.bf16.msra.mxu0 %v3101_v9  ;;  %3281 = vmatpush1.bf16.msra.mxu1 %v3103_v16 }
 0xc3c   :  { %3201 = vmatmul.mubr.bf16.vlgmr.msra.gmra.mrb[64].mxu0 %v2975_v4  ;;  %3283 = vmatmul.mubr.bf16.vlgmr.msra.gmra.mrb[64].mxu1 %v2975_v4 }
 0xd0f   :  { %v3202_v19 = vpop.f32.mrb[64].mxu0  ;;  %v3284_v39 = vpop.f32.mrb[64].mxu1 }
 0xd10   :  { %v5929_v56 = vadd.f32 %v3202_v19, %v3110_v5  ;;  %v5931_v42 = vadd.f32 %v3284_v39, %v3118_v0  ;;  %v3204_v20 = vpop.f32.mrb[65].mxu0  ;;  %v3286_v21 = vpop.f32.mrb[65].mxu1 }
 0xd11   :  { %v4354_v22 = vadd.f32 %v3204_v20, %v3114_v17  ;;  %v5933_v24 = vadd.f32 %v3286_v21, %v3122_v8  ;;  %v3206_v25 = vpop.f32.mrb[66].mxu0  ;;  %v3288_v43 = vpop.f32.mrb[66].mxu1 }
 0xd12   :  { %v3291_v48 = vmax.f32 %v5929_v56, 0.0  ;;  %v3293_v50 = vmax.f32 %v5931_v42, 0.0  ;;  %v3207_v52 = vpop.f32.mrb[67].mxu0  ;;  %v3289_v51 = vpop.f32.mrb[67].mxu1 }
 0xd13   :  { %v3292_v53 = vmax.f32 %v4354_v22, 0.0  ;;  %v3294_v40 = vmax.f32 %v5933_v24, 0.0 }
 0xd14   :  { %4867 = dma.done.wait [#allocation9 + $0x3], 16384 }
 0xd15   :  { %4868 = vsyncadd [#allocation9 + $0x3], 4294950912  ;;  %v3298_v45 = vpack.c.bf16 %v3292_v53, %v3292_v53  ;;  %v3302_v54 = vld [vmem:[#allocation5 + $0x8] sm:$0xff]  ;;  %v3304_v47 = vld [vmem:[#allocation5 + $0x18] sm:$0xff] }
 0xd16   :  { %v3301_v12 = vld [vmem:[#allocation5] sm:$0xff]  ;;  %3451 = vmatprep.subr.bf16.mxu0 %v3302_v54  ;;  %3533 = vmatprep.subr.bf16.mxu1 %v3304_v47  ;;  %v3303_v15 = vld [vmem:[#allocation5 + $0x10] sm:$0xff]  ;;  %v3306_v55 = vld [vmem:[#allocation5 + $0x28] sm:$0xff] }
 0xd17   :  { %3483 = vmatprep.mubr.bf16.mxu0 %v3298_v45  ;;  %3565 = vmatprep.mubr.bf16.mxu1 %v3298_v45  ;;  %v3308_v58 = vld [vmem:[#allocation5 + $0x38] sm:$0xff]  ;;  %v3305_v60 = vld [vmem:[#allocation5 + $0x20] sm:$0xff]  ;;  %v3307_v10 = vld [vmem:[#allocation5 + $0x30] sm:$0xff] }
 0xd18   :  { %3452 = vmatpush1.bf16.msra.mxu0 %v3301_v12  ;;  %3534 = vmatpush1.bf16.msra.mxu1 %v3303_v15  ;;  %v3310_v62 = vld [vmem:[#allocation5 + $0x48] sm:$0xff]  ;;  %v3312_v37 = vld [vmem:[#allocation5 + $0x58] sm:$0xff]  ;;  %v3309_v46 = vld [vmem:[#allocation5 + $0x40] sm:$0xff] }
 0xd19   :  { %3453 = vmatprep.subr.bf16.mxu0 %v3306_v55  ;;  %3535 = vmatprep.subr.bf16.mxu1 %v3308_v58  ;;  %v3311_v1 = vld [vmem:[#allocation5 + $0x50] sm:$0xff]  ;;  %v3314_v2 = vld [vmem:[#allocation5 + $0x68] sm:$0xff]  ;;  %v3316_v18 = vld [vmem:[#allocation5 + $0x78] sm:$0xff] }
 0xd1a   :  { %v3313_v28 = vld [vmem:[#allocation5 + $0x60] sm:$0xff]  ;;  %v3315_v13 = vld [vmem:[#allocation5 + $0x70] sm:$0xff]  ;;  %v3318_v57 = vld [vmem:[#allocation5 + $0x88] sm:$0xff] }
 0xd1b   :  { %v3320_v33 = vld [vmem:[#allocation5 + $0x98] sm:$0xff]  ;;  %v3317_v61 = vld [vmem:[#allocation5 + $0x80] sm:$0xff]  ;;  %v3319_v41 = vld [vmem:[#allocation5 + $0x90] sm:$0xff] }
 0xd1c   :  { %3454 = vmatpush1.bf16.msra.mxu0 %v3305_v60  ;;  %3536 = vmatpush1.bf16.msra.mxu1 %v3307_v10  ;;  %v3322_v44 = vld [vmem:[#allocation5 + $0xa8] sm:$0xff]  ;;  %v3324_v23 = vld [vmem:[#allocation5 + $0xb8] sm:$0xff]  ;;  %v3321_v49 = vld [vmem:[#allocation5 + $0xa0] sm:$0xff] }
 0xd1d   :  { %3455 = vmatprep.subr.bf16.mxu0 %v3310_v62  ;;  %3537 = vmatprep.subr.bf16.mxu1 %v3312_v37  ;;  %v3323_v7 = vld [vmem:[#allocation5 + $0xb0] sm:$0xff]  ;;  %v3326_v27 = vld [vmem:[#allocation5 + $0xc8] sm:$0xff]  ;;  %v3328_v29 = vld [vmem:[#allocation5 + $0xd8] sm:$0xff] }
 0xd1e   :  { %v3325_v30 = vld [vmem:[#allocation5 + $0xc0] sm:$0xff]  ;;  %v3327_v31 = vld [vmem:[#allocation5 + $0xd0] sm:$0xff]  ;;  %v3330_v32 = vld [vmem:[#allocation5 + $0xe8] sm:$0xff] }
 0xd1f   :  { %v3332_v34 = vld [vmem:[#allocation5 + $0xf8] sm:$0xff]  ;;  %v3329_v35 = vld [vmem:[#allocation5 + $0xe0] sm:$0xff]  ;;  %v3331_v11 = vld [vmem:[#allocation5 + $0xf0] sm:$0xff] }
 0xd20   :  { %3456 = vmatpush1.bf16.msra.mxu0 %v3309_v46  ;;  %3538 = vmatpush1.bf16.msra.mxu1 %v3311_v1  ;;  %v3334_v36 = vld [vmem:[#allocation5 + $0x108] sm:$0xff]  ;;  %v3336_v14 = vld [vmem:[#allocation5 + $0x118] sm:$0xff]  ;;  %v3333_v38 = vld [vmem:[#allocation5 + $0x100] sm:$0xff] }
 0xd21   :  { %3457 = vmatprep.subr.bf16.mxu0 %v3314_v2  ;;  %3539 = vmatprep.subr.bf16.mxu1 %v3316_v18  ;;  %v3335_v9 = vld [vmem:[#allocation5 + $0x110] sm:$0xff]  ;;  %v3338_v16 = vld [vmem:[#allocation5 + $0x128] sm:$0xff]  ;;  %v3340_v4 = vld [vmem:[#allocation5 + $0x138] sm:$0xff]  ;;  %v3297_v2 = vpack.c.bf16 %v3291_v48, %v3291_v48 }
 0xd22   :  { %v3337_v63 = vld [vmem:[#allocation5 + $0x120] sm:$0xff]  ;;  %v3339_v5 = vld [vmem:[#allocation5 + $0x130] sm:$0xff]  ;;  %v3342_v0 = vld [vmem:[#allocation5 + $0x148] sm:$0xff] }
 0xd23   :  { %v3344_v17 = vld [vmem:[#allocation5 + $0x158] sm:$0xff]  ;;  %v3341_v8 = vld [vmem:[#allocation5 + $0x140] sm:$0xff]  ;;  %v3343_v19 = vld [vmem:[#allocation5 + $0x150] sm:$0xff] }
 0xd24   :  { %3458 = vmatpush1.bf16.msra.mxu0 %v3313_v28  ;;  %3540 = vmatpush1.bf16.msra.mxu1 %v3315_v13  ;;  %v3346_v39 = vld [vmem:[#allocation5 + $0x168] sm:$0xff]  ;;  %v3348_v20 = vld [vmem:[#allocation5 + $0x178] sm:$0xff]  ;;  %v3345_v21 = vld [vmem:[#allocation5 + $0x160] sm:$0xff] }
 0xd25   :  { %3459 = vmatprep.subr.bf16.mxu0 %v3318_v57  ;;  %3541 = vmatprep.subr.bf16.mxu1 %v3320_v33  ;;  %v3347_v22 = vld [vmem:[#allocation5 + $0x170] sm:$0xff]  ;;  %v3350_v25 = vld [vmem:[#allocation5 + $0x188] sm:$0xff]  ;;  %v3352_v43 = vld [vmem:[#allocation5 + $0x198] sm:$0xff]  ;;  %v3300_v33 = vpack.c.bf16 %v3294_v40, %v3294_v40 }
 0xd26   :  { %v3349_v52 = vld [vmem:[#allocation5 + $0x180] sm:$0xff]  ;;  %v3351_v51 = vld [vmem:[#allocation5 + $0x190] sm:$0xff]  ;;  %v3354_v53 = vld [vmem:[#allocation5 + $0x1a8] sm:$0xff] }
 0xd27   :  { %v3356_v45 = vld [vmem:[#allocation5 + $0x1b8] sm:$0xff]  ;;  %v3353_v54 = vld [vmem:[#allocation5 + $0x1a0] sm:$0xff]  ;;  %v3355_v47 = vld [vmem:[#allocation5 + $0x1b0] sm:$0xff] }
 0xd28   :  { %3460 = vmatpush1.bf16.msra.mxu0 %v3317_v61  ;;  %3542 = vmatpush1.bf16.msra.mxu1 %v3319_v41  ;;  %v3358_v12 = vld [vmem:[#allocation5 + $0x1c8] sm:$0xff]  ;;  %v3360_v15 = vld [vmem:[#allocation5 + $0x1d8] sm:$0xff]  ;;  %v3357_v55 = vld [vmem:[#allocation5 + $0x1c0] sm:$0xff] }
 0xd29   :  { %3461 = vmatprep.subr.bf16.mxu0 %v3322_v44  ;;  %3543 = vmatprep.subr.bf16.mxu1 %v3324_v23  ;;  %v3359_v58 = vld [vmem:[#allocation5 + $0x1d0] sm:$0xff]  ;;  %v3362_v60 = vld [vmem:[#allocation5 + $0x1e8] sm:$0xff]  ;;  %v3364_v10 = vld [vmem:[#allocation5 + $0x1f8] sm:$0xff] }
 0xd2a   :  { %v3361_v62 = vld [vmem:[#allocation5 + $0x1e0] sm:$0xff]  ;;  %v3363_v37 = vld [vmem:[#allocation5 + $0x1f0] sm:$0xff]  ;;  %v3366_v46 = vld [vmem:[#allocation5 + $0x208] sm:$0xff] }
 0xd2b   :  { %v3368_v1 = vld [vmem:[#allocation5 + $0x218] sm:$0xff]  ;;  %v3365_v18 = vld [vmem:[#allocation5 + $0x200] sm:$0xff]  ;;  %v3367_v28 = vld [vmem:[#allocation5 + $0x210] sm:$0xff] }
 0xd2c   :  { %3462 = vmatpush1.bf16.msra.mxu0 %v3321_v49  ;;  %3544 = vmatpush1.bf16.msra.mxu1 %v3323_v7  ;;  %v3370_v13 = vld [vmem:[#allocation5 + $0x228] sm:$0xff]  ;;  %v3372_v57 = vld [vmem:[#allocation5 + $0x238] sm:$0xff]  ;;  %v3369_v56 = vld [vmem:[#allocation5 + $0x220] sm:$0xff] }
 0xd2d   :  { %3463 = vmatprep.subr.bf16.mxu0 %v3326_v27  ;;  %3545 = vmatprep.subr.bf16.mxu1 %v3328_v29  ;;  %v3371_v48 = vld [vmem:[#allocation5 + $0x230] sm:$0xff]  ;;  %v3374_v61 = vld [vmem:[#allocation5 + $0x248] sm:$0xff]  ;;  %v3376_v41 = vld [vmem:[#allocation5 + $0x258] sm:$0xff] }
 0xd2e   :  { %v3373_v44 = vld [vmem:[#allocation5 + $0x240] sm:$0xff]  ;;  %v3375_v24 = vld [vmem:[#allocation5 + $0x250] sm:$0xff]  ;;  %v3378_v23 = vld [vmem:[#allocation5 + $0x268] sm:$0xff] }
 0xd2f   :  { %v3380_v40 = vld [vmem:[#allocation5 + $0x278] sm:$0xff]  ;;  %v3377_v49 = vld [vmem:[#allocation5 + $0x260] sm:$0xff]  ;;  %v3379_v7 = vld [vmem:[#allocation5 + $0x270] sm:$0xff] }
 0xd30   :  { %3464 = vmatpush1.bf16.msra.mxu0 %v3325_v30  ;;  %3546 = vmatpush1.bf16.msra.mxu1 %v3327_v31  ;;  %v3382_v27 = vld [vmem:[#allocation5 + $0x288] sm:$0xff]  ;;  %v3384_v29 = vld [vmem:[#allocation5 + $0x298] sm:$0xff]  ;;  %v3381_v30 = vld [vmem:[#allocation5 + $0x280] sm:$0xff] }
 0xd31   :  { %3465 = vmatprep.subr.bf16.mxu0 %v3330_v32  ;;  %3547 = vmatprep.subr.bf16.mxu1 %v3332_v34  ;;  %v3383_v31 = vld [vmem:[#allocation5 + $0x290] sm:$0xff]  ;;  %v3386_v32 = vld [vmem:[#allocation5 + $0x2a8] sm:$0xff]  ;;  %v3388_v34 = vld [vmem:[#allocation5 + $0x2b8] sm:$0xff] }
 0xd34   :  { %3466 = vmatpush1.bf16.msra.mxu0 %v3329_v35  ;;  %3548 = vmatpush1.bf16.msra.mxu1 %v3331_v11  ;;  %v3385_v35 = vld [vmem:[#allocation5 + $0x2a0] sm:$0xff]  ;;  %v3387_v11 = vld [vmem:[#allocation5 + $0x2b0] sm:$0xff] }
 0xd35   :  { %3467 = vmatprep.subr.bf16.mxu0 %v3334_v36  ;;  %3549 = vmatprep.subr.bf16.mxu1 %v3336_v14  ;;  %v3390_v36 = vld [vmem:[#allocation5 + $0x2c8] sm:$0xff]  ;;  %v3392_v14 = vld [vmem:[#allocation5 + $0x2d8] sm:$0xff] }
 0xd38   :  { %3468 = vmatpush1.bf16.msra.mxu0 %v3333_v38  ;;  %3550 = vmatpush1.bf16.msra.mxu1 %v3335_v9  ;;  %v3389_v38 = vld [vmem:[#allocation5 + $0x2c0] sm:$0xff]  ;;  %v3391_v9 = vld [vmem:[#allocation5 + $0x2d0] sm:$0xff] }
 0xd39   :  { %3469 = vmatprep.subr.bf16.mxu0 %v3338_v16  ;;  %3551 = vmatprep.subr.bf16.mxu1 %v3340_v4  ;;  %v3394_v16 = vld [vmem:[#allocation5 + $0x2e8] sm:$0xff]  ;;  %v3396_v4 = vld [vmem:[#allocation5 + $0x2f8] sm:$0xff] }
 0xd3c   :  { %3470 = vmatpush1.bf16.msra.mxu0 %v3337_v63  ;;  %3552 = vmatpush1.bf16.msra.mxu1 %v3339_v5  ;;  %v3393_v63 = vld [vmem:[#allocation5 + $0x2e0] sm:$0xff]  ;;  %v3395_v5 = vld [vmem:[#allocation5 + $0x2f0] sm:$0xff] }
 0xd3d   :  { %3471 = vmatprep.subr.bf16.mxu0 %v3342_v0  ;;  %3553 = vmatprep.subr.bf16.mxu1 %v3344_v17  ;;  %v3398_v0 = vld [vmem:[#allocation5 + $0x308] sm:$0xff]  ;;  %v3400_v17 = vld [vmem:[#allocation5 + $0x318] sm:$0xff] }
 0xd40   :  { %3472 = vmatpush1.bf16.msra.mxu0 %v3341_v8  ;;  %3554 = vmatpush1.bf16.msra.mxu1 %v3343_v19  ;;  %v3397_v8 = vld [vmem:[#allocation5 + $0x300] sm:$0xff]  ;;  %v3399_v19 = vld [vmem:[#allocation5 + $0x310] sm:$0xff] }
 0xd41   :  { %3473 = vmatprep.subr.bf16.mxu0 %v3346_v39  ;;  %3555 = vmatprep.subr.bf16.mxu1 %v3348_v20  ;;  %v3402_v39 = vld [vmem:[#allocation5 + $0x328] sm:$0xff]  ;;  %v3404_v20 = vld [vmem:[#allocation5 + $0x338] sm:$0xff] }
 0xd44   :  { %3474 = vmatpush1.bf16.msra.mxu0 %v3345_v21  ;;  %3556 = vmatpush1.bf16.msra.mxu1 %v3347_v22  ;;  %v3401_v21 = vld [vmem:[#allocation5 + $0x320] sm:$0xff]  ;;  %v3403_v22 = vld [vmem:[#allocation5 + $0x330] sm:$0xff] }
 0xd45   :  { %3475 = vmatprep.subr.bf16.mxu0 %v3350_v25  ;;  %3557 = vmatprep.subr.bf16.mxu1 %v3352_v43  ;;  %v3406_v25 = vld [vmem:[#allocation5 + $0x348] sm:$0xff]  ;;  %v3408_v43 = vld [vmem:[#allocation5 + $0x358] sm:$0xff] }
 0xd48   :  { %3476 = vmatpush1.bf16.msra.mxu0 %v3349_v52  ;;  %3558 = vmatpush1.bf16.msra.mxu1 %v3351_v51  ;;  %v3405_v52 = vld [vmem:[#allocation5 + $0x340] sm:$0xff]  ;;  %v3407_v51 = vld [vmem:[#allocation5 + $0x350] sm:$0xff] }
 0xd49   :  { %3477 = vmatprep.subr.bf16.mxu0 %v3354_v53  ;;  %3559 = vmatprep.subr.bf16.mxu1 %v3356_v45  ;;  %v3410_v53 = vld [vmem:[#allocation5 + $0x368] sm:$0xff]  ;;  %v3412_v45 = vld [vmem:[#allocation5 + $0x378] sm:$0xff] }
 0xd4c   :  { %3478 = vmatpush1.bf16.msra.mxu0 %v3353_v54  ;;  %3560 = vmatpush1.bf16.msra.mxu1 %v3355_v47  ;;  %v3409_v54 = vld [vmem:[#allocation5 + $0x360] sm:$0xff]  ;;  %v3411_v47 = vld [vmem:[#allocation5 + $0x370] sm:$0xff] }
 0xd4d   :  { %3479 = vmatprep.subr.bf16.mxu0 %v3358_v12  ;;  %3561 = vmatprep.subr.bf16.mxu1 %v3360_v15  ;;  %v3414_v12 = vld [vmem:[#allocation5 + $0x388] sm:$0xff]  ;;  %v3416_v15 = vld [vmem:[#allocation5 + $0x398] sm:$0xff] }
 0xd50   :  { %3480 = vmatpush1.bf16.msra.mxu0 %v3357_v55  ;;  %3562 = vmatpush1.bf16.msra.mxu1 %v3359_v58  ;;  %v3413_v55 = vld [vmem:[#allocation5 + $0x380] sm:$0xff]  ;;  %v3415_v58 = vld [vmem:[#allocation5 + $0x390] sm:$0xff] }
 0xd51   :  { %3481 = vmatprep.subr.bf16.mxu0 %v3362_v60  ;;  %3563 = vmatprep.subr.bf16.mxu1 %v3364_v10  ;;  %v3418_v60 = vld [vmem:[#allocation5 + $0x3a8] sm:$0xff]  ;;  %v3420_v10 = vld [vmem:[#allocation5 + $0x3b8] sm:$0xff] }
 0xd54   :  { %3482 = vmatpush1.bf16.msra.mxu0 %v3361_v62  ;;  %3564 = vmatpush1.bf16.msra.mxu1 %v3363_v37  ;;  %v3417_v62 = vld [vmem:[#allocation5 + $0x3a0] sm:$0xff]  ;;  %v3419_v37 = vld [vmem:[#allocation5 + $0x3b0] sm:$0xff] }
 0xd55   :  { %3492 = vmatprep.subr.bf16.mxu0 %v3366_v46  ;;  %3574 = vmatprep.subr.bf16.mxu1 %v3368_v1  ;;  %v3422_v46 = vld [vmem:[#allocation5 + $0x3c8] sm:$0xff]  ;;  %v3424_v1 = vld [vmem:[#allocation5 + $0x3d8] sm:$0xff] }
 0xd57   :  { %3484 = vmatmul.mubr.bf16.vlgmr.msra.gmra.mrb[68].mxu0 %v3297_v2  ;;  %3566 = vmatmul.mubr.bf16.vlgmr.msra.gmra.mrb[68].mxu1 %v3297_v2  ;;  %v3421_v2 = vld [vmem:[#allocation5 + $0x3c0] sm:$0xff] }
 0xd58   :  { %3493 = vmatpush1.bf16.msra.mxu0 %v3365_v18  ;;  %3575 = vmatpush1.bf16.msra.mxu1 %v3367_v28  ;;  %v3423_v18 = vld [vmem:[#allocation5 + $0x3d0] sm:$0xff]  ;;  %v3426_v28 = vld [vmem:[#allocation5 + $0x3e8] sm:$0xff] }
 0xd59   :  { %3494 = vmatprep.subr.bf16.mxu0 %v3370_v13  ;;  %3576 = vmatprep.subr.bf16.mxu1 %v3372_v57  ;;  %v3428_v13 = vld [vmem:[#allocation5 + $0x3f8] sm:$0xff]  ;;  %v3425_v57 = vld [vmem:[#allocation5 + $0x3e0] sm:$0xff] }
 0xd5a   :  { %3524 = vmatprep.mubr.bf16.mxu0 %v3300_v33  ;;  %3606 = vmatprep.mubr.bf16.mxu1 %v3300_v33  ;;  %v3427_v33 = vld [vmem:[#allocation5 + $0x3f0] sm:$0xff] }
 0xd5c   :  { %3495 = vmatpush1.bf16.msra.mxu0 %v3369_v56  ;;  %3577 = vmatpush1.bf16.msra.mxu1 %v3371_v48  ;;  %v3299_v56 = vpack.c.bf16 %v3293_v50, %v3293_v50  ;;  %v3429_v48 = vld [vmem:[%s6006_s9] sm:$0xf] }
 0xd5d   :  { %3496 = vmatprep.subr.bf16.mxu0 %v3374_v61  ;;  %3578 = vmatprep.subr.bf16.mxu1 %v3376_v41  ;;  %v3434_v61 = vrot.slane %v3429_v48, %v6083_v59  ;;  %v3442_v41 = vrot.slane %v3429_v48, %v6084_v3 }
 0xd60   :  { %3497 = vmatpush1.bf16.msra.mxu0 %v3373_v44  ;;  %3579 = vmatpush1.bf16.msra.mxu1 %v3375_v24  ;;  %v3438_v44 = vrot.slane %v3429_v48, %v6085_v6  ;;  %v3446_v24 = vrot.slane %v3429_v48, %v6086_v26 }
 0xd61   :  { %3498 = vmatprep.subr.bf16.mxu0 %v3378_v23  ;;  %3580 = vmatprep.subr.bf16.mxu1 %v3380_v40 }
 0xd64   :  { %3499 = vmatpush1.bf16.msra.mxu0 %v3377_v49  ;;  %3581 = vmatpush1.bf16.msra.mxu1 %v3379_v7 }
 0xd65   :  { %3500 = vmatprep.subr.bf16.mxu0 %v3382_v27  ;;  %3582 = vmatprep.subr.bf16.mxu1 %v3384_v29 }
 0xd68   :  { %3501 = vmatpush1.bf16.msra.mxu0 %v3381_v30  ;;  %3583 = vmatpush1.bf16.msra.mxu1 %v3383_v31 }
 0xd69   :  { %3502 = vmatprep.subr.bf16.mxu0 %v3386_v32  ;;  %3584 = vmatprep.subr.bf16.mxu1 %v3388_v34 }
 0xd6c   :  { %3503 = vmatpush1.bf16.msra.mxu0 %v3385_v35  ;;  %3585 = vmatpush1.bf16.msra.mxu1 %v3387_v11 }
 0xd6d   :  { %3504 = vmatprep.subr.bf16.mxu0 %v3390_v36  ;;  %3586 = vmatprep.subr.bf16.mxu1 %v3392_v14 }
 0xd70   :  { %3505 = vmatpush1.bf16.msra.mxu0 %v3389_v38  ;;  %3587 = vmatpush1.bf16.msra.mxu1 %v3391_v9 }
 0xd71   :  { %3506 = vmatprep.subr.bf16.mxu0 %v3394_v16  ;;  %3588 = vmatprep.subr.bf16.mxu1 %v3396_v4 }
 0xd74   :  { %3507 = vmatpush1.bf16.msra.mxu0 %v3393_v63  ;;  %3589 = vmatpush1.bf16.msra.mxu1 %v3395_v5 }
 0xd75   :  { %3508 = vmatprep.subr.bf16.mxu0 %v3398_v0  ;;  %3590 = vmatprep.subr.bf16.mxu1 %v3400_v17 }
 0xd78   :  { %3509 = vmatpush1.bf16.msra.mxu0 %v3397_v8  ;;  %3591 = vmatpush1.bf16.msra.mxu1 %v3399_v19 }
 0xd79   :  { %3510 = vmatprep.subr.bf16.mxu0 %v3402_v39  ;;  %3592 = vmatprep.subr.bf16.mxu1 %v3404_v20 }
 0xd7c   :  { %3511 = vmatpush1.bf16.msra.mxu0 %v3401_v21  ;;  %3593 = vmatpush1.bf16.msra.mxu1 %v3403_v22 }
 0xd7d   :  { %3512 = vmatprep.subr.bf16.mxu0 %v3406_v25  ;;  %3594 = vmatprep.subr.bf16.mxu1 %v3408_v43 }
 0xd80   :  { %3513 = vmatpush1.bf16.msra.mxu0 %v3405_v52  ;;  %3595 = vmatpush1.bf16.msra.mxu1 %v3407_v51 }
 0xd81   :  { %3514 = vmatprep.subr.bf16.mxu0 %v3410_v53  ;;  %3596 = vmatprep.subr.bf16.mxu1 %v3412_v45 }
 0xd84   :  { %3515 = vmatpush1.bf16.msra.mxu0 %v3409_v54  ;;  %3597 = vmatpush1.bf16.msra.mxu1 %v3411_v47 }
 0xd85   :  { %3516 = vmatprep.subr.bf16.mxu0 %v3414_v12  ;;  %3598 = vmatprep.subr.bf16.mxu1 %v3416_v15 }
 0xd88   :  { %3517 = vmatpush1.bf16.msra.mxu0 %v3413_v55  ;;  %3599 = vmatpush1.bf16.msra.mxu1 %v3415_v58 }
 0xd89   :  { %3518 = vmatprep.subr.bf16.mxu0 %v3418_v60  ;;  %3600 = vmatprep.subr.bf16.mxu1 %v3420_v10 }
 0xd8c   :  { %3519 = vmatpush1.bf16.msra.mxu0 %v3417_v62  ;;  %3601 = vmatpush1.bf16.msra.mxu1 %v3419_v37 }
 0xd8d   :  { %3520 = vmatprep.subr.bf16.mxu0 %v3422_v46  ;;  %3602 = vmatprep.subr.bf16.mxu1 %v3424_v1 }
 0xd90   :  { %3521 = vmatpush1.bf16.msra.mxu0 %v3421_v2  ;;  %3603 = vmatpush1.bf16.msra.mxu1 %v3423_v18 }
 0xd91   :  { %3522 = vmatprep.subr.bf16.mxu0 %v3426_v28  ;;  %3604 = vmatprep.subr.bf16.mxu1 %v3428_v13 }
 0xd94   :  { %3523 = vmatpush1.bf16.msra.mxu0 %v3425_v57  ;;  %3605 = vmatpush1.bf16.msra.mxu1 %v3427_v33 }
 0xd97   :  { %3525 = vmatmul.mubr.bf16.vlgmr.msra.gmra.mrb[68].mxu0 %v3299_v56  ;;  %3607 = vmatmul.mubr.bf16.vlgmr.msra.gmra.mrb[68].mxu1 %v3299_v56 }
 0xe6a   :  { %v3526_v23 = vpop.f32.mrb[68].mxu0  ;;  %v3608_v42 = vpop.f32.mrb[68].mxu1 }
 0xe6b   :  { %v5954_v40 = vadd.f32 %v3526_v23, %v3434_v61  ;;  %v5956_v50 = vadd.f32 %v3608_v42, %v3442_v41  ;;  %v3528_v49 = vpop.f32.mrb[69].mxu0  ;;  %v3610_v7 = vpop.f32.mrb[69].mxu1 }
 0xe6c   :  { %v4358_v27 = vadd.f32 %v3528_v49, %v3438_v44  ;;  %v5958_v29 = vadd.f32 %v3610_v7, %v3446_v24  ;;  %v3530_v30 = vpop.f32.mrb[70].mxu0  ;;  %v3612_v31 = vpop.f32.mrb[70].mxu1 }
 0xe6d   :  { %v3615_v32 = vmax.f32 %v5954_v40, 0.0  ;;  %v3617_v34 = vmax.f32 %v5956_v50, 0.0  ;;  %v3531_v35 = vpop.f32.mrb[71].mxu0  ;;  %v3613_v11 = vpop.f32.mrb[71].mxu1 }
 0xe6e   :  { %v3616_v36 = vmax.f32 %v4358_v27, 0.0  ;;  %v3618_v14 = vmax.f32 %v5958_v29, 0.0 }
 0xe6f   :  { %4869 = dma.done.wait [#allocation9 + $0x4], 16384 }
 0xe70   :  { %4870 = vsyncadd [#allocation9 + $0x4], 4294950912  ;;  %v3622_v38 = vpack.c.bf16 %v3616_v36, %v3616_v36  ;;  %v3626_v9 = vld [vmem:[#allocation6 + $0x8] sm:$0xff]  ;;  %v3628_v16 = vld [vmem:[#allocation6 + $0x18] sm:$0xff] }
 0xe71   :  { %v3625_v4 = vld [vmem:[#allocation6] sm:$0xff]  ;;  %3775 = vmatprep.subr.bf16.mxu0 %v3626_v9  ;;  %3857 = vmatprep.subr.bf16.mxu1 %v3628_v16  ;;  %v3627_v63 = vld [vmem:[#allocation6 + $0x10] sm:$0xff]  ;;  %v3630_v5 = vld [vmem:[#allocation6 + $0x28] sm:$0xff] }
 0xe72   :  { %3807 = vmatprep.mubr.bf16.mxu0 %v3622_v38  ;;  %3889 = vmatprep.mubr.bf16.mxu1 %v3622_v38  ;;  %v3632_v0 = vld [vmem:[#allocation6 + $0x38] sm:$0xff]  ;;  %v3629_v17 = vld [vmem:[#allocation6 + $0x20] sm:$0xff]  ;;  %v3631_v8 = vld [vmem:[#allocation6 + $0x30] sm:$0xff] }
 0xe73   :  { %3776 = vmatpush1.bf16.msra.mxu0 %v3625_v4  ;;  %3858 = vmatpush1.bf16.msra.mxu1 %v3627_v63  ;;  %v3634_v19 = vld [vmem:[#allocation6 + $0x48] sm:$0xff]  ;;  %v3636_v39 = vld [vmem:[#allocation6 + $0x58] sm:$0xff]  ;;  %v3633_v20 = vld [vmem:[#allocation6 + $0x40] sm:$0xff] }
 0xe74   :  { %3777 = vmatprep.subr.bf16.mxu0 %v3630_v5  ;;  %3859 = vmatprep.subr.bf16.mxu1 %v3632_v0  ;;  %v3635_v21 = vld [vmem:[#allocation6 + $0x50] sm:$0xff]  ;;  %v3638_v22 = vld [vmem:[#allocation6 + $0x68] sm:$0xff]  ;;  %v3640_v25 = vld [vmem:[#allocation6 + $0x78] sm:$0xff] }
 0xe75   :  { %v3637_v43 = vld [vmem:[#allocation6 + $0x60] sm:$0xff]  ;;  %v3639_v52 = vld [vmem:[#allocation6 + $0x70] sm:$0xff]  ;;  %v3642_v51 = vld [vmem:[#allocation6 + $0x88] sm:$0xff] }
 0xe76   :  { %v3644_v53 = vld [vmem:[#allocation6 + $0x98] sm:$0xff]  ;;  %v3641_v45 = vld [vmem:[#allocation6 + $0x80] sm:$0xff]  ;;  %v3643_v54 = vld [vmem:[#allocation6 + $0x90] sm:$0xff] }
 0xe77   :  { %3778 = vmatpush1.bf16.msra.mxu0 %v3629_v17  ;;  %3860 = vmatpush1.bf16.msra.mxu1 %v3631_v8  ;;  %v3646_v47 = vld [vmem:[#allocation6 + $0xa8] sm:$0xff]  ;;  %v3648_v12 = vld [vmem:[#allocation6 + $0xb8] sm:$0xff]  ;;  %v3645_v15 = vld [vmem:[#allocation6 + $0xa0] sm:$0xff] }
 0xe78   :  { %3779 = vmatprep.subr.bf16.mxu0 %v3634_v19  ;;  %3861 = vmatprep.subr.bf16.mxu1 %v3636_v39  ;;  %v3647_v55 = vld [vmem:[#allocation6 + $0xb0] sm:$0xff]  ;;  %v3650_v58 = vld [vmem:[#allocation6 + $0xc8] sm:$0xff]  ;;  %v3652_v60 = vld [vmem:[#allocation6 + $0xd8] sm:$0xff] }
 0xe79   :  { %v3649_v10 = vld [vmem:[#allocation6 + $0xc0] sm:$0xff]  ;;  %v3651_v62 = vld [vmem:[#allocation6 + $0xd0] sm:$0xff]  ;;  %v3654_v37 = vld [vmem:[#allocation6 + $0xe8] sm:$0xff] }
 0xe7a   :  { %v3656_v46 = vld [vmem:[#allocation6 + $0xf8] sm:$0xff]  ;;  %v3653_v1 = vld [vmem:[#allocation6 + $0xe0] sm:$0xff]  ;;  %v3655_v2 = vld [vmem:[#allocation6 + $0xf0] sm:$0xff] }
 0xe7b   :  { %3780 = vmatpush1.bf16.msra.mxu0 %v3633_v20  ;;  %3862 = vmatpush1.bf16.msra.mxu1 %v3635_v21  ;;  %v3658_v18 = vld [vmem:[#allocation6 + $0x108] sm:$0xff]  ;;  %v3660_v28 = vld [vmem:[#allocation6 + $0x118] sm:$0xff]  ;;  %v3657_v13 = vld [vmem:[#allocation6 + $0x100] sm:$0xff] }
 0xe7c   :  { %3781 = vmatprep.subr.bf16.mxu0 %v3638_v22  ;;  %3863 = vmatprep.subr.bf16.mxu1 %v3640_v25  ;;  %v3659_v57 = vld [vmem:[#allocation6 + $0x110] sm:$0xff]  ;;  %v3662_v33 = vld [vmem:[#allocation6 + $0x128] sm:$0xff]  ;;  %v3664_v56 = vld [vmem:[#allocation6 + $0x138] sm:$0xff]  ;;  %v3621_v22 = vpack.c.bf16 %v3615_v32, %v3615_v32 }
 0xe7d   :  { %v3661_v48 = vld [vmem:[#allocation6 + $0x120] sm:$0xff]  ;;  %v3663_v61 = vld [vmem:[#allocation6 + $0x130] sm:$0xff]  ;;  %v3666_v41 = vld [vmem:[#allocation6 + $0x148] sm:$0xff] }
 0xe7e   :  { %v3668_v44 = vld [vmem:[#allocation6 + $0x158] sm:$0xff]  ;;  %v3665_v24 = vld [vmem:[#allocation6 + $0x140] sm:$0xff]  ;;  %v3667_v23 = vld [vmem:[#allocation6 + $0x150] sm:$0xff] }
 0xe7f   :  { %3782 = vmatpush1.bf16.msra.mxu0 %v3637_v43  ;;  %3864 = vmatpush1.bf16.msra.mxu1 %v3639_v52  ;;  %v3670_v42 = vld [vmem:[#allocation6 + $0x168] sm:$0xff]  ;;  %v3672_v49 = vld [vmem:[#allocation6 + $0x178] sm:$0xff]  ;;  %v3669_v7 = vld [vmem:[#allocation6 + $0x160] sm:$0xff] }
 0xe80   :  { %3783 = vmatprep.subr.bf16.mxu0 %v3642_v51  ;;  %3865 = vmatprep.subr.bf16.mxu1 %v3644_v53  ;;  %v3671_v27 = vld [vmem:[#allocation6 + $0x170] sm:$0xff]  ;;  %v3674_v30 = vld [vmem:[#allocation6 + $0x188] sm:$0xff]  ;;  %v3676_v31 = vld [vmem:[#allocation6 + $0x198] sm:$0xff]  ;;  %v3624_v53 = vpack.c.bf16 %v3618_v14, %v3618_v14 }
 0xe81   :  { %v3673_v35 = vld [vmem:[#allocation6 + $0x180] sm:$0xff]  ;;  %v3675_v11 = vld [vmem:[#allocation6 + $0x190] sm:$0xff]  ;;  %v3678_v36 = vld [vmem:[#allocation6 + $0x1a8] sm:$0xff] }
 0xe82   :  { %v3680_v38 = vld [vmem:[#allocation6 + $0x1b8] sm:$0xff]  ;;  %v3677_v9 = vld [vmem:[#allocation6 + $0x1a0] sm:$0xff]  ;;  %v3679_v16 = vld [vmem:[#allocation6 + $0x1b0] sm:$0xff] }
 0xe83   :  { %3784 = vmatpush1.bf16.msra.mxu0 %v3641_v45  ;;  %3866 = vmatpush1.bf16.msra.mxu1 %v3643_v54  ;;  %v3682_v4 = vld [vmem:[#allocation6 + $0x1c8] sm:$0xff]  ;;  %v3684_v63 = vld [vmem:[#allocation6 + $0x1d8] sm:$0xff]  ;;  %v3681_v5 = vld [vmem:[#allocation6 + $0x1c0] sm:$0xff] }
 0xe84   :  { %3785 = vmatprep.subr.bf16.mxu0 %v3646_v47  ;;  %3867 = vmatprep.subr.bf16.mxu1 %v3648_v12  ;;  %v3683_v0 = vld [vmem:[#allocation6 + $0x1d0] sm:$0xff]  ;;  %v3686_v17 = vld [vmem:[#allocation6 + $0x1e8] sm:$0xff]  ;;  %v3688_v8 = vld [vmem:[#allocation6 + $0x1f8] sm:$0xff] }
 0xe85   :  { %v3685_v19 = vld [vmem:[#allocation6 + $0x1e0] sm:$0xff]  ;;  %v3687_v39 = vld [vmem:[#allocation6 + $0x1f0] sm:$0xff]  ;;  %v3690_v20 = vld [vmem:[#allocation6 + $0x208] sm:$0xff] }
 0xe86   :  { %v3692_v21 = vld [vmem:[#allocation6 + $0x218] sm:$0xff]  ;;  %v3689_v25 = vld [vmem:[#allocation6 + $0x200] sm:$0xff]  ;;  %v3691_v43 = vld [vmem:[#allocation6 + $0x210] sm:$0xff] }
 0xe87   :  { %3786 = vmatpush1.bf16.msra.mxu0 %v3645_v15  ;;  %3868 = vmatpush1.bf16.msra.mxu1 %v3647_v55  ;;  %v3694_v52 = vld [vmem:[#allocation6 + $0x228] sm:$0xff]  ;;  %v3696_v51 = vld [vmem:[#allocation6 + $0x238] sm:$0xff]  ;;  %v3693_v40 = vld [vmem:[#allocation6 + $0x220] sm:$0xff] }
 0xe88   :  { %3787 = vmatprep.subr.bf16.mxu0 %v3650_v58  ;;  %3869 = vmatprep.subr.bf16.mxu1 %v3652_v60  ;;  %v3695_v32 = vld [vmem:[#allocation6 + $0x230] sm:$0xff]  ;;  %v3698_v45 = vld [vmem:[#allocation6 + $0x248] sm:$0xff]  ;;  %v3700_v54 = vld [vmem:[#allocation6 + $0x258] sm:$0xff] }
 0xe89   :  { %v3697_v47 = vld [vmem:[#allocation6 + $0x240] sm:$0xff]  ;;  %v3699_v29 = vld [vmem:[#allocation6 + $0x250] sm:$0xff]  ;;  %v3702_v12 = vld [vmem:[#allocation6 + $0x268] sm:$0xff] }
 0xe8a   :  { %v3704_v14 = vld [vmem:[#allocation6 + $0x278] sm:$0xff]  ;;  %v3701_v15 = vld [vmem:[#allocation6 + $0x260] sm:$0xff]  ;;  %v3703_v55 = vld [vmem:[#allocation6 + $0x270] sm:$0xff] }
 0xe8b   :  { %3788 = vmatpush1.bf16.msra.mxu0 %v3649_v10  ;;  %3870 = vmatpush1.bf16.msra.mxu1 %v3651_v62  ;;  %v3706_v58 = vld [vmem:[#allocation6 + $0x288] sm:$0xff]  ;;  %v3708_v60 = vld [vmem:[#allocation6 + $0x298] sm:$0xff]  ;;  %v3705_v10 = vld [vmem:[#allocation6 + $0x280] sm:$0xff] }
 0xe8c   :  { %3789 = vmatprep.subr.bf16.mxu0 %v3654_v37  ;;  %3871 = vmatprep.subr.bf16.mxu1 %v3656_v46  ;;  %v3707_v62 = vld [vmem:[#allocation6 + $0x290] sm:$0xff]  ;;  %v3710_v37 = vld [vmem:[#allocation6 + $0x2a8] sm:$0xff]  ;;  %v3712_v46 = vld [vmem:[#allocation6 + $0x2b8] sm:$0xff] }
 0xe8f   :  { %3790 = vmatpush1.bf16.msra.mxu0 %v3653_v1  ;;  %3872 = vmatpush1.bf16.msra.mxu1 %v3655_v2  ;;  %v3709_v1 = vld [vmem:[#allocation6 + $0x2a0] sm:$0xff]  ;;  %v3711_v2 = vld [vmem:[#allocation6 + $0x2b0] sm:$0xff] }
 0xe90   :  { %3791 = vmatprep.subr.bf16.mxu0 %v3658_v18  ;;  %3873 = vmatprep.subr.bf16.mxu1 %v3660_v28  ;;  %v3714_v18 = vld [vmem:[#allocation6 + $0x2c8] sm:$0xff]  ;;  %v3716_v28 = vld [vmem:[#allocation6 + $0x2d8] sm:$0xff] }
 0xe93   :  { %3792 = vmatpush1.bf16.msra.mxu0 %v3657_v13  ;;  %3874 = vmatpush1.bf16.msra.mxu1 %v3659_v57  ;;  %v3713_v13 = vld [vmem:[#allocation6 + $0x2c0] sm:$0xff]  ;;  %v3715_v57 = vld [vmem:[#allocation6 + $0x2d0] sm:$0xff] }
 0xe94   :  { %3793 = vmatprep.subr.bf16.mxu0 %v3662_v33  ;;  %3875 = vmatprep.subr.bf16.mxu1 %v3664_v56  ;;  %v3718_v33 = vld [vmem:[#allocation6 + $0x2e8] sm:$0xff]  ;;  %v3720_v56 = vld [vmem:[#allocation6 + $0x2f8] sm:$0xff] }
 0xe97   :  { %3794 = vmatpush1.bf16.msra.mxu0 %v3661_v48  ;;  %3876 = vmatpush1.bf16.msra.mxu1 %v3663_v61  ;;  %v3717_v48 = vld [vmem:[#allocation6 + $0x2e0] sm:$0xff]  ;;  %v3719_v61 = vld [vmem:[#allocation6 + $0x2f0] sm:$0xff] }
 0xe98   :  { %3795 = vmatprep.subr.bf16.mxu0 %v3666_v41  ;;  %3877 = vmatprep.subr.bf16.mxu1 %v3668_v44  ;;  %v3722_v41 = vld [vmem:[#allocation6 + $0x308] sm:$0xff]  ;;  %v3724_v44 = vld [vmem:[#allocation6 + $0x318] sm:$0xff] }
 0xe9b   :  { %3796 = vmatpush1.bf16.msra.mxu0 %v3665_v24  ;;  %3878 = vmatpush1.bf16.msra.mxu1 %v3667_v23  ;;  %v3721_v24 = vld [vmem:[#allocation6 + $0x300] sm:$0xff]  ;;  %v3723_v23 = vld [vmem:[#allocation6 + $0x310] sm:$0xff] }
 0xe9c   :  { %3797 = vmatprep.subr.bf16.mxu0 %v3670_v42  ;;  %3879 = vmatprep.subr.bf16.mxu1 %v3672_v49  ;;  %v3726_v42 = vld [vmem:[#allocation6 + $0x328] sm:$0xff]  ;;  %v3728_v49 = vld [vmem:[#allocation6 + $0x338] sm:$0xff] }
 0xe9f   :  { %3798 = vmatpush1.bf16.msra.mxu0 %v3669_v7  ;;  %3880 = vmatpush1.bf16.msra.mxu1 %v3671_v27  ;;  %v3725_v7 = vld [vmem:[#allocation6 + $0x320] sm:$0xff]  ;;  %v3727_v27 = vld [vmem:[#allocation6 + $0x330] sm:$0xff] }
 0xea0   :  { %3799 = vmatprep.subr.bf16.mxu0 %v3674_v30  ;;  %3881 = vmatprep.subr.bf16.mxu1 %v3676_v31  ;;  %v3730_v30 = vld [vmem:[#allocation6 + $0x348] sm:$0xff]  ;;  %v3732_v31 = vld [vmem:[#allocation6 + $0x358] sm:$0xff] }
 0xea3   :  { %3800 = vmatpush1.bf16.msra.mxu0 %v3673_v35  ;;  %3882 = vmatpush1.bf16.msra.mxu1 %v3675_v11  ;;  %v3729_v35 = vld [vmem:[#allocation6 + $0x340] sm:$0xff]  ;;  %v3731_v11 = vld [vmem:[#allocation6 + $0x350] sm:$0xff] }
 0xea4   :  { %3801 = vmatprep.subr.bf16.mxu0 %v3678_v36  ;;  %3883 = vmatprep.subr.bf16.mxu1 %v3680_v38  ;;  %v3734_v36 = vld [vmem:[#allocation6 + $0x368] sm:$0xff]  ;;  %v3736_v38 = vld [vmem:[#allocation6 + $0x378] sm:$0xff] }
 0xea7   :  { %3802 = vmatpush1.bf16.msra.mxu0 %v3677_v9  ;;  %3884 = vmatpush1.bf16.msra.mxu1 %v3679_v16  ;;  %v3733_v9 = vld [vmem:[#allocation6 + $0x360] sm:$0xff]  ;;  %v3735_v16 = vld [vmem:[#allocation6 + $0x370] sm:$0xff] }
 0xea8   :  { %3803 = vmatprep.subr.bf16.mxu0 %v3682_v4  ;;  %3885 = vmatprep.subr.bf16.mxu1 %v3684_v63  ;;  %v3738_v4 = vld [vmem:[#allocation6 + $0x388] sm:$0xff]  ;;  %v3740_v63 = vld [vmem:[#allocation6 + $0x398] sm:$0xff] }
 0xeab   :  { %3804 = vmatpush1.bf16.msra.mxu0 %v3681_v5  ;;  %3886 = vmatpush1.bf16.msra.mxu1 %v3683_v0  ;;  %v3737_v5 = vld [vmem:[#allocation6 + $0x380] sm:$0xff]  ;;  %v3739_v0 = vld [vmem:[#allocation6 + $0x390] sm:$0xff] }
 0xeac   :  { %3805 = vmatprep.subr.bf16.mxu0 %v3686_v17  ;;  %3887 = vmatprep.subr.bf16.mxu1 %v3688_v8  ;;  %v3742_v17 = vld [vmem:[#allocation6 + $0x3a8] sm:$0xff]  ;;  %v3744_v8 = vld [vmem:[#allocation6 + $0x3b8] sm:$0xff] }
 0xeaf   :  { %3806 = vmatpush1.bf16.msra.mxu0 %v3685_v19  ;;  %3888 = vmatpush1.bf16.msra.mxu1 %v3687_v39  ;;  %v3741_v19 = vld [vmem:[#allocation6 + $0x3a0] sm:$0xff]  ;;  %v3743_v39 = vld [vmem:[#allocation6 + $0x3b0] sm:$0xff] }
 0xeb0   :  { %3816 = vmatprep.subr.bf16.mxu0 %v3690_v20  ;;  %3898 = vmatprep.subr.bf16.mxu1 %v3692_v21  ;;  %v3746_v20 = vld [vmem:[#allocation6 + $0x3c8] sm:$0xff]  ;;  %v3748_v21 = vld [vmem:[#allocation6 + $0x3d8] sm:$0xff] }
 0xeb2   :  { %3808 = vmatmul.mubr.bf16.vlgmr.msra.gmra.mrb[72].mxu0 %v3621_v22  ;;  %3890 = vmatmul.mubr.bf16.vlgmr.msra.gmra.mrb[72].mxu1 %v3621_v22  ;;  %v3745_v22 = vld [vmem:[#allocation6 + $0x3c0] sm:$0xff] }
 0xeb3   :  { %3817 = vmatpush1.bf16.msra.mxu0 %v3689_v25  ;;  %3899 = vmatpush1.bf16.msra.mxu1 %v3691_v43  ;;  %v3747_v25 = vld [vmem:[#allocation6 + $0x3d0] sm:$0xff]  ;;  %v3750_v43 = vld [vmem:[#allocation6 + $0x3e8] sm:$0xff] }
 0xeb4   :  { %3818 = vmatprep.subr.bf16.mxu0 %v3694_v52  ;;  %3900 = vmatprep.subr.bf16.mxu1 %v3696_v51  ;;  %v3752_v52 = vld [vmem:[#allocation6 + $0x3f8] sm:$0xff]  ;;  %v3749_v51 = vld [vmem:[#allocation6 + $0x3e0] sm:$0xff] }
 0xeb5   :  { %3848 = vmatprep.mubr.bf16.mxu0 %v3624_v53  ;;  %3930 = vmatprep.mubr.bf16.mxu1 %v3624_v53  ;;  %v3751_v53 = vld [vmem:[#allocation6 + $0x3f0] sm:$0xff] }
 0xeb7   :  { %3819 = vmatpush1.bf16.msra.mxu0 %v3693_v40  ;;  %3901 = vmatpush1.bf16.msra.mxu1 %v3695_v32  ;;  %v3623_v40 = vpack.c.bf16 %v3617_v34, %v3617_v34  ;;  %v3753_v32 = vld [vmem:[%s6007_s10] sm:$0xf] }
 0xeb8   :  { %3820 = vmatprep.subr.bf16.mxu0 %v3698_v45  ;;  %3902 = vmatprep.subr.bf16.mxu1 %v3700_v54  ;;  %v3758_v45 = vrot.slane %v3753_v32, %v6083_v59  ;;  %v3766_v54 = vrot.slane %v3753_v32, %v6084_v3 }
 0xebb   :  { %3821 = vmatpush1.bf16.msra.mxu0 %v3697_v47  ;;  %3903 = vmatpush1.bf16.msra.mxu1 %v3699_v29  ;;  %v3762_v47 = vrot.slane %v3753_v32, %v6085_v6  ;;  %v3770_v29 = vrot.slane %v3753_v32, %v6086_v26 }
 0xebc   :  { %3822 = vmatprep.subr.bf16.mxu0 %v3702_v12  ;;  %3904 = vmatprep.subr.bf16.mxu1 %v3704_v14 }
 0xebf   :  { %3823 = vmatpush1.bf16.msra.mxu0 %v3701_v15  ;;  %3905 = vmatpush1.bf16.msra.mxu1 %v3703_v55 }
 0xec0   :  { %3824 = vmatprep.subr.bf16.mxu0 %v3706_v58  ;;  %3906 = vmatprep.subr.bf16.mxu1 %v3708_v60 }
 0xec3   :  { %3825 = vmatpush1.bf16.msra.mxu0 %v3705_v10  ;;  %3907 = vmatpush1.bf16.msra.mxu1 %v3707_v62 }
 0xec4   :  { %3826 = vmatprep.subr.bf16.mxu0 %v3710_v37  ;;  %3908 = vmatprep.subr.bf16.mxu1 %v3712_v46 }
 0xec7   :  { %3827 = vmatpush1.bf16.msra.mxu0 %v3709_v1  ;;  %3909 = vmatpush1.bf16.msra.mxu1 %v3711_v2 }
 0xec8   :  { %3828 = vmatprep.subr.bf16.mxu0 %v3714_v18  ;;  %3910 = vmatprep.subr.bf16.mxu1 %v3716_v28 }
 0xecb   :  { %3829 = vmatpush1.bf16.msra.mxu0 %v3713_v13  ;;  %3911 = vmatpush1.bf16.msra.mxu1 %v3715_v57 }
 0xecc   :  { %3830 = vmatprep.subr.bf16.mxu0 %v3718_v33  ;;  %3912 = vmatprep.subr.bf16.mxu1 %v3720_v56 }
 0xecf   :  { %3831 = vmatpush1.bf16.msra.mxu0 %v3717_v48  ;;  %3913 = vmatpush1.bf16.msra.mxu1 %v3719_v61 }
 0xed0   :  { %3832 = vmatprep.subr.bf16.mxu0 %v3722_v41  ;;  %3914 = vmatprep.subr.bf16.mxu1 %v3724_v44 }
 0xed3   :  { %3833 = vmatpush1.bf16.msra.mxu0 %v3721_v24  ;;  %3915 = vmatpush1.bf16.msra.mxu1 %v3723_v23 }
 0xed4   :  { %3834 = vmatprep.subr.bf16.mxu0 %v3726_v42  ;;  %3916 = vmatprep.subr.bf16.mxu1 %v3728_v49 }
 0xed7   :  { %3835 = vmatpush1.bf16.msra.mxu0 %v3725_v7  ;;  %3917 = vmatpush1.bf16.msra.mxu1 %v3727_v27 }
 0xed8   :  { %3836 = vmatprep.subr.bf16.mxu0 %v3730_v30  ;;  %3918 = vmatprep.subr.bf16.mxu1 %v3732_v31 }
 0xedb   :  { %3837 = vmatpush1.bf16.msra.mxu0 %v3729_v35  ;;  %3919 = vmatpush1.bf16.msra.mxu1 %v3731_v11 }
 0xedc   :  { %3838 = vmatprep.subr.bf16.mxu0 %v3734_v36  ;;  %3920 = vmatprep.subr.bf16.mxu1 %v3736_v38 }
 0xedf   :  { %3839 = vmatpush1.bf16.msra.mxu0 %v3733_v9  ;;  %3921 = vmatpush1.bf16.msra.mxu1 %v3735_v16 }
 0xee0   :  { %3840 = vmatprep.subr.bf16.mxu0 %v3738_v4  ;;  %3922 = vmatprep.subr.bf16.mxu1 %v3740_v63 }
 0xee3   :  { %3841 = vmatpush1.bf16.msra.mxu0 %v3737_v5  ;;  %3923 = vmatpush1.bf16.msra.mxu1 %v3739_v0 }
 0xee4   :  { %3842 = vmatprep.subr.bf16.mxu0 %v3742_v17  ;;  %3924 = vmatprep.subr.bf16.mxu1 %v3744_v8 }
 0xee7   :  { %3843 = vmatpush1.bf16.msra.mxu0 %v3741_v19  ;;  %3925 = vmatpush1.bf16.msra.mxu1 %v3743_v39 }
 0xee8   :  { %3844 = vmatprep.subr.bf16.mxu0 %v3746_v20  ;;  %3926 = vmatprep.subr.bf16.mxu1 %v3748_v21 }
 0xeeb   :  { %3845 = vmatpush1.bf16.msra.mxu0 %v3745_v22  ;;  %3927 = vmatpush1.bf16.msra.mxu1 %v3747_v25 }
 0xeec   :  { %3846 = vmatprep.subr.bf16.mxu0 %v3750_v43  ;;  %3928 = vmatprep.subr.bf16.mxu1 %v3752_v52 }
 0xeef   :  { %3847 = vmatpush1.bf16.msra.mxu0 %v3749_v51  ;;  %3929 = vmatpush1.bf16.msra.mxu1 %v3751_v53 }
 0xef2   :  { %3849 = vmatmul.mubr.bf16.vlgmr.msra.gmra.mrb[72].mxu0 %v3623_v40  ;;  %3931 = vmatmul.mubr.bf16.vlgmr.msra.gmra.mrb[72].mxu1 %v3623_v40 }
 0xfc5   :  { %v3850_v12 = vpop.f32.mrb[72].mxu0  ;;  %v3932_v50 = vpop.f32.mrb[72].mxu1 }
 0xfc6   :  { %v5979_v14 = vadd.f32 %v3850_v12, %v3758_v45  ;;  %v5981_v34 = vadd.f32 %v3932_v50, %v3766_v54  ;;  %v3852_v15 = vpop.f32.mrb[73].mxu0  ;;  %v3934_v55 = vpop.f32.mrb[73].mxu1 }
 0xfc7   :  { %v4362_v58 = vadd.f32 %v3852_v15, %v3762_v47  ;;  %v4364_v60 = vadd.f32 %v3934_v55, %v3770_v29  ;;  %v3854_v10 = vpop.f32.mrb[74].mxu0  ;;  %v3936_v62 = vpop.f32.mrb[74].mxu1 }
 0xfc8   :  { %v3939_v59 = vmax.f32 %v5979_v14, 0.0  ;;  %v3941_v3 = vmax.f32 %v5981_v34, 0.0  ;;  %v3855_v37 = vpop.f32.mrb[75].mxu0  ;;  %v3937_v6 = vpop.f32.mrb[75].mxu1 }
 0xfc9   :  { %v3940_v46 = vmax.f32 %v4362_v58, 0.0  ;;  %v3942_v26 = vmax.f32 %v4364_v60, 0.0 }
 0xfca   :  { %4871 = dma.done.wait [#allocation9 + $0x5], 4096 }
 0xfcb   :  { %4872 = vsyncadd [#allocation9 + $0x5], 4294963200  ;;  %v3947_v1 = vpack.c.bf16 %v3940_v46, %v3940_v46  ;;  %v3949_v2 = vpack.c.bf16 %v3942_v26, %v3942_v26  ;;  %v3958_v18 = vld [vmem:[#allocation7 + $0x40] sm:$0xff]  ;;  %v3959_v33 = vld [vmem:[#allocation7 + $0x48] sm:$0xff]  ;;  %v3946_v20 = vpack.c.bf16 %v3939_v59, %v3939_v59  ;;  %v3948_v21 = vpack.c.bf16 %v3941_v3, %v3941_v3  ;;  %s6087_s25 = sld [smem:[#allocation64_spill]] }
 0xfcc   :  { %v3974_v28 = vld [vmem:[#allocation7 + $0xc0] sm:$0xff]  ;;  %4305 = vmatprep.subr.bf16.mxu0 %v3958_v18  ;;  %v3975_v56 = vld [vmem:[#allocation7 + $0xc8] sm:$0xff]  ;;  %v3960_v41 = vld [vmem:[#allocation7 + $0x50] sm:$0xff] }
 0xfcd   :  { %4021 = vmatprep.mubr.bf16.mxu0 %v3947_v1  ;;  %4061 = vmatprep.mubr.bf16.mxu1 %v3949_v2  ;;  %v3950_v13 = vld [vmem:[#allocation7] sm:$0xff]  ;;  %v3951_v48 = vld [vmem:[#allocation7 + $0x8] sm:$0xff]  ;;  %v3976_v44 = vld [vmem:[#allocation7 + $0xd0] sm:$0xff] }
 0xfce   :  { %4327 = vmatprep.subr.bf16.mxu1 %v3974_v28  ;;  %v3966_v57 = vld [vmem:[#allocation7 + $0x80] sm:$0xff]  ;;  %4306 = vmatpush3.bf16.msra.mxu0 %v3950_v13  ;;  %v3967_v61 = vld [vmem:[#allocation7 + $0x88] sm:$0xff]  ;;  %v3952_v24 = vld [vmem:[#allocation7 + $0x10] sm:$0xff] }
 0xfcf   :  { %4328 = vmatpush3.bf16.msra.mxu1 %v3966_v57  ;;  %4307 = vmatprep.subr.bf16.mxu0 %v3959_v33  ;;  %v3968_v23 = vld [vmem:[#allocation7 + $0x90] sm:$0xff]  ;;  %v3961_v42 = vld [vmem:[#allocation7 + $0x58] sm:$0xff]  ;;  %v3962_v30 = vld [vmem:[#allocation7 + $0x60] sm:$0xff] }
 0xfd0   :  { %4329 = vmatprep.subr.bf16.mxu1 %v3975_v56  ;;  %v3977_v49 = vld [vmem:[#allocation7 + $0xd8] sm:$0xff]  ;;  %v3978_v31 = vld [vmem:[#allocation7 + $0xe0] sm:$0xff]  ;;  %v3963_v36 = vld [vmem:[#allocation7 + $0x68] sm:$0xff] }
 0xfd1   :  { %v3953_v7 = vld [vmem:[#allocation7 + $0x18] sm:$0xff]  ;;  %v3954_v35 = vld [vmem:[#allocation7 + $0x20] sm:$0xff]  ;;  %v3979_v38 = vld [vmem:[#allocation7 + $0xe8] sm:$0xff] }
 0xfd2   :  { %4308 = vmatpush3.bf16.msra.mxu0 %v3951_v48  ;;  %v3969_v27 = vld [vmem:[#allocation7 + $0x98] sm:$0xff]  ;;  %v3970_v11 = vld [vmem:[#allocation7 + $0xa0] sm:$0xff]  ;;  %v3955_v9 = vld [vmem:[#allocation7 + $0x28] sm:$0xff] }
 0xfd3   :  { %4330 = vmatpush3.bf16.msra.mxu1 %v3967_v61  ;;  %4309 = vmatprep.subr.bf16.mxu0 %v3960_v41  ;;  %v3971_v16 = vld [vmem:[#allocation7 + $0xa8] sm:$0xff]  ;;  %v3964_v4 = vld [vmem:[#allocation7 + $0x70] sm:$0xff]  ;;  %v3965_v17 = vld [vmem:[#allocation7 + $0x78] sm:$0xff] }
 0xfd4   :  { %4331 = vmatprep.subr.bf16.mxu1 %v3976_v44  ;;  %v3980_v63 = vld [vmem:[#allocation7 + $0xf0] sm:$0xff]  ;;  %v3981_v8 = vld [vmem:[#allocation7 + $0xf8] sm:$0xff]  ;;  %v4298_v43 = vld [vmem:[%s6008_s11] ss:$0 sm:$0xff] }
 0xfd5   :  { %v3956_v5 = vld [vmem:[#allocation7 + $0x30] sm:$0xff]  ;;  %v3957_v19 = vld [vmem:[#allocation7 + $0x38] sm:$0xff] }
 0xfd6   :  { %4310 = vmatpush3.bf16.msra.mxu0 %v3952_v24  ;;  %v3972_v0 = vld [vmem:[#allocation7 + $0xb0] sm:$0xff]  ;;  %v3973_v39 = vld [vmem:[#allocation7 + $0xb8] sm:$0xff] }
 0xfd7   :  { %4332 = vmatpush3.bf16.msra.mxu1 %v3968_v23  ;;  %4311 = vmatprep.subr.bf16.mxu0 %v3961_v42 }
 0xfd8   :  { %4333 = vmatprep.subr.bf16.mxu1 %v3977_v49 }
 0xfda   :  { %4312 = vmatpush3.bf16.msra.mxu0 %v3953_v7 }
 0xfdb   :  { %4334 = vmatpush3.bf16.msra.mxu1 %v3969_v27  ;;  %4313 = vmatprep.subr.bf16.mxu0 %v3962_v30 }
 0xfdc   :  { %4335 = vmatprep.subr.bf16.mxu1 %v3978_v31 }
 0xfde   :  { %4314 = vmatpush3.bf16.msra.mxu0 %v3954_v35 }
 0xfdf   :  { %4336 = vmatpush3.bf16.msra.mxu1 %v3970_v11  ;;  %4315 = vmatprep.subr.bf16.mxu0 %v3963_v36 }
 0xfe0   :  { %4337 = vmatprep.subr.bf16.mxu1 %v3979_v38 }
 0xfe2   :  { %4316 = vmatpush3.bf16.msra.mxu0 %v3955_v9 }
 0xfe3   :  { %4338 = vmatpush3.bf16.msra.mxu1 %v3971_v16  ;;  %4317 = vmatprep.subr.bf16.mxu0 %v3964_v4 }
 0xfe4   :  { %4339 = vmatprep.subr.bf16.mxu1 %v3980_v63 }
 0xfe6   :  { %4318 = vmatpush3.bf16.msra.mxu0 %v3956_v5 }
 0xfe7   :  { %4340 = vmatpush3.bf16.msra.mxu1 %v3972_v0  ;;  %4319 = vmatprep.subr.bf16.mxu0 %v3965_v17 }
 0xfe8   :  { %4341 = vmatprep.subr.bf16.mxu1 %v3981_v8 }
 0xfea   :  { %4320 = vmatpush3.bf16.msra.mxu0 %v3957_v19 }
 0xfeb   :  { %4342 = vmatpush3.bf16.msra.mxu1 %v3973_v39 }
 0xfed   :  { %4022 = vmatmul.mubr.bf16.vlgmr.msra.gmra.mrb[76].mxu0 %v3946_v20 }
 0xfee   :  { %4062 = vmatmul.mubr.bf16.vlgmr.msra.gmra.mrb[76].mxu1 %v3948_v21 }
0x10c0   :  { %v4321_v22 = vpop.f32.mrb[76].mxu0 }
0x10c1   :  { %v4343_v25 = vpop.f32.mrb[76].mxu1  ;;  %v4322_v52 = vpop.f32.mrb[77].mxu0 }
0x10c2   :  { %v4344_v51 = vpop.f32.mrb[77].mxu1  ;;  %v4323_v53 = vadd.f32 %v4322_v52, %v4321_v22  ;;  %v4324_v32 = vpop.f32.mrb[78].mxu0 }
0x10c3   :  { %v4345_v40 = vadd.f32 %v4344_v51, %v4343_v25  ;;  %v4346_v45 = vpop.f32.mrb[78].mxu1  ;;  %v4325_v54 = vpop.f32.mrb[79].mxu0 }
0x10c4   :  { %v4347_v47 = vpop.f32.mrb[79].mxu1  ;;  %v4024_v29 = vadd.f32 %v4323_v53, %v4298_v43 }
0x10c6   :  { %v4064_v12 = vadd.f32 %v4345_v40, %v4024_v29 }
0x10c8   :  { %4069 = vst [vmem:[%s6087_s25] sm:$0xff] %v4064_v12 }
0x10c9   :  { %4074 = vsyncpa [#allocation11], 1 }
0x10ca   :  { %4075 = vsyncpa [#allocation13], 1 }
0x10cb   :  { %4076 = vsyncmov [#allocation9] }
0x10ce   :  { %s4077_s24 = vpop.sfrf %4076 }
0x10cf   :  { %p4299_p10 = scmp.ne.s32.totalorder %s4077_s24, 0 }
0x10d1   :  { %4081 = shalt.err (%p4299_p10)  }
0x10d2   :  { %4083 = vsyncmov [#allocation9 + $0x1] }
0x10d5   :  { %s4084_s11 = vpop.sfrf %4083 }
0x10d6   :  { %p4300_p11 = scmp.ne.s32.totalorder %s4084_s11, 0 }
0x10d8   :  { %4088 = shalt.err (%p4300_p11)  }
0x10d9   :  { %4090 = vsyncmov [#allocation9 + $0x2] }
0x10dc   :  { %s4091_s29 = vpop.sfrf %4090 }
0x10dd   :  { %p4301_p12 = scmp.ne.s32.totalorder %s4091_s29, 0 }
0x10df   :  { %4095 = shalt.err (%p4301_p12)  }
0x10e0   :  { %4097 = vsyncmov [#allocation9 + $0x3] }
0x10e3   :  { %s4098_s19 = vpop.sfrf %4097 }
0x10e4   :  { %p4302_p13 = scmp.ne.s32.totalorder %s4098_s19, 0 }
0x10e6   :  { %4102 = shalt.err (%p4302_p13)  }
0x10e7   :  { %4104 = vsyncmov [#allocation9 + $0x4] }
0x10ea   :  { %s4105_s15 = vpop.sfrf %4104 }
0x10eb   :  { %p4303_p0 = scmp.ne.s32.totalorder %s4105_s15, 0 }
0x10ed   :  { %4109 = shalt.err (%p4303_p0)  }
0x10ee   :  { %4111 = vsyncmov [#allocation9 + $0x5] }
0x10f1   :  { %s4112_s4 = vpop.sfrf %4111 }
0x10f2   :  { %p4304_p1 = scmp.ne.s32.totalorder %s4112_s4, 0 }
0x10f4   :  { %4116 = shalt.err (%p4304_p1)  }

</bundles_post_ra>
